<compile_context>
chip_gen: v6e
topology: v6e:2x2x1
jax: 0.10.0
libtpu: 0.0.40
codegen_flags: <defaults>
</compile_context>

<pallas_src>
import functools

import jax
import jax.numpy as jnp
from jax.experimental import pallas as pl
from jax.experimental.pallas import tpu as pltpu

LANE = 128


def _round_up(x, m):
    return (x + m - 1) // m * m


# ------------------------ XLA-side preprocessing helpers ---------------------

def _bilinear_up2_nhwc(x):
    """nn.Upsample(scale_factor=2, mode='bilinear', align_corners=True), NHWC."""
    B, H, W, C = x.shape
    Ho, Wo = 2 * H, 2 * W

    def coords(n_in, n_out):
        if n_in == 1:                                  # degenerate-size guard
            return (jnp.zeros((n_out,), jnp.int32),
                    jnp.zeros((n_out,), jnp.float32))
        pos = jnp.arange(n_out, dtype=jnp.float32) * (n_in - 1) / (n_out - 1)
        lo = jnp.clip(jnp.floor(pos).astype(jnp.int32), 0, n_in - 2)
        frac = pos - lo.astype(jnp.float32)
        return lo, frac

    hlo, hf = coords(H, Ho)
    wlo, wf = coords(W, Wo)
    xh = (x[:, hlo, :, :] * (1.0 - hf)[None, :, None, None]
          + x[:, hlo + 1, :, :] * hf[None, :, None, None])
    out = (xh[:, :, wlo, :] * (1.0 - wf)[None, None, :, None]
           + xh[:, :, wlo + 1, :] * wf[None, None, :, None])
    return out


def _upsample_pad_concat_nhwc(x1, x2):
    """NCHW x1 (low-res), x2 (skip) -> NHWC concat [x2, x1] at x2's resolution."""
    x1 = jnp.transpose(x1, (0, 2, 3, 1))
    x2 = jnp.transpose(x2, (0, 2, 3, 1))
    x1 = _bilinear_up2_nhwc(x1)
    dH = x2.shape[1] - x1.shape[1]
    dW = x2.shape[2] - x1.shape[2]
    x1 = jnp.pad(x1, ((0, 0),
                      (dH // 2, dH - dH // 2),
                      (dW // 2, dW - dW // 2),
                      (0, 0)))
    return jnp.concatenate([x2, x1], axis=-1)          # channel order = torch.cat


def fold_bn(gamma, beta, mean, var, conv_bias, eps=1e-5):
    scale = gamma / jnp.sqrt(var + eps)
    shift = beta + scale * (conv_bias - mean)
    return scale, shift


def init_up_params(key, in_ch, out_ch):
    # NOTE: real PyTorch conv weights are OIHW and must be transposed to HWIO
    # before use; these are generated directly in HWIO.
    k = jax.random.split(key, 8)
    p = {}
    p["w1"] = 0.1 * jax.random.normal(k[0], (3, 3, in_ch, out_ch), jnp.float32)
    b1 = 0.1 * jax.random.normal(k[1], (out_ch,), jnp.float32)
    g1 = 1.0 + 0.1 * jax.random.normal(k[2], (out_ch,), jnp.float32)
    be1 = 0.1 * jax.random.normal(k[3], (out_ch,), jnp.float32)
    p["scale1"], p["shift1"] = fold_bn(
        g1, be1, jnp.zeros((out_ch,)), jnp.ones((out_ch,)), b1)
    p["w2"] = 0.1 * jax.random.normal(k[4], (3, 3, out_ch, out_ch), jnp.float32)
    b2 = 0.1 * jax.random.normal(k[5], (out_ch,), jnp.float32)
    g2 = 1.0 + 0.1 * jax.random.normal(k[6], (out_ch,), jnp.float32)
    be2 = 0.1 * jax.random.normal(k[7], (out_ch,), jnp.float32)
    p["scale2"], p["shift2"] = fold_bn(
        g2, be2, jnp.zeros((out_ch,)), jnp.ones((out_ch,)), b2)
    return p


# ---------------------------- VMEM sizing helpers ----------------------------

def _vmem_estimate(th, WP, K1, Cp):
    """Rough per-core VMEM bytes for a row tile of `th` output rows."""
    s_in = (th + 6) * WP * K1 * 2 * 2          # input slab, double buffered
    s_out = th * WP * Cp * 2 * 2               # output block, double buffered
    s_mid = (th + 4) * WP * Cp * 2             # conv1 -> conv2 scratch
    s_w = (9 * K1 * Cp + 9 * Cp * Cp) * 2 * 2 + 4 * Cp * 4 * 2
    m1 = (th + 2) * WP
    s_live = m1 * Cp * 4 * 2 + m1 * max(K1, Cp) * 2 * 2   # f32 acc + tap operand
    return s_in + s_out + s_mid + s_w + s_live


def _pick_row_tile(H, WP, K1, Cp, budget_bytes=36 * 2**20):
    cands = sorted({min(H, c) for c in (128, 96, 64, 48, 32, 24, 16, 8, 4, 2, 1)},
                   reverse=True)
    for th in cands:
        if _vmem_estimate(th, WP, K1, Cp) <= budget_bytes:
            return th
    return 1


# ------------------------------ JAX wrapper ----------------------------------

def up_forward(params, x1, x2, row_tile=None):
    """x1: (B, in_ch//2, H/2, W/2), x2: (B, in_ch//2, H, W)  NCHW
    -> (B, out_ch, H, W) NCHW bf16 (matches the PyTorch module's forward)."""
    x = _upsample_pad_concat_nhwc(x1, x2)               # (B, H, W, C2+C1) f32
    B, H, W, Cin = x.shape
    out_ch = params["w2"].shape[-1]

    # -------- lane-dense packing (single lane group for the concat) ----------
    K1 = _round_up(Cin, LANE)
    Cp = _round_up(out_ch, LANE)
    WP = _round_up(W + 2, 8)          # >= W+1 zero cols; multiple of 8 (layout)

    if row_tile is None:
        TH = _pick_row_tile(H, WP, K1, Cp)
    else:
        TH = max(1, min(int(row_tile), H))
    Hp = _round_up(H, TH)
    T = Hp // TH

    # -------- pre-padded, flattened, overlapping row slabs (bf16) ------------
    x = jnp.pad(x, ((0, 0), (0, 0), (0, 0), (0, K1 - Cin))).astype(jnp.bfloat16)
    # 3 zero halo rows on top, (Hp - H) + 3 on the bottom, zero cols [W, WP).
    xp = jnp.pad(x, ((0, 0), (3, (Hp - H) + 3), (0, WP - W), (0, 0)))
    # tile t consumes padded rows [t*TH, t*TH + TH + 6)  (6-row halo overlap)
    row_idx = jnp.arange(T)[:, None] * TH + jnp.arange(TH + 6)[None, :]
    x_in = xp[:, row_idx].reshape(B, T, (TH + 6) * WP, K1)

    # -------- weights / folded BN, lane-padded, bf16 --------------------------
    w1p = (jnp.zeros((3, 3, K1, Cp), jnp.float32)
           .at[:, :, :Cin, :out_ch].set(params["w1"]).astype(jnp.bfloat16))
    w2p = (jnp.zeros((3, 3, Cp, Cp), jnp.float32)
           .at[:, :, :out_ch, :out_ch].set(params["w2"]).astype(jnp.bfloat16))

    def pad_vec(v, fill):
        return (jnp.full((1, Cp), fill, jnp.float32)
                .at[0, :out_ch].set(v.astype(jnp.float32)))

    s1, b1 = pad_vec(params["scale1"], 1.0), pad_vec(params["shift1"], 0.0)
    s2, b2 = pad_vec(params["scale2"], 1.0), pad_vec(params["shift2"], 0.0)

    M1 = (TH + 2) * WP        # conv1 output rows (1-row halo each side)
    M2 = TH * WP              # conv2 / final output rows per tile

    # ------------------------------ Pallas kernel ----------------------------
    def kernel(x_ref, w1_ref, s1_ref, b1_ref, w2_ref, s2_ref, b2_ref,
               o_ref, mid_ref):
        # x_ref  : ((TH+6)*WP, K1) bf16 — flat, pre-padded input slab.
        #          Flat row r = j*WP + w ; tap (dy, dx) of the 3x3 conv is
        #          flat index r + (dy+1)*WP + (dx-1)  (zero pad columns make
        #          the w-1 wrap into the previous row's last column read a 0).
        # mid_ref: ((TH+4)*WP, Cp) bf16 VMEM scratch — conv1 output staged for
        #          conv2; never touches HBM.
        # o_ref  : (TH*WP, Cp) bf16 — conv2 output (cols >= W are padding and
        #          are sliced off in the wrapper).
        t = pl.program_id(1)

        def conv3x3_bn_relu(src_ref, w_ref, scale, shift, m):
            acc = jnp.zeros((m, Cp), jnp.float32)
            for dy in range(3):
                for dx in range(3):
                    off = (dy + 1) * WP + (dx - 1)          # static offset
                    acc = acc + jnp.dot(src_ref[pl.ds(off, m), :],
                                        w_ref[dy, dx],
                                        preferred_element_type=jnp.float32)
            return jnp.maximum(acc * scale + shift, 0.0)    # folded BN + ReLU

        # conv1 over TH+2 rows (its 1-row halo feeds conv2's 3x3 window).
        y1 = conv3x3_bn_relu(x_ref, w1_ref, s1_ref[...], b1_ref[...], M1)

        # Zero only the two mid halo rows conv2's flat addressing can wrap
        # into; every other mid row is fully overwritten below before use.
        mid_ref[0:WP, :] = jnp.zeros((WP, Cp), mid_ref.dtype)
        mid_ref[(TH + 3) * WP:(TH + 4) * WP, :] = jnp.zeros((WP, Cp),
                                                            mid_ref.dtype)

        # Mask (a) the zero-pad columns [W, WP) and (b) conv1 rows outside the
        # real image, so conv2 sees the same zero padding as the reference.
        y1 = y1.reshape(TH + 2, WP, Cp)
        col = jax.lax.broadcasted_iota(jnp.int32, (TH + 2, WP, 1), 1)
        row = jax.lax.broadcasted_iota(jnp.int32, (TH + 2, WP, 1), 0)
        g = t * TH - 1 + row                      # image row of this conv1 row
        valid = (col < W) & (g >= 0) & (g < H)
        y1 = jnp.where(valid, y1, 0.0).reshape(M1, Cp)
        mid_ref[pl.ds(WP, M1), :] = y1.astype(mid_ref.dtype)

        # conv2 reads the VMEM intermediate directly.
        y2 = conv3x3_bn_relu(mid_ref, w2_ref, s2_ref[...], b2_ref[...], M2)
        o_ref[...] = y2.astype(o_ref.dtype)

    # ------------------------------ pallas_call ------------------------------
    est = _vmem_estimate(TH, WP, K1, Cp)
    vmem_limit = int(min(max(est + 16 * 2**20, 32 * 2**20), 96 * 2**20))

    flops = 2 * B * T * 9 * (M1 * K1 * Cp + M2 * Cp * Cp)
    bytes_accessed = (x_in.size * 2 + w1p.size * 2 + w2p.size * 2
                      + 4 * Cp * 4 + B * T * M2 * Cp * 2)

    out = pl.pallas_call(
        kernel,
        out_shape=jax.ShapeDtypeStruct((B, T, M2, Cp), jnp.bfloat16),
        grid=(B, T),
        in_specs=[
            pl.BlockSpec((None, None, (TH + 6) * WP, K1),
                         lambda b, t: (b, t, 0, 0)),
            pl.BlockSpec((3, 3, K1, Cp), lambda b, t: (0, 0, 0, 0)),
            pl.BlockSpec((1, Cp), lambda b, t: (0, 0)),
            pl.BlockSpec((1, Cp), lambda b, t: (0, 0)),
            pl.BlockSpec((3, 3, Cp, Cp), lambda b, t: (0, 0, 0, 0)),
            pl.BlockSpec((1, Cp), lambda b, t: (0, 0)),
            pl.BlockSpec((1, Cp), lambda b, t: (0, 0)),
        ],
        out_specs=pl.BlockSpec((None, None, M2, Cp), lambda b, t: (b, t, 0, 0)),
        scratch_shapes=[pltpu.VMEM(((TH + 4) * WP, Cp), jnp.bfloat16)],
        compiler_params=pltpu.CompilerParams(
            dimension_semantics=("parallel", "parallel"),
            vmem_limit_bytes=vmem_limit,
        ),
        cost_estimate=pl.CostEstimate(flops=flops, transcendentals=0,
                                      bytes_accessed=bytes_accessed),
    )(x_in, w1p, s1, b1, w2p, s2, b2)

    # TODO(synk): keep the NHWC bf16 (padded Cp) block output when feeding a
    # fused Pallas consumer; the slice + NCHW transpose is module-parity glue.
    out = out.reshape(B, T, TH, WP, Cp)[:, :, :, :W, :out_ch]
    out = out.reshape(B, Hp, W, out_ch)[:, :H]
    return jnp.transpose(out, (0, 3, 1, 2))              # NCHW, bf16


# ------------------------------ pure-JAX reference ---------------------------

def _ref_up_forward(params, x1, x2):
    """f32 XLA reference using the same bf16 quantization points as the kernel."""
    x = _upsample_pad_concat_nhwc(x1, x2)
    x = x.astype(jnp.bfloat16).astype(jnp.float32)

    def conv_bn_relu(z, w, s, b):
        w = w.astype(jnp.bfloat16).astype(jnp.float32)
        y = jax.lax.conv_general_dilated(
            z, w, window_strides=(1, 1), padding="SAME",
            dimension_numbers=("NHWC", "HWIO", "NHWC"))
        return jnp.maximum(y * s + b, 0.0)

    y = conv_bn_relu(x, params["w1"], params["scale1"], params["shift1"])
    y = y.astype(jnp.bfloat16).astype(jnp.float32)       # kernel stages mid in bf16
    y = conv_bn_relu(y, params["w2"], params["scale2"], params["shift2"])
    return jnp.transpose(y, (0, 3, 1, 2))


# --------------------------------- main ---------------------------------------

if __name__ == "__main__":
    B, in_ch, out_ch = 2, 8, 4
    H, W = 16, 16

    key = jax.random.PRNGKey(0)
    kx1, kx2, kp = jax.random.split(key, 3)

    # x1: lower-resolution decoder feature; x2: skip connection (PyTorch NCHW).
    x1 = jax.random.normal(kx1, (B, in_ch // 2, H // 2, W // 2), jnp.float32)
    x2 = jax.random.normal(kx2, (B, in_ch // 2, H, W), jnp.float32)
    params = init_up_params(kp, in_ch, out_ch)

    fwd = jax.jit(functools.partial(up_forward, row_tile=8))   # T=2 row tiles
    out = jax.block_until_ready(fwd(params, x1, x2))

    assert out.shape == (B, out_ch, H, W), out.shape
    out_f32 = out.astype(jnp.float32)
    assert bool(jnp.all(jnp.isfinite(out_f32)))
    assert bool(jnp.all(out_f32 >= 0.0))                 # ends in ReLU

    ref = _ref_up_forward(params, x1, x2)
    max_err = float(jnp.max(jnp.abs(out_f32 - ref)))
    assert max_err < 5e-2, f"max abs error vs reference: {max_err}"

    print("KERNEL_OK")
</pallas_src>

<mosaic_0001>
module attributes {stable_mosaic.version = 11 : i64} {
  func.func @kernel(%arg0: i32, %arg1: i32, %arg2: memref<1x1x336x128xbf16, #tpu.memory_space<vmem>>, %arg3: memref<3x3x128x128xbf16, #tpu.memory_space<vmem>>, %arg4: memref<1x128xf32, #tpu.memory_space<vmem>>, %arg5: memref<1x128xf32, #tpu.memory_space<vmem>>, %arg6: memref<3x3x128x128xbf16, #tpu.memory_space<vmem>>, %arg7: memref<1x128xf32, #tpu.memory_space<vmem>>, %arg8: memref<1x128xf32, #tpu.memory_space<vmem>>, %arg9: memref<1x1x192x128xbf16, #tpu.memory_space<vmem>>, %arg10: memref<288x128xbf16, #tpu.memory_space<vmem>>) attributes {dimension_semantics = [#tpu.dimension_semantics<parallel>, #tpu.dimension_semantics<parallel>], iteration_bounds = array<i64: 2, 2>, scalar_prefetch = 0 : i64, scratch_operands = 1 : i64, tpu.core_type = #tpu.core_type<tc>, window_params = [{transform_indices = @transform_0, window_bounds = array<i64: 1, 1, 336, 128>}, {pipeline_mode = #tpu.pipeline_mode<synchronous>, transform_indices = @transform_1, window_bounds = array<i64: 3, 3, 128, 128>}, {pipeline_mode = #tpu.pipeline_mode<synchronous>, transform_indices = @transform_2, window_bounds = array<i64: 1, 128>}, {pipeline_mode = #tpu.pipeline_mode<synchronous>, transform_indices = @transform_3, window_bounds = array<i64: 1, 128>}, {pipeline_mode = #tpu.pipeline_mode<synchronous>, transform_indices = @transform_4, window_bounds = array<i64: 3, 3, 128, 128>}, {pipeline_mode = #tpu.pipeline_mode<synchronous>, transform_indices = @transform_5, window_bounds = array<i64: 1, 128>}, {pipeline_mode = #tpu.pipeline_mode<synchronous>, transform_indices = @transform_6, window_bounds = array<i64: 1, 128>}, {transform_indices = @transform_7, window_bounds = array<i64: 1, 1, 192, 128>}]} {
    %c0 = arith.constant 0 : index
    %c0_0 = arith.constant 0 : index
    %0 = vector.load %arg4[%c0, %c0_0] : memref<1x128xf32, #tpu.memory_space<vmem>>, vector<1x128xf32>
    %c0_1 = arith.constant 0 : index
    %c0_2 = arith.constant 0 : index
    %1 = vector.load %arg5[%c0_1, %c0_2] : memref<1x128xf32, #tpu.memory_space<vmem>>, vector<1x128xf32>
    %cst = arith.constant 0.000000e+00 : f32
    %2 = vector.broadcast %cst : f32 to vector<240x128xf32>
    %c0_3 = arith.constant 0 : index
    %c0_4 = arith.constant 0 : index
    %c23 = arith.constant 23 : index
    %c0_5 = arith.constant 0 : index
    %3 = vector.load %arg2[%c0_3, %c0_4, %c23, %c0_5] : memref<1x1x336x128xbf16, #tpu.memory_space<vmem>>, vector<1x1x240x128xbf16>
    %4 = vector.shape_cast %3 : vector<1x1x240x128xbf16> to vector<240x128xbf16>
    %c0_6 = arith.constant 0 : index
    %c0_7 = arith.constant 0 : index
    %c0_8 = arith.constant 0 : index
    %c0_9 = arith.constant 0 : index
    %5 = vector.load %arg3[%c0_6, %c0_7, %c0_8, %c0_9] : memref<3x3x128x128xbf16, #tpu.memory_space<vmem>>, vector<1x1x128x128xbf16>
    %6 = vector.shape_cast %5 : vector<1x1x128x128xbf16> to vector<128x128xbf16>
    %cst_10 = arith.constant dense<0.000000e+00> : vector<240x128xf32>
    %7 = tpu.matmul %4, %6, %cst_10 {dimension_numbers = #tpu.dot_dimension_numbers<[1], [0], [0], [1], [0, 0, 1, 1], [], []>} : vector<240x128xbf16>, vector<128x128xbf16>, vector<240x128xf32> -> vector<240x128xf32>
    %8 = arith.addf %2, %7 : vector<240x128xf32>
    %c0_11 = arith.constant 0 : index
    %c0_12 = arith.constant 0 : index
    %c24 = arith.constant 24 : index
    %c0_13 = arith.constant 0 : index
    %9 = vector.load %arg2[%c0_11, %c0_12, %c24, %c0_13] : memref<1x1x336x128xbf16, #tpu.memory_space<vmem>>, vector<1x1x240x128xbf16>
    %10 = vector.shape_cast %9 : vector<1x1x240x128xbf16> to vector<240x128xbf16>
    %c0_14 = arith.constant 0 : index
    %c1 = arith.constant 1 : index
    %c0_15 = arith.constant 0 : index
    %c0_16 = arith.constant 0 : index
    %11 = vector.load %arg3[%c0_14, %c1, %c0_15, %c0_16] : memref<3x3x128x128xbf16, #tpu.memory_space<vmem>>, vector<1x1x128x128xbf16>
    %12 = vector.shape_cast %11 : vector<1x1x128x128xbf16> to vector<128x128xbf16>
    %cst_17 = arith.constant dense<0.000000e+00> : vector<240x128xf32>
    %13 = tpu.matmul %10, %12, %cst_17 {dimension_numbers = #tpu.dot_dimension_numbers<[1], [0], [0], [1], [0, 0, 1, 1], [], []>} : vector<240x128xbf16>, vector<128x128xbf16>, vector<240x128xf32> -> vector<240x128xf32>
    %14 = arith.addf %8, %13 : vector<240x128xf32>
    %c0_18 = arith.constant 0 : index
    %c0_19 = arith.constant 0 : index
    %c25 = arith.constant 25 : index
    %c0_20 = arith.constant 0 : index
    %15 = vector.load %arg2[%c0_18, %c0_19, %c25, %c0_20] : memref<1x1x336x128xbf16, #tpu.memory_space<vmem>>, vector<1x1x240x128xbf16>
    %16 = vector.shape_cast %15 : vector<1x1x240x128xbf16> to vector<240x128xbf16>
    %c0_21 = arith.constant 0 : index
    %c2 = arith.constant 2 : index
    %c0_22 = arith.constant 0 : index
    %c0_23 = arith.constant 0 : index
    %17 = vector.load %arg3[%c0_21, %c2, %c0_22, %c0_23] : memref<3x3x128x128xbf16, #tpu.memory_space<vmem>>, vector<1x1x128x128xbf16>
    %18 = vector.shape_cast %17 : vector<1x1x128x128xbf16> to vector<128x128xbf16>
    %cst_24 = arith.constant dense<0.000000e+00> : vector<240x128xf32>
    %19 = tpu.matmul %16, %18, %cst_24 {dimension_numbers = #tpu.dot_dimension_numbers<[1], [0], [0], [1], [0, 0, 1, 1], [], []>} : vector<240x128xbf16>, vector<128x128xbf16>, vector<240x128xf32> -> vector<240x128xf32>
    %20 = arith.addf %14, %19 : vector<240x128xf32>
    %c0_25 = arith.constant 0 : index
    %c0_26 = arith.constant 0 : index
    %c47 = arith.constant 47 : index
    %c0_27 = arith.constant 0 : index
    %21 = vector.load %arg2[%c0_25, %c0_26, %c47, %c0_27] : memref<1x1x336x128xbf16, #tpu.memory_space<vmem>>, vector<1x1x240x128xbf16>
    %22 = vector.shape_cast %21 : vector<1x1x240x128xbf16> to vector<240x128xbf16>
    %c1_28 = arith.constant 1 : index
    %c0_29 = arith.constant 0 : index
    %c0_30 = arith.constant 0 : index
    %c0_31 = arith.constant 0 : index
    %23 = vector.load %arg3[%c1_28, %c0_29, %c0_30, %c0_31] : memref<3x3x128x128xbf16, #tpu.memory_space<vmem>>, vector<1x1x128x128xbf16>
    %24 = vector.shape_cast %23 : vector<1x1x128x128xbf16> to vector<128x128xbf16>
    %cst_32 = arith.constant dense<0.000000e+00> : vector<240x128xf32>
    %25 = tpu.matmul %22, %24, %cst_32 {dimension_numbers = #tpu.dot_dimension_numbers<[1], [0], [0], [1], [0, 0, 1, 1], [], []>} : vector<240x128xbf16>, vector<128x128xbf16>, vector<240x128xf32> -> vector<240x128xf32>
    %26 = arith.addf %20, %25 : vector<240x128xf32>
    %c0_33 = arith.constant 0 : index
    %c0_34 = arith.constant 0 : index
    %c48 = arith.constant 48 : index
    %c0_35 = arith.constant 0 : index
    %27 = vector.load %arg2[%c0_33, %c0_34, %c48, %c0_35] : memref<1x1x336x128xbf16, #tpu.memory_space<vmem>>, vector<1x1x240x128xbf16>
    %28 = vector.shape_cast %27 : vector<1x1x240x128xbf16> to vector<240x128xbf16>
    %c1_36 = arith.constant 1 : index
    %c1_37 = arith.constant 1 : index
    %c0_38 = arith.constant 0 : index
    %c0_39 = arith.constant 0 : index
    %29 = vector.load %arg3[%c1_36, %c1_37, %c0_38, %c0_39] : memref<3x3x128x128xbf16, #tpu.memory_space<vmem>>, vector<1x1x128x128xbf16>
    %30 = vector.shape_cast %29 : vector<1x1x128x128xbf16> to vector<128x128xbf16>
    %cst_40 = arith.constant dense<0.000000e+00> : vector<240x128xf32>
    %31 = tpu.matmul %28, %30, %cst_40 {dimension_numbers = #tpu.dot_dimension_numbers<[1], [0], [0], [1], [0, 0, 1, 1], [], []>} : vector<240x128xbf16>, vector<128x128xbf16>, vector<240x128xf32> -> vector<240x128xf32>
    %32 = arith.addf %26, %31 : vector<240x128xf32>
    %c0_41 = arith.constant 0 : index
    %c0_42 = arith.constant 0 : index
    %c49 = arith.constant 49 : index
    %c0_43 = arith.constant 0 : index
    %33 = vector.load %arg2[%c0_41, %c0_42, %c49, %c0_43] : memref<1x1x336x128xbf16, #tpu.memory_space<vmem>>, vector<1x1x240x128xbf16>
    %34 = vector.shape_cast %33 : vector<1x1x240x128xbf16> to vector<240x128xbf16>
    %c1_44 = arith.constant 1 : index
    %c2_45 = arith.constant 2 : index
    %c0_46 = arith.constant 0 : index
    %c0_47 = arith.constant 0 : index
    %35 = vector.load %arg3[%c1_44, %c2_45, %c0_46, %c0_47] : memref<3x3x128x128xbf16, #tpu.memory_space<vmem>>, vector<1x1x128x128xbf16>
    %36 = vector.shape_cast %35 : vector<1x1x128x128xbf16> to vector<128x128xbf16>
    %cst_48 = arith.constant dense<0.000000e+00> : vector<240x128xf32>
    %37 = tpu.matmul %34, %36, %cst_48 {dimension_numbers = #tpu.dot_dimension_numbers<[1], [0], [0], [1], [0, 0, 1, 1], [], []>} : vector<240x128xbf16>, vector<128x128xbf16>, vector<240x128xf32> -> vector<240x128xf32>
    %38 = arith.addf %32, %37 : vector<240x128xf32>
    %c0_49 = arith.constant 0 : index
    %c0_50 = arith.constant 0 : index
    %c71 = arith.constant 71 : index
    %c0_51 = arith.constant 0 : index
    %39 = vector.load %arg2[%c0_49, %c0_50, %c71, %c0_51] : memref<1x1x336x128xbf16, #tpu.memory_space<vmem>>, vector<1x1x240x128xbf16>
    %40 = vector.shape_cast %39 : vector<1x1x240x128xbf16> to vector<240x128xbf16>
    %c2_52 = arith.constant 2 : index
    %c0_53 = arith.constant 0 : index
    %c0_54 = arith.constant 0 : index
    %c0_55 = arith.constant 0 : index
    %41 = vector.load %arg3[%c2_52, %c0_53, %c0_54, %c0_55] : memref<3x3x128x128xbf16, #tpu.memory_space<vmem>>, vector<1x1x128x128xbf16>
    %42 = vector.shape_cast %41 : vector<1x1x128x128xbf16> to vector<128x128xbf16>
    %cst_56 = arith.constant dense<0.000000e+00> : vector<240x128xf32>
    %43 = tpu.matmul %40, %42, %cst_56 {dimension_numbers = #tpu.dot_dimension_numbers<[1], [0], [0], [1], [0, 0, 1, 1], [], []>} : vector<240x128xbf16>, vector<128x128xbf16>, vector<240x128xf32> -> vector<240x128xf32>
    %44 = arith.addf %38, %43 : vector<240x128xf32>
    %c0_57 = arith.constant 0 : index
    %c0_58 = arith.constant 0 : index
    %c72 = arith.constant 72 : index
    %c0_59 = arith.constant 0 : index
    %45 = vector.load %arg2[%c0_57, %c0_58, %c72, %c0_59] : memref<1x1x336x128xbf16, #tpu.memory_space<vmem>>, vector<1x1x240x128xbf16>
    %46 = vector.shape_cast %45 : vector<1x1x240x128xbf16> to vector<240x128xbf16>
    %c2_60 = arith.constant 2 : index
    %c1_61 = arith.constant 1 : index
    %c0_62 = arith.constant 0 : index
    %c0_63 = arith.constant 0 : index
    %47 = vector.load %arg3[%c2_60, %c1_61, %c0_62, %c0_63] : memref<3x3x128x128xbf16, #tpu.memory_space<vmem>>, vector<1x1x128x128xbf16>
    %48 = vector.shape_cast %47 : vector<1x1x128x128xbf16> to vector<128x128xbf16>
    %cst_64 = arith.constant dense<0.000000e+00> : vector<240x128xf32>
    %49 = tpu.matmul %46, %48, %cst_64 {dimension_numbers = #tpu.dot_dimension_numbers<[1], [0], [0], [1], [0, 0, 1, 1], [], []>} : vector<240x128xbf16>, vector<128x128xbf16>, vector<240x128xf32> -> vector<240x128xf32>
    %50 = arith.addf %44, %49 : vector<240x128xf32>
    %c0_65 = arith.constant 0 : index
    %c0_66 = arith.constant 0 : index
    %c73 = arith.constant 73 : index
    %c0_67 = arith.constant 0 : index
    %51 = vector.load %arg2[%c0_65, %c0_66, %c73, %c0_67] : memref<1x1x336x128xbf16, #tpu.memory_space<vmem>>, vector<1x1x240x128xbf16>
    %52 = vector.shape_cast %51 : vector<1x1x240x128xbf16> to vector<240x128xbf16>
    %c2_68 = arith.constant 2 : index
    %c2_69 = arith.constant 2 : index
    %c0_70 = arith.constant 0 : index
    %c0_71 = arith.constant 0 : index
    %53 = vector.load %arg3[%c2_68, %c2_69, %c0_70, %c0_71] : memref<3x3x128x128xbf16, #tpu.memory_space<vmem>>, vector<1x1x128x128xbf16>
    %54 = vector.shape_cast %53 : vector<1x1x128x128xbf16> to vector<128x128xbf16>
    %cst_72 = arith.constant dense<0.000000e+00> : vector<240x128xf32>
    %55 = tpu.matmul %52, %54, %cst_72 {dimension_numbers = #tpu.dot_dimension_numbers<[1], [0], [0], [1], [0, 0, 1, 1], [], []>} : vector<240x128xbf16>, vector<128x128xbf16>, vector<240x128xf32> -> vector<240x128xf32>
    %56 = arith.addf %50, %55 : vector<240x128xf32>
    %57 = vector.broadcast %0 : vector<1x128xf32> to vector<240x128xf32>
    %58 = arith.mulf %56, %57 : vector<240x128xf32>
    %59 = vector.broadcast %1 : vector<1x128xf32> to vector<240x128xf32>
    %60 = arith.addf %58, %59 : vector<240x128xf32>
    %cst_73 = arith.constant 0.000000e+00 : f32
    %61 = vector.broadcast %cst_73 : f32 to vector<240x128xf32>
    %62 = arith.maximumf %60, %61 : vector<240x128xf32>
    %cst_74 = arith.constant 0.000000e+00 : bf16
    %63 = vector.broadcast %cst_74 : bf16 to vector<24x128xbf16>
    %c0_75 = arith.constant 0 : index
    %c0_76 = arith.constant 0 : index
    %64 = vector.load %arg10[%c0_75, %c0_76] : memref<288x128xbf16, #tpu.memory_space<vmem>>, vector<24x128xbf16>
    tpu.vector_store %arg10[%c0_75, %c0_76], %63 {strides = array<i32>} : memref<288x128xbf16, #tpu.memory_space<vmem>>, vector<24x128xbf16>,
    %cst_77 = arith.constant 0.000000e+00 : bf16
    %65 = vector.broadcast %cst_77 : bf16 to vector<24x128xbf16>
    %c264 = arith.constant 264 : index
    %c0_78 = arith.constant 0 : index
    %66 = vector.load %arg10[%c264, %c0_78] : memref<288x128xbf16, #tpu.memory_space<vmem>>, vector<24x128xbf16>
    tpu.vector_store %arg10[%c264, %c0_78], %65 {strides = array<i32>} : memref<288x128xbf16, #tpu.memory_space<vmem>>, vector<24x128xbf16>,
    %67 = vector.shape_cast %62 : vector<240x128xf32> to vector<10x24x128xf32>
    %68 = tpu.iota {dimensions = array<i32: 1>} : vector<10x24x1xi32>
    %69 = tpu.iota {dimensions = array<i32: 0>} : vector<10x24x1xi32>
    %c8_i32 = arith.constant 8 : i32
    %70 = arith.muli %arg1, %c8_i32 : i32
    %c1_i32 = arith.constant 1 : i32
    %71 = arith.subi %70, %c1_i32 : i32
    %72 = vector.broadcast %71 : i32 to vector<10x24x1xi32>
    %73 = arith.addi %72, %69 : vector<10x24x1xi32>
    %c16_i32 = arith.constant 16 : i32
    %74 = vector.broadcast %c16_i32 : i32 to vector<10x24x1xi32>
    %75 = arith.cmpi slt, %68, %74 : vector<10x24x1xi32>
    %c0_i32 = arith.constant 0 : i32
    %76 = vector.broadcast %c0_i32 : i32 to vector<10x24x1xi32>
    %77 = arith.cmpi sge, %73, %76 : vector<10x24x1xi32>
    %78 = arith.andi %75, %77 : vector<10x24x1xi1>
    %c16_i32_79 = arith.constant 16 : i32
    %79 = vector.broadcast %c16_i32_79 : i32 to vector<10x24x1xi32>
    %80 = arith.cmpi slt, %73, %79 : vector<10x24x1xi32>
    %81 = arith.andi %78, %80 : vector<10x24x1xi1>
    %cst_80 = arith.constant 0.000000e+00 : f32
    %82 = vector.shape_cast %81 : vector<10x24x1xi1> to vector<10x24x1xi1>
    %83 = vector.broadcast %82 : vector<10x24x1xi1> to vector<10x24x128xi1>
    %84 = vector.broadcast %cst_80 : f32 to vector<10x24x128xf32>
    %85 = arith.select %83, %67, %84 : vector<10x24x128xi1>, vector<10x24x128xf32>
    %86 = vector.shape_cast %85 : vector<10x24x128xf32> to vector<240x128xf32>
    %87 = arith.truncf %86 : vector<240x128xf32> to vector<240x128xbf16>
    %c24_81 = arith.constant 24 : index
    %c0_82 = arith.constant 0 : index
    %88 = vector.load %arg10[%c24_81, %c0_82] : memref<288x128xbf16, #tpu.memory_space<vmem>>, vector<240x128xbf16>
    tpu.vector_store %arg10[%c24_81, %c0_82], %87 {strides = array<i32>} : memref<288x128xbf16, #tpu.memory_space<vmem>>, vector<240x128xbf16>,
    %c0_83 = arith.constant 0 : index
    %c0_84 = arith.constant 0 : index
    %89 = vector.load %arg7[%c0_83, %c0_84] : memref<1x128xf32, #tpu.memory_space<vmem>>, vector<1x128xf32>
    %c0_85 = arith.constant 0 : index
    %c0_86 = arith.constant 0 : index
    %90 = vector.load %arg8[%c0_85, %c0_86] : memref<1x128xf32, #tpu.memory_space<vmem>>, vector<1x128xf32>
    %cst_87 = arith.constant 0.000000e+00 : f32
    %91 = vector.broadcast %cst_87 : f32 to vector<192x128xf32>
    %c23_88 = arith.constant 23 : index
    %c0_89 = arith.constant 0 : index
    %92 = vector.load %arg10[%c23_88, %c0_89] : memref<288x128xbf16, #tpu.memory_space<vmem>>, vector<192x128xbf16>
    %c0_90 = arith.constant 0 : index
    %c0_91 = arith.constant 0 : index
    %c0_92 = arith.constant 0 : index
    %c0_93 = arith.constant 0 : index
    %93 = vector.load %arg6[%c0_90, %c0_91, %c0_92, %c0_93] : memref<3x3x128x128xbf16, #tpu.memory_space<vmem>>, vector<1x1x128x128xbf16>
    %94 = vector.shape_cast %93 : vector<1x1x128x128xbf16> to vector<128x128xbf16>
    %cst_94 = arith.constant dense<0.000000e+00> : vector<192x128xf32>
    %95 = tpu.matmul %92, %94, %cst_94 {dimension_numbers = #tpu.dot_dimension_numbers<[1], [0], [0], [1], [0, 0, 1, 1], [], []>} : vector<192x128xbf16>, vector<128x128xbf16>, vector<192x128xf32> -> vector<192x128xf32>
    %96 = arith.addf %91, %95 : vector<192x128xf32>
    %c24_95 = arith.constant 24 : index
    %c0_96 = arith.constant 0 : index
    %97 = vector.load %arg10[%c24_95, %c0_96] : memref<288x128xbf16, #tpu.memory_space<vmem>>, vector<192x128xbf16>
    %c0_97 = arith.constant 0 : index
    %c1_98 = arith.constant 1 : index
    %c0_99 = arith.constant 0 : index
    %c0_100 = arith.constant 0 : index
    %98 = vector.load %arg6[%c0_97, %c1_98, %c0_99, %c0_100] : memref<3x3x128x128xbf16, #tpu.memory_space<vmem>>, vector<1x1x128x128xbf16>
    %99 = vector.shape_cast %98 : vector<1x1x128x128xbf16> to vector<128x128xbf16>
    %cst_101 = arith.constant dense<0.000000e+00> : vector<192x128xf32>
    %100 = tpu.matmul %97, %99, %cst_101 {dimension_numbers = #tpu.dot_dimension_numbers<[1], [0], [0], [1], [0, 0, 1, 1], [], []>} : vector<192x128xbf16>, vector<128x128xbf16>, vector<192x128xf32> -> vector<192x128xf32>
    %101 = arith.addf %96, %100 : vector<192x128xf32>
    %c25_102 = arith.constant 25 : index
    %c0_103 = arith.constant 0 : index
    %102 = vector.load %arg10[%c25_102, %c0_103] : memref<288x128xbf16, #tpu.memory_space<vmem>>, vector<192x128xbf16>
    %c0_104 = arith.constant 0 : index
    %c2_105 = arith.constant 2 : index
    %c0_106 = arith.constant 0 : index
    %c0_107 = arith.constant 0 : index
    %103 = vector.load %arg6[%c0_104, %c2_105, %c0_106, %c0_107] : memref<3x3x128x128xbf16, #tpu.memory_space<vmem>>, vector<1x1x128x128xbf16>
    %104 = vector.shape_cast %103 : vector<1x1x128x128xbf16> to vector<128x128xbf16>
    %cst_108 = arith.constant dense<0.000000e+00> : vector<192x128xf32>
    %105 = tpu.matmul %102, %104, %cst_108 {dimension_numbers = #tpu.dot_dimension_numbers<[1], [0], [0], [1], [0, 0, 1, 1], [], []>} : vector<192x128xbf16>, vector<128x128xbf16>, vector<192x128xf32> -> vector<192x128xf32>
    %106 = arith.addf %101, %105 : vector<192x128xf32>
    %c47_109 = arith.constant 47 : index
    %c0_110 = arith.constant 0 : index
    %107 = vector.load %arg10[%c47_109, %c0_110] : memref<288x128xbf16, #tpu.memory_space<vmem>>, vector<192x128xbf16>
    %c1_111 = arith.constant 1 : index
    %c0_112 = arith.constant 0 : index
    %c0_113 = arith.constant 0 : index
    %c0_114 = arith.constant 0 : index
    %108 = vector.load %arg6[%c1_111, %c0_112, %c0_113, %c0_114] : memref<3x3x128x128xbf16, #tpu.memory_space<vmem>>, vector<1x1x128x128xbf16>
    %109 = vector.shape_cast %108 : vector<1x1x128x128xbf16> to vector<128x128xbf16>
    %cst_115 = arith.constant dense<0.000000e+00> : vector<192x128xf32>
    %110 = tpu.matmul %107, %109, %cst_115 {dimension_numbers = #tpu.dot_dimension_numbers<[1], [0], [0], [1], [0, 0, 1, 1], [], []>} : vector<192x128xbf16>, vector<128x128xbf16>, vector<192x128xf32> -> vector<192x128xf32>
    %111 = arith.addf %106, %110 : vector<192x128xf32>
    %c48_116 = arith.constant 48 : index
    %c0_117 = arith.constant 0 : index
    %112 = vector.load %arg10[%c48_116, %c0_117] : memref<288x128xbf16, #tpu.memory_space<vmem>>, vector<192x128xbf16>
    %c1_118 = arith.constant 1 : index
    %c1_119 = arith.constant 1 : index
    %c0_120 = arith.constant 0 : index
    %c0_121 = arith.constant 0 : index
    %113 = vector.load %arg6[%c1_118, %c1_119, %c0_120, %c0_121] : memref<3x3x128x128xbf16, #tpu.memory_space<vmem>>, vector<1x1x128x128xbf16>
    %114 = vector.shape_cast %113 : vector<1x1x128x128xbf16> to vector<128x128xbf16>
    %cst_122 = arith.constant dense<0.000000e+00> : vector<192x128xf32>
    %115 = tpu.matmul %112, %114, %cst_122 {dimension_numbers = #tpu.dot_dimension_numbers<[1], [0], [0], [1], [0, 0, 1, 1], [], []>} : vector<192x128xbf16>, vector<128x128xbf16>, vector<192x128xf32> -> vector<192x128xf32>
    %116 = arith.addf %111, %115 : vector<192x128xf32>
    %c49_123 = arith.constant 49 : index
    %c0_124 = arith.constant 0 : index
    %117 = vector.load %arg10[%c49_123, %c0_124] : memref<288x128xbf16, #tpu.memory_space<vmem>>, vector<192x128xbf16>
    %c1_125 = arith.constant 1 : index
    %c2_126 = arith.constant 2 : index
    %c0_127 = arith.constant 0 : index
    %c0_128 = arith.constant 0 : index
    %118 = vector.load %arg6[%c1_125, %c2_126, %c0_127, %c0_128] : memref<3x3x128x128xbf16, #tpu.memory_space<vmem>>, vector<1x1x128x128xbf16>
    %119 = vector.shape_cast %118 : vector<1x1x128x128xbf16> to vector<128x128xbf16>
    %cst_129 = arith.constant dense<0.000000e+00> : vector<192x128xf32>
    %120 = tpu.matmul %117, %119, %cst_129 {dimension_numbers = #tpu.dot_dimension_numbers<[1], [0], [0], [1], [0, 0, 1, 1], [], []>} : vector<192x128xbf16>, vector<128x128xbf16>, vector<192x128xf32> -> vector<192x128xf32>
    %121 = arith.addf %116, %120 : vector<192x128xf32>
    %c71_130 = arith.constant 71 : index
    %c0_131 = arith.constant 0 : index
    %122 = vector.load %arg10[%c71_130, %c0_131] : memref<288x128xbf16, #tpu.memory_space<vmem>>, vector<192x128xbf16>
    %c2_132 = arith.constant 2 : index
    %c0_133 = arith.constant 0 : index
    %c0_134 = arith.constant 0 : index
    %c0_135 = arith.constant 0 : index
    %123 = vector.load %arg6[%c2_132, %c0_133, %c0_134, %c0_135] : memref<3x3x128x128xbf16, #tpu.memory_space<vmem>>, vector<1x1x128x128xbf16>
    %124 = vector.shape_cast %123 : vector<1x1x128x128xbf16> to vector<128x128xbf16>
    %cst_136 = arith.constant dense<0.000000e+00> : vector<192x128xf32>
    %125 = tpu.matmul %122, %124, %cst_136 {dimension_numbers = #tpu.dot_dimension_numbers<[1], [0], [0], [1], [0, 0, 1, 1], [], []>} : vector<192x128xbf16>, vector<128x128xbf16>, vector<192x128xf32> -> vector<192x128xf32>
    %126 = arith.addf %121, %125 : vector<192x128xf32>
    %c72_137 = arith.constant 72 : index
    %c0_138 = arith.constant 0 : index
    %127 = vector.load %arg10[%c72_137, %c0_138] : memref<288x128xbf16, #tpu.memory_space<vmem>>, vector<192x128xbf16>
    %c2_139 = arith.constant 2 : index
    %c1_140 = arith.constant 1 : index
    %c0_141 = arith.constant 0 : index
    %c0_142 = arith.constant 0 : index
    %128 = vector.load %arg6[%c2_139, %c1_140, %c0_141, %c0_142] : memref<3x3x128x128xbf16, #tpu.memory_space<vmem>>, vector<1x1x128x128xbf16>
    %129 = vector.shape_cast %128 : vector<1x1x128x128xbf16> to vector<128x128xbf16>
    %cst_143 = arith.constant dense<0.000000e+00> : vector<192x128xf32>
    %130 = tpu.matmul %127, %129, %cst_143 {dimension_numbers = #tpu.dot_dimension_numbers<[1], [0], [0], [1], [0, 0, 1, 1], [], []>} : vector<192x128xbf16>, vector<128x128xbf16>, vector<192x128xf32> -> vector<192x128xf32>
    %131 = arith.addf %126, %130 : vector<192x128xf32>
    %c73_144 = arith.constant 73 : index
    %c0_145 = arith.constant 0 : index
    %132 = vector.load %arg10[%c73_144, %c0_145] : memref<288x128xbf16, #tpu.memory_space<vmem>>, vector<192x128xbf16>
    %c2_146 = arith.constant 2 : index
    %c2_147 = arith.constant 2 : index
    %c0_148 = arith.constant 0 : index
    %c0_149 = arith.constant 0 : index
    %133 = vector.load %arg6[%c2_146, %c2_147, %c0_148, %c0_149] : memref<3x3x128x128xbf16, #tpu.memory_space<vmem>>, vector<1x1x128x128xbf16>
    %134 = vector.shape_cast %133 : vector<1x1x128x128xbf16> to vector<128x128xbf16>
    %cst_150 = arith.constant dense<0.000000e+00> : vector<192x128xf32>
    %135 = tpu.matmul %132, %134, %cst_150 {dimension_numbers = #tpu.dot_dimension_numbers<[1], [0], [0], [1], [0, 0, 1, 1], [], []>} : vector<192x128xbf16>, vector<128x128xbf16>, vector<192x128xf32> -> vector<192x128xf32>
    %136 = arith.addf %131, %135 : vector<192x128xf32>
    %137 = vector.broadcast %89 : vector<1x128xf32> to vector<192x128xf32>
    %138 = arith.mulf %136, %137 : vector<192x128xf32>
    %139 = vector.broadcast %90 : vector<1x128xf32> to vector<192x128xf32>
    %140 = arith.addf %138, %139 : vector<192x128xf32>
    %cst_151 = arith.constant 0.000000e+00 : f32
    %141 = vector.broadcast %cst_151 : f32 to vector<192x128xf32>
    %142 = arith.maximumf %140, %141 : vector<192x128xf32>
    %143 = arith.truncf %142 : vector<192x128xf32> to vector<192x128xbf16>
    %c0_152 = arith.constant 0 : index
    %c0_153 = arith.constant 0 : index
    %c0_154 = arith.constant 0 : index
    %c0_155 = arith.constant 0 : index
    %144 = vector.load %arg9[%c0_152, %c0_153, %c0_154, %c0_155] : memref<1x1x192x128xbf16, #tpu.memory_space<vmem>>, vector<1x1x192x128xbf16>
    %145 = vector.shape_cast %144 : vector<1x1x192x128xbf16> to vector<192x128xbf16>
    %146 = vector.shape_cast %143 : vector<192x128xbf16> to vector<1x1x192x128xbf16>
    tpu.vector_store %arg9[%c0_152, %c0_153, %c0_154, %c0_155], %146 {strides = array<i32>} : memref<1x1x192x128xbf16, #tpu.memory_space<vmem>>, vector<1x1x192x128xbf16>,
    return
  }
  func.func @transform_0(%arg0: i32, %arg1: i32) -> (i32, i32, i32, i32) {
    %c0_i32 = arith.constant 0 : i32
    %c0_i32_0 = arith.constant 0 : i32
    %c0_i32_1 = arith.constant 0 : i32
    return %arg0, %arg1, %c0_i32, %c0_i32_0 : i32, i32, i32, i32
  }
  func.func @transform_1(%arg0: i32, %arg1: i32) -> (i32, i32, i32, i32) {
    %c0_i32 = arith.constant 0 : i32
    %c0_i32_0 = arith.constant 0 : i32
    %c0_i32_1 = arith.constant 0 : i32
    %c0_i32_2 = arith.constant 0 : i32
    %c0_i32_3 = arith.constant 0 : i32
    return %c0_i32, %c0_i32_0, %c0_i32_1, %c0_i32_2 : i32, i32, i32, i32
  }
  func.func @transform_2(%arg0: i32, %arg1: i32) -> (i32, i32) {
    %c0_i32 = arith.constant 0 : i32
    %c0_i32_0 = arith.constant 0 : i32
    %c0_i32_1 = arith.constant 0 : i32
    return %c0_i32, %c0_i32_0 : i32, i32
  }
  func.func @transform_3(%arg0: i32, %arg1: i32) -> (i32, i32) {
    %c0_i32 = arith.constant 0 : i32
    %c0_i32_0 = arith.constant 0 : i32
    %c0_i32_1 = arith.constant 0 : i32
    return %c0_i32, %c0_i32_0 : i32, i32
  }
  func.func @transform_4(%arg0: i32, %arg1: i32) -> (i32, i32, i32, i32) {
    %c0_i32 = arith.constant 0 : i32
    %c0_i32_0 = arith.constant 0 : i32
    %c0_i32_1 = arith.constant 0 : i32
    %c0_i32_2 = arith.constant 0 : i32
    %c0_i32_3 = arith.constant 0 : i32
    return %c0_i32, %c0_i32_0, %c0_i32_1, %c0_i32_2 : i32, i32, i32, i32
  }
  func.func @transform_5(%arg0: i32, %arg1: i32) -> (i32, i32) {
    %c0_i32 = arith.constant 0 : i32
    %c0_i32_0 = arith.constant 0 : i32
    %c0_i32_1 = arith.constant 0 : i32
    return %c0_i32, %c0_i32_0 : i32, i32
  }
  func.func @transform_6(%arg0: i32, %arg1: i32) -> (i32, i32) {
    %c0_i32 = arith.constant 0 : i32
    %c0_i32_0 = arith.constant 0 : i32
    %c0_i32_1 = arith.constant 0 : i32
    return %c0_i32, %c0_i32_0 : i32, i32
  }
  func.func @transform_7(%arg0: i32, %arg1: i32) -> (i32, i32, i32, i32) {
    %c0_i32 = arith.constant 0 : i32
    %c0_i32_0 = arith.constant 0 : i32
    %c0_i32_1 = arith.constant 0 : i32
    return %arg0, %arg1, %c0_i32, %c0_i32_0 : i32, i32, i32, i32
  }
}

</mosaic_0001>

<bundles_post_ra>
// kernel: up_forward.1
= control target key start
LH: loop header
LB: loop body
LE: loop exit
PB: predicated region body
PF: predicated region fallthrough
CT: control target
= control target key end

     0   :  { %s11043_s24 = smov 0   ;;  %s11045_s25 = smov 0   ;;  %s14108_s0 = inlined_call_operand.vmem [shape: bf16[2,2,336,128], index: 0, kind: input, shape index: {}]   ;;  %s14109_s1 = inlined_call_operand.vmem [shape: bf16[3,3,128,128], index: 1, kind: input, shape index: {}]   ;;  %s14110_s2 = inlined_call_operand.vmem [shape: f32[1,128], index: 2, kind: input, shape index: {}]   ;;  %s14111_s3 = inlined_call_operand.vmem [shape: f32[1,128], index: 3, kind: input, shape index: {}]   ;;  %s14112_s4 = inlined_call_operand.vmem [shape: bf16[3,3,128,128], index: 4, kind: input, shape index: {}]   ;;  %s14113_s5 = inlined_call_operand.vmem [shape: f32[1,128], index: 5, kind: input, shape index: {}]   ;;  %s14114_s6 = inlined_call_operand.vmem [shape: f32[1,128], index: 6, kind: input, shape index: {}]   ;;  %s14115_s7 = inlined_call_operand.vmem [shape: bf16[2,2,192,128], index: 7, kind: output, shape index: {}]  }
   0x1   :  { %s11047_s26 = smov 0   ;;  %s11049_s27 = smov 0  }
   0x2   :  { %s11051_s28 = smov 0  }
   0x3 LB: > { %s26_s29 = sadd.s32 1, %s10989_s26  ;;  %s29_s30 = sadd.s32 1, %s10993_s27  ;;  %s10997_s28 = sphi %s11051_s28, %s17_s28   ;;  %s10993_s27 = sphi %s11049_s27, %s14309_s27   ;;  %s10989_s26 = sphi %s11047_s26, %s14308_s26   ;;  %s10985_s25 = sphi %s11045_s25, %s14307_s25   ;;  %s10981_s24 = sphi %s11043_s24, %s14306_s24  }
   0x4   : > { %p27_p0 = scmp.ge.s32.totalorder %s26_s29, 2  ;;  %p8111_p1 = scmp.ge.s32.totalorder %s10997_s28, 1 }
   0x5   : > { %p257_p2 = scmp.lt.s32.totalorder %s10997_s28, 5 }
   0x6   : > { %s14311_s29 = smov (%p27_p0, %s26_s29), 0  ;;  %s14313_s30 = smov (!%p27_p0, %s29_s30), %s10993_s27 }
   0x7   : > { %p258_p3 = pnand %p8111_p1, %p257_p2  ;;  %p31_p4 = scmp.ge.s32.totalorder %s14313_s30, 2 }
   0x9   : > { %s14315_s30 = smov (%p31_p4, %s14313_s30), 0  ;;  %261 = sbr.rel (%p258_p3) target bundleno = 1279 (0x4ff), region = 48 }
   0xe   : > { %v10526_v0 = vld [vmem:[%s14109_s1 + $0x78] sm:$0xff]   ;;  %v14116_v1 = vmov 0.0   ;;  %v10528_v3 = vld [vmem:[%s14109_s1 + $0x70] sm:$0xff]   ;;  %vm11000_vm0 = vmmov 0   ;;  %p297_p5 = scmp.lt.s32.totalorder %s10985_s25, 1  ;;  %p299_p6 = scmp.lt.s32.totalorder %s10981_s24, 1 }
   0xf   : > { %9418 = vmatprep.subr.bf16.mxu0 %v14116_v1  ;;  %9494 = vmatprep.subr.bf16.mxu1 %v14116_v1  ;;  %v10527_v2 = vld [vmem:[%s14109_s1 + $0x38] sm:$0xff]   ;;  %v10529_v4 = vld [vmem:[%s14109_s1 + $0x30] sm:$0xff]   ;;  %v10530_v5 = vld [vmem:[%s14109_s1 + $0x68] sm:$0xff]   ;;  %vm691_vm1 = vsmask.f32 4352 }
  0x10   : > { %9419 = vmatpush3.bf16.msra.mxu0 %v10526_v0  ;;  %9434 = vmatprep.mubr.msk.bf16.mxu0 %vm11000_vm0, %v14116_v1  ;;  %s14317_s25 = smov (!%p297_p5, %s10985_s25), 1  ;;  %v10531_v6 = vld [vmem:[%s14109_s1 + $0x28] sm:$0xff]   ;;  %v10532_v7 = vld [vmem:[%s14109_s1 + $0x60] sm:$0xff]   ;;  %v10534_v9 = vld [vmem:[%s14109_s1 + $0x58] sm:$0xff]   ;;  %vm1177_vm2 = vsmask.f32 7424 }
  0x11   : > { %9495 = vmatpush3.bf16.msra.mxu1 %v10527_v2  ;;  %9420 = vmatprep.subr.bf16.mxu0 %v14116_v1  ;;  %s11103_s16 = scalar_select %p299_p6, %s10981_s24, 1  ;;  %v10533_v8 = vld [vmem:[%s14109_s1 + $0x20] sm:$0xff]   ;;  %v10535_v10 = vld [vmem:[%s14109_s1 + $0x18] sm:$0xff]   ;;  %v10536_v16 = vld [vmem:[%s14109_s1 + $0x50] sm:$0xff]  }
  0x12   : > { %9496 = vmatprep.subr.bf16.mxu1 %v14116_v1  ;;  %9510 = vmatprep.mubr.msk.bf16.mxu1 %vm11000_vm0, %v14116_v1  ;;  %s10479_s19 = smul.u32 84, %s14317_s25  ;;  %v10537_v17 = vld [vmem:[%s14109_s1 + $0x10] sm:$0xff]   ;;  %v10538_v25 = vld [vmem:[%s14109_s1 + $0x48] sm:$0xff]   ;;  %v10540_v32 = vld [vmem:[%s14109_s1 + $0x40] sm:$0xff]  }
  0x13   : > { %s10478_s22 = smul.u32 42, %s11103_s16  ;;  %v10539_v26 = vld [vmem:[%s14109_s1 + $0x8] sm:$0xff]   ;;  %v10541_v33 = vld [vmem:[%s14109_s1] sm:$0xff]   ;;  %v10545_v41 = vld [vmem:[%s14109_s1 + $0xb8] sm:$0xff]  }
  0x14   : > { %9421 = vmatpush3.bf16.msra.mxu0 %v10528_v3  ;;  %v10550_v46 = vld [vmem:[%s14109_s1 + $0xb0] sm:$0xff]   ;;  %v10574_v48 = vld [vmem:[%s14109_s1 + $0xf8] sm:$0xff]   ;;  %v10553_v56 = vld [vmem:[%s14109_s1 + $0xa8] sm:$0xff]   ;;  %s10480_s18 = smul.u32 24, %s11103_s16 }
  0x15   : > { %9497 = vmatpush3.bf16.msra.mxu1 %v10529_v4  ;;  %9422 = vmatprep.subr.bf16.mxu0 %v14116_v1  ;;  %s303_s23 = sadd.s32 %s10479_s19, %s10478_s22  ;;  %v10575_v53 = vld [vmem:[%s14109_s1 + $0xf0] sm:$0xff]   ;;  %v10578_v60 = vld [vmem:[%s14109_s1 + $0xe8] sm:$0xff]   ;;  %v10558_v3 = vld [vmem:[%s14109_s1 + $0xa0] sm:$0xff]   ;;  %s10481_s19 = smul.u32 48, %s14317_s25 }
  0x16   : > { %9498 = vmatprep.subr.bf16.mxu1 %v14116_v1  ;;  %s8112_s10 = sshll.u32 %s303_s23, 2  ;;  %v10579_v4 = vld [vmem:[%s14109_s1 + $0xe0] sm:$0xff]  }
  0x17   : > { %s11126_s15 = scalar_lea.vmem %s14108_s0, %s8112_s10  ;;  %s8457_s10 = sshll.u32 %s10981_s24, 3 }
  0x18   : > { %9423 = vmatpush3.bf16.msra.mxu0 %v10530_v5  ;;  %v318_v11 = vld [vmem:[%s11126_s15 + $0x8] sm:$0x8]  ;;  %v319_v12 = vld [vmem:[%s11126_s15 + $0xc] sm:$0xf]  ;;  %v320_v13 = vld [vmem:[%s11126_s15 + $0x10] sm:$0xf]  ;;  %s312_s25 = sadd.s32 %s10481_s19, %s10480_s18 }
  0x19   : > { %9499 = vmatpush3.bf16.msra.mxu1 %v10531_v6  ;;  %9424 = vmatprep.subr.bf16.mxu0 %v14116_v1  ;;  %v11140_v14 = vld [vmem:[%s11126_s15 + $0x14] sm:$0xf]  ;;  %v8153_v15 = vcombine.low %v318_v11, %v319_v12  ;;  %v11151_v21 = vld [vmem:[%s11126_s15 + $0x18] sm:$0xf]  ;;  %v11154_v22 = vld [vmem:[%s11126_s15 + $0x1c] sm:$0xf]  ;;  %v8130_v40 = vcombine.low %v319_v12, %v320_v13 }
  0x1a   : > { %9500 = vmatprep.subr.bf16.mxu1 %v14116_v1  ;;  %v8154_v18 = vcombine.low %v320_v13, %v11140_v14  ;;  %v8155_v27 = vcombine.low %v11151_v21, %v11154_v22  ;;  %v11176_v38 = vld [vmem:[%s11126_s15 + $0x20] sm:$0xf]  ;;  %v11179_v39 = vld [vmem:[%s11126_s15 + $0x24] sm:$0xf]  ;;  %v11193_v47 = vld [vmem:[%s11126_s15 + $0x28] sm:$0xf]  ;;  %v8131_v54 = vcombine.low %v11140_v14, %v11151_v21 }
  0x1b   : > { %v693_v19 = vshrl.u32 %v8153_v15, 16  ;;  %v696_v20 = vshll.u32 %v8153_v15, 16  ;;  %v8156_v45 = vcombine.low %v11176_v38, %v11179_v39  ;;  %v11199_v49 = vld [vmem:[%s11126_s15 + $0x2c] sm:$0xf]  ;;  %v11226_v62 = vld [vmem:[%s11126_s15 + $0x30] sm:$0xf]  ;;  %v8132_v5 = vcombine.low %v11154_v22, %v11176_v38 }
  0x1c   : > { %9425 = vmatpush3.bf16.msra.mxu0 %v10532_v7  ;;  %v701_v23 = vshrl.u32 %v8154_v18, 16  ;;  %v704_v24 = vshll.u32 %v8154_v18, 16  ;;  %v710_v36 = vshrl.u32 %v8155_v27, 16  ;;  %v713_v37 = vshll.u32 %v8155_v27, 16  ;;  %v11231_v2 = vld [vmem:[%s11126_s15 + $0x34] sm:$0xf] }
  0x1d   : > { %9501 = vmatpush3.bf16.msra.mxu1 %v10533_v8  ;;  %9426 = vmatprep.subr.bf16.mxu0 %v14116_v1  ;;  %v695_v28 = vrot.slane %v693_v19, 3  ;;  %v698_v29 = vrot.slane %v696_v20, 4  ;;  %v719_v51 = vshrl.u32 %v8156_v45, 16  ;;  %v722_v52 = vshll.u32 %v8156_v45, 16  ;;  %v10583_v11 = vld [vmem:[%s14109_s1 + $0xd8] sm:$0xff]   ;;  %v10568_v15 = vld [vmem:[%s14109_s1 + $0x90] sm:$0xff]  }
  0x1e   : > { %9502 = vmatprep.subr.bf16.mxu1 %v14116_v1  ;;  %v703_v30 = vrot.slane %v701_v23, 3  ;;  %v706_v31 = vrot.slane %v704_v24, 4  ;;  %v712_v43 = vrot.slane %v710_v36, 3  ;;  %v715_v44 = vrot.slane %v713_v37, 4  ;;  %v330_v14 = vld [vmem:[%s11126_s15 + $0x38] sm:$0xf] }
  0x1f   : > { %v699_v34 = vor.u32 %v698_v29, %v695_v28  ;;  %v8157_v55 = vcombine.low %v11193_v47, %v11199_v49  ;;  %v721_v58 = vrot.slane %v719_v51, 3  ;;  %v724_v59 = vrot.slane %v722_v52, 4  ;;  %v10584_v18 = vld [vmem:[%s14109_s1 + $0xd0] sm:$0xff]   ;;  %v10573_v24 = vld [vmem:[%s14109_s1 + $0x88] sm:$0xff]   ;;  %v332_v29 = vld [vmem:[%s11126_s15 + $0x40] sm:$0xf] }
  0x20   : > { %9427 = vmatpush3.bf16.msra.mxu0 %v10534_v9  ;;  %v707_v35 = vor.u32 %v706_v31, %v703_v30  ;;  %v716_v50 = vor.u32 %v715_v44, %v712_v43  ;;  %v8158_v7 = vcombine.low %v11226_v62, %v11231_v2  ;;  %v8133_v19 = vcombine.low %v11179_v39, %v11193_v47  ;;  %v10587_v27 = vld [vmem:[%s14109_s1 + $0xc8] sm:$0xff]   ;;  %v336_v51 = vld [vmem:[%s11126_s15 + $0x50] sm:$0xf]  ;;  %s8458_s11 = sadd.s32 4294967295, %s8457_s10  ;;  %s8113_s16 = sshll.u32 %s312_s25, 2 }
  0x21   : > { %9503 = vmatpush3.bf16.msra.mxu1 %v10535_v10  ;;  %9428 = vmatprep.subr.bf16.mxu0 %v14116_v1  ;;  %v728_v61 = vshrl.u32 %v8157_v55, 16  ;;  %v725_v63 = vor.u32 %v724_v59, %v721_v58  ;;  %v731_v0 = vshll.u32 %v8157_v55, 16  ;;  %v10563_v10 = vld [vmem:[%s14109_s1 + $0x98] sm:$0xff]   ;;  %v8134_v36 = vcombine.low %v11199_v49, %v11226_v62  ;;  %v334_v44 = vld [vmem:[%s11126_s15 + $0x48] sm:$0xf]  ;;  %s13949_s8 = scalar_lea.vmem %s14115_s7, %s8113_s16 }
  0x22   : > { %9504 = vmatprep.subr.bf16.mxu1 %v14116_v1  ;;  %v708_v42 = vsel %vm691_vm1, %v699_v34, %v707_v35  ;;  %v717_v57 = vsel %vm691_vm1, %v707_v35, %v716_v50  ;;  %v737_v12 = vshrl.u32 %v8158_v7, 16  ;;  %v740_v13 = vshll.u32 %v8158_v7, 16  ;;  %v333_v34 = vld [vmem:[%s11126_s15 + $0x44] sm:$0xf]  ;;  %v335_v45 = vld [vmem:[%s11126_s15 + $0x4c] sm:$0xf] }
  0x23   : > { %v730_v6 = vrot.slane %v728_v61, 3  ;;  %v726_v8 = vsel %vm691_vm1, %v716_v50, %v725_v63  ;;  %v733_v9 = vrot.slane %v731_v0, 4  ;;  %v10588_v35 = vld [vmem:[%s14109_s1 + $0xc0] sm:$0xff]   ;;  %v8161_v50 = vcombine.low %v334_v44, %v335_v45  ;;  %v337_v55 = vld [vmem:[%s11126_s15 + $0x54] sm:$0xf] }
  0x24   : > { %9429 = vmatpush3.bf16.msra.mxu0 %v10536_v16  ;;  %v739_v20 = vrot.slane %v737_v12, 3  ;;  %v742_v22 = vrot.slane %v740_v13, 4  ;;  %v338_v0 = vld [vmem:[%s11126_s15 + $0x58] sm:$0xf]  ;;  %v8138_v13 = vcombine.low %v335_v45, %v336_v51 }
  0x25   : > { %9505 = vmatpush3.bf16.msra.mxu1 %v10537_v17  ;;  %9430 = vmatprep.subr.bf16.mxu0 %v14116_v1  ;;  %v734_v16 = vor.u32 %v733_v9, %v730_v6  ;;  %v11263_v17 = vld [vmem:[%s11126_s15 + $0x3c] sm:$0xf]  ;;  %v11336_v9 = vld [vmem:[%s11126_s15 + $0x64] sm:$0xf] }
  0x26   : > { %9506 = vmatprep.subr.bf16.mxu1 %v14116_v1  ;;  %v8159_v23 = vcombine.low %v330_v14, %v11263_v17  ;;  %v743_v30 = vor.u32 %v742_v22, %v739_v20  ;;  %v11349_v22 = vld [vmem:[%s11126_s15 + $0x70] sm:$0xf] }
  0x27   : > { %v735_v21 = vsel %vm691_vm1, %v725_v63, %v734_v16 }
  0x28   : > { %9431 = vmatpush3.bf16.msra.mxu0 %v10538_v25  ;;  %v11278_v25 = vld [vmem:[%s11126_s15 + $0x18] sm:$0xf]  ;;  %v746_v31 = vshrl.u32 %v8159_v23, 16  ;;  %v744_v37 = vsel %vm691_vm1, %v734_v16, %v743_v30 }
  0x29   : > { %9507 = vmatpush3.bf16.msra.mxu1 %v10539_v26  ;;  %9432 = vmatprep.subr.bf16.mxu0 %v14116_v1  ;;  %v11281_v26 = vld [vmem:[%s11126_s15 + $0x1c] sm:$0xf] }
  0x2a   : > { %9508 = vmatprep.subr.bf16.mxu1 %v14116_v1  ;;  %v8273_v28 = vcombine.low %v11278_v25, %v11281_v26  ;;  %v748_v38 = vrot.slane %v746_v31, 3 }
  0x2c   : > { %9433 = vmatpush3.bf16.msra.mxu0 %v10540_v32  ;;  %v749_v32 = vshll.u32 %v8159_v23, 16 }
  0x2d   : > { %9509 = vmatpush3.bf16.msra.mxu1 %v10541_v33  ;;  %9570 = vmatprep.subr.bf16.mxu0 %v14116_v1  ;;  %v10582_v33 = vld [vmem:[%s14109_s1 + $0x80] sm:$0xff]  }
  0x2e   : > { %9646 = vmatprep.subr.bf16.mxu1 %v14116_v1  ;;  %v751_v39 = vrot.slane %v749_v32, 4 }
  0x2f   : > { %9435 = vmatmul.mubr.bf16.vlgmr.msra.gmra.mxu0 %v8130_v40  ;;  %v8160_v40 = vcombine.low %v332_v29, %v333_v34 }
  0x30   : > { %9511 = vmatmul.mubr.bf16.vlgmr.msra.gmra.mxu1 %v708_v42  ;;  %9571 = vmatpush3.bf16.msra.mxu0 %v10545_v41  ;;  %v752_v41 = vor.u32 %v751_v39, %v748_v38  ;;  %v11365_v38 = vld [vmem:[%s11126_s15 + $0x78] sm:$0xf] }
  0x31   : > { %9438 = vmatprep.mubr.msk.bf16.mxu0 %vm11000_vm0, %v14116_v1  ;;  %9514 = vmatprep.mubr.msk.bf16.mxu1 %vm11000_vm0, %v14116_v1  ;;  %v755_v42 = vshrl.u32 %v8160_v40, 16  ;;  %v758_v43 = vshll.u32 %v8160_v40, 16  ;;  %v11368_v40 = vld [vmem:[%s11126_s15 + $0x7c] sm:$0xf] }
  0x32   : > { %9572 = vmatprep.subr.bf16.mxu0 %v14116_v1  ;;  %9647 = vmatpush3.bf16.msra.mxu1 %v10574_v48  ;;  %v753_v47 = vsel %vm691_vm1, %v743_v30, %v752_v41 }
  0x33   : > { %9648 = vmatprep.subr.bf16.mxu1 %v14116_v1  ;;  %v757_v48 = vrot.slane %v755_v42, 3  ;;  %v760_v49 = vrot.slane %v758_v43, 4 }
  0x34   : > { %9573 = vmatpush3.bf16.msra.mxu0 %v10550_v46  ;;  %v8135_v46 = vcombine.low %v11231_v2, %v330_v14  ;;  %v339_v2 = vld [vmem:[%s11126_s15 + $0x5c] sm:$0xf] }
  0x35   : > { %9574 = vmatprep.subr.bf16.mxu0 %v14116_v1  ;;  %v761_v52 = vor.u32 %v760_v49, %v757_v48  ;;  %v8163_v7 = vcombine.low %v338_v0, %v339_v2 }
  0x36   : > { %9649 = vmatpush3.bf16.msra.mxu1 %v10575_v53  ;;  %v764_v53 = vshrl.u32 %v8161_v50, 16 }
  0x37   : > { %9439 = vmatmul.mubr.bf16.gmra.mxu0 %v8131_v54  ;;  %9650 = vmatprep.subr.bf16.mxu1 %v14116_v1  ;;  %v767_v54 = vshll.u32 %v8161_v50, 16  ;;  %v762_v58 = vsel %vm691_vm1, %v752_v41, %v761_v52  ;;  %v785_v12 = vshll.u32 %v8163_v7, 16  ;;  %v11371_v41 = vld [vmem:[%s11126_s15 + $0x80] sm:$0xf] }
  0x38   : > { %9515 = vmatmul.mubr.bf16.gmra.mxu1 %v717_v57  ;;  %9442 = vmatprep.mubr.msk.bf16.mxu0 %vm11000_vm0, %v14116_v1  ;;  %v8162_v57 = vcombine.low %v336_v51, %v337_v55  ;;  %v766_v59 = vrot.slane %v764_v53, 3 }
  0x39   : > { %9518 = vmatprep.mubr.msk.bf16.mxu1 %vm11000_vm0, %v14116_v1  ;;  %9575 = vmatpush3.bf16.msra.mxu0 %v10553_v56  ;;  %v8136_v56 = vcombine.low %v11263_v17, %v332_v29  ;;  %v787_v17 = vrot.slane %v785_v12, 4 }
  0x3a   : > { %9576 = vmatprep.subr.bf16.mxu0 %v14116_v1  ;;  %9651 = vmatpush3.bf16.msra.mxu1 %v10578_v60  ;;  %v769_v60 = vrot.slane %v767_v54, 4  ;;  %v773_v61 = vshrl.u32 %v8162_v57, 16  ;;  %v776_v62 = vshll.u32 %v8162_v57, 16 }
  0x3b   : > { %9652 = vmatprep.subr.bf16.mxu1 %v14116_v1 }
  0x3c   : > { %v770_v63 = vor.u32 %v769_v60, %v766_v59  ;;  %v11389_v59 = vld [vmem:[%s11126_s15 + $0x14] sm:$0xff]   ;;  %v1551_v60 = vld [vmem:[%s11126_s15 + $0x20] sm:$0xf] }
  0x3d   : > { %9577 = vmatpush3.bf16.msra.mxu0 %v10558_v3  ;;  %v8137_v3 = vcombine.low %v333_v34, %v334_v44 }
  0x3e   : > { %9578 = vmatprep.subr.bf16.mxu0 %v14116_v1  ;;  %9653 = vmatpush3.bf16.msra.mxu1 %v10579_v4  ;;  %v775_v4 = vrot.slane %v773_v61, 3  ;;  %v771_v6 = vsel %vm691_vm1, %v761_v52, %v770_v63  ;;  %v11393_v61 = vld [vmem:[%s11126_s15 + $0x1c] sm:$0xff]  }
  0x3f   : > { %9443 = vmatmul.mubr.bf16.gmra.mxu0 %v8132_v5  ;;  %9654 = vmatprep.subr.bf16.mxu1 %v14116_v1  ;;  %v778_v5 = vrot.slane %v776_v62, 4 }
  0x40   : > { %9519 = vmatmul.mubr.bf16.gmra.mxu1 %v726_v8  ;;  %9446 = vmatprep.mubr.msk.bf16.mxu0 %vm11000_vm0, %v14116_v1  ;;  %v340_v8 = vld [vmem:[%s11126_s15 + $0x60] sm:$0xf] }
  0x41   : > { %9522 = vmatprep.mubr.msk.bf16.mxu1 %vm11000_vm0, %v14116_v1  ;;  %9579 = vmatpush3.bf16.msra.mxu0 %v10563_v10  ;;  %v779_v10 = vor.u32 %v778_v5, %v775_v4  ;;  %v8164_v14 = vcombine.low %v340_v8, %v11336_v9  ;;  %v8140_v39 = vcombine.low %v339_v2, %v340_v8  ;;  %v1186_v8 = vshll.u32 %v11389_v59, 16 }
  0x42   : > { %9580 = vmatprep.subr.bf16.mxu0 %v14116_v1  ;;  %9655 = vmatpush3.bf16.msra.mxu1 %v10583_v11  ;;  %v782_v11 = vshrl.u32 %v8163_v7, 16  ;;  %v8234_v5 = vcombine.low %v11281_v26, %v1551_v60  ;;  %v11450_v60 = vld [vmem:[%s11126_s15 + $0x34] sm:$0xff]  }
  0x43   : > { %9656 = vmatprep.subr.bf16.mxu1 %v14116_v1  ;;  %v791_v20 = vshrl.u32 %v8164_v14, 16 }
  0x44   : > { %v784_v16 = vrot.slane %v782_v11, 3  ;;  %v1552_v11 = vld [vmem:[%s11126_s15 + $0x24] sm:$0xf] }
  0x45   : > { %9581 = vmatpush3.bf16.msra.mxu0 %v10568_v15  ;;  %v780_v15 = vsel %vm691_vm1, %v770_v63, %v779_v10  ;;  %v793_v32 = vrot.slane %v791_v20, 3  ;;  %v1188_v20 = vrot.slane %v1186_v8, 1  ;;  %v1218_v8 = vshll.u32 %v11450_v60, 16 }
  0x46   : > { %9582 = vmatprep.subr.bf16.mxu0 %v14116_v1  ;;  %9657 = vmatpush3.bf16.msra.mxu1 %v10584_v18  ;;  %v342_v18 = vld [vmem:[%s11126_s15 + $0x68] sm:$0xf]  ;;  %v788_v23 = vor.u32 %v787_v17, %v784_v16 }
  0x47   : > { %9447 = vmatmul.mubr.bf16.gmra.mxu0 %v8133_v19  ;;  %9658 = vmatprep.subr.bf16.mxu1 %v14116_v1  ;;  %v11344_v19 = vld [vmem:[%s11126_s15 + $0x6c] sm:$0xf]  ;;  %v8141_v52 = vcombine.low %v11336_v9, %v342_v18  ;;  %v11410_v16 = vld [vmem:[%s11126_s15 + $0x24] sm:$0xff]  }
  0x48   : > { %9523 = vmatmul.mubr.bf16.gmra.mxu1 %v735_v21  ;;  %9450 = vmatprep.mubr.msk.bf16.mxu0 %vm11000_vm0, %v14116_v1  ;;  %v794_v21 = vshll.u32 %v8164_v14, 16  ;;  %v8165_v29 = vcombine.low %v342_v18, %v11344_v19  ;;  %v789_v31 = vsel %vm691_vm1, %v779_v10, %v788_v23  ;;  %v1194_v10 = vshll.u32 %v11393_v61, 16 }
  0x49   : > { %9526 = vmatprep.mubr.msk.bf16.mxu1 %vm11000_vm0, %v14116_v1  ;;  %9583 = vmatpush3.bf16.msra.mxu0 %v10573_v24  ;;  %v11354_v24 = vld [vmem:[%s11126_s15 + $0x74] sm:$0xf]  ;;  %v1683_v14 = vshrl.u32 %v8234_v5, 16 }
  0x4a   : > { %9584 = vmatprep.subr.bf16.mxu0 %v14116_v1  ;;  %9659 = vmatpush3.bf16.msra.mxu1 %v10587_v27  ;;  %v8139_v27 = vcombine.low %v337_v55, %v338_v0  ;;  %v8166_v30 = vcombine.low %v11349_v22, %v11354_v24  ;;  %v800_v34 = vshrl.u32 %v8165_v29, 16  ;;  %v1548_v55 = vld [vmem:[%s11126_s15 + $0x14] sm:$0x8] }
  0x4b   : > { %9660 = vmatprep.subr.bf16.mxu1 %v14116_v1  ;;  %v8233_v62 = vcombine.low %v1548_v55, %v11278_v25 }
  0x4c   : > { %v802_v43 = vrot.slane %v800_v34, 3  ;;  %v812_v45 = vshll.u32 %v8166_v30, 16  ;;  %v1202_v34 = vshll.u32 %v11410_v16, 16 }
  0x4d   : > { %9585 = vmatpush3.bf16.msra.mxu0 %v10582_v33  ;;  %v796_v33 = vrot.slane %v794_v21, 4  ;;  %v1675_v9 = vshrl.u32 %v8233_v62, 16  ;;  %v1686_v21 = vshll.u32 %v8234_v5, 16  ;;  %v10623_v5 = vld [vmem:[%s14109_s1 + $0x178] sm:$0xff]  }
  0x4e   : > { %9661 = vmatpush3.bf16.msra.mxu1 %v10588_v35  ;;  %9722 = vmatprep.subr.bf16.mxu0 %v14116_v1  ;;  %v803_v35 = vshll.u32 %v8165_v29, 16  ;;  %v814_v50 = vrot.slane %v812_v45, 4  ;;  %v11420_v29 = vrot.slane %v1194_v10, 1  ;;  %v1558_v10 = vld [vmem:[%s11126_s15 + $0x3c] sm:$0xf] }
  0x4f   : > { %9451 = vmatmul.mubr.bf16.gmra.mxu0 %v8134_v36  ;;  %9798 = vmatprep.subr.bf16.mxu1 %v14116_v1  ;;  %v809_v36 = vshrl.u32 %v8166_v30, 16  ;;  %v1198_v30 = vshrl.u32 %v11393_v61, 16 }
  0x50   : > { %9527 = vmatmul.mubr.bf16.gmra.mxu1 %v744_v37  ;;  %9454 = vmatprep.mubr.msk.bf16.mxu0 %vm11000_vm0, %v14116_v1  ;;  %v797_v37 = vor.u32 %v796_v33, %v793_v32  ;;  %v805_v44 = vrot.slane %v803_v35, 4  ;;  %v1685_v33 = vrot.slane %v1683_v14, 3  ;;  %v1554_v35 = vld [vmem:[%s11126_s15 + $0x2c] sm:$0xf]  ;;  %v11475_v14 = vld [vmem:[%s11126_s15 + $0x3c] sm:$0xff]  }
  0x51   : > { %9530 = vmatprep.mubr.msk.bf16.mxu1 %vm11000_vm0, %v14116_v1  ;;  %v811_v49 = vrot.slane %v809_v36, 3 }
  0x52   : > { %v798_v42 = vsel %vm691_vm1, %v788_v23, %v797_v37  ;;  %v806_v48 = vor.u32 %v805_v44, %v802_v43  ;;  %v11428_v43 = vld [vmem:[%s11126_s15 + $0x2c] sm:$0xff]   ;;  %v11434_v44 = vrot.slane %v1202_v34, 1 }
  0x53   : > { %v815_v63 = vor.u32 %v814_v50, %v811_v49  ;;  %v1210_v49 = vshll.u32 %v11428_v43, 16  ;;  %v1556_v50 = vld [vmem:[%s11126_s15 + $0x34] sm:$0xf] }
  0x55   : > { %v816_v12 = vsel %vm691_vm1, %v806_v48, %v815_v63 }
  0x57   : > { %9455 = vmatmul.mubr.bf16.gmra.mxu0 %v8135_v46  ;;  %v8167_v46 = vcombine.low %v11365_v38, %v11368_v40 }
  0x58   : > { %9531 = vmatmul.mubr.bf16.gmra.mxu1 %v753_v47  ;;  %9458 = vmatprep.mubr.msk.bf16.mxu0 %vm11000_vm0, %v14116_v1  ;;  %v8168_v47 = vcombine.low %v11371_v41, %v11371_v41 }
  0x59   : > { %9534 = vmatprep.mubr.msk.bf16.mxu1 %vm11000_vm0, %v14116_v1  ;;  %v818_v51 = vshrl.u32 %v8167_v46, 16  ;;  %v821_v53 = vshll.u32 %v8167_v46, 16  ;;  %v1206_v46 = vshrl.u32 %v11410_v16, 16 }
  0x5a   : > { %v827_v54 = vshrl.u32 %v8168_v47, 16  ;;  %v830_v57 = vshll.u32 %v8168_v47, 16  ;;  %v8144_v47 = vcombine.low %v11368_v40, %v11371_v41 }
  0x5b   : > { %v820_v0 = vrot.slane %v818_v51, 3  ;;  %v823_v2 = vrot.slane %v821_v53, 4 }
  0x5c   : > { %v832_v4 = vrot.slane %v830_v57, 4 }
  0x5d   : > { %v824_v17 = vor.u32 %v823_v2, %v820_v0  ;;  %v1214_v0 = vshrl.u32 %v11428_v43, 16 }
  0x5f   : > { %9459 = vmatmul.mubr.bf16.gmra.mxu0 %v8136_v56  ;;  %v807_v56 = vsel %vm691_vm1, %v797_v37, %v806_v48  ;;  %v825_v36 = vsel %vm691_vm1, %v815_v63, %v824_v17  ;;  %v1688_v37 = vrot.slane %v1686_v21, 4 }
  0x60   : > { %9535 = vmatmul.mubr.bf16.gmra.mxu1 %v762_v58  ;;  %9462 = vmatprep.mubr.msk.bf16.mxu0 %vm11000_vm0, %v14116_v1  ;;  %v11386_v58 = vld [vmem:[%s11126_s15 + $0xc] sm:$0xff]  }
  0x61   : > { %9538 = vmatprep.mubr.msk.bf16.mxu1 %vm11000_vm0, %v14116_v1  ;;  %v1181_v7 = vshll.u32 %v11386_v58, 16  ;;  %v1179_v18 = vshrl.u32 %v11386_v58, 16  ;;  %v1689_v41 = vor.u32 %v1688_v37, %v1685_v33  ;;  %v1200_v33 = vor.u32 %v1198_v30, %v11420_v29  ;;  %v1561_v30 = vld [vmem:[%s11126_s15 + $0x48] sm:$0xf] }
  0x63   : > { %v1205_v61 = vsel %vm1177_vm2, %v1200_v33, %v11434_v44 }
  0x67   : > { %9463 = vmatmul.mubr.bf16.gmra.mxu0 %v8137_v3  ;;  %v829_v3 = vrot.slane %v827_v54, 3  ;;  %v1557_v54 = vld [vmem:[%s11126_s15 + $0x38] sm:$0xf] }
  0x68   : > { %9539 = vmatmul.mubr.bf16.gmra.mxu1 %v771_v6  ;;  %9466 = vmatprep.mubr.msk.bf16.mxu0 %vm11000_vm0, %v14116_v1  ;;  %v8142_v6 = vcombine.low %v11344_v19, %v11349_v22  ;;  %v1183_v19 = vrot.slane %v1181_v7, 1  ;;  %v1190_v22 = vshrl.u32 %v11389_v59, 16  ;;  %v8237_v59 = vcombine.low %v1556_v50, %v1557_v54 }
  0x69   : > { %9542 = vmatprep.mubr.msk.bf16.mxu1 %vm11000_vm0, %v14116_v1 }
  0x6a   : > { %v1184_v57 = vor.u32 %v1183_v19, %v1179_v18  ;;  %v1713_v7 = vshll.u32 %v8237_v59, 16  ;;  %v10602_v18 = vld [vmem:[%s14109_s1 + $0x128] sm:$0xff]  }
  0x6c   : > { %v1189_v2 = vsel %vm1177_vm2, %v1184_v57, %v1188_v20 }
  0x6f   : > { %9467 = vmatmul.mubr.bf16.gmra.mxu0 %v8138_v13  ;;  %v1678_v13 = vshll.u32 %v8233_v62, 16  ;;  %v10591_v62 = vld [vmem:[%s14109_s1 + $0x138] sm:$0xff]  }
  0x70   : > { %9543 = vmatmul.mubr.bf16.gmra.mxu1 %v780_v15  ;;  %9470 = vmatprep.mubr.msk.bf16.mxu0 %vm11000_vm0, %v14116_v1  ;;  %v1553_v15 = vld [vmem:[%s11126_s15 + $0x28] sm:$0xf] }
  0x71   : > { %9546 = vmatprep.mubr.msk.bf16.mxu1 %vm11000_vm0, %v14116_v1  ;;  %v8235_v23 = vcombine.low %v1552_v11, %v1553_v15  ;;  %v1680_v32 = vrot.slane %v1678_v13, 4  ;;  %v1559_v11 = vld [vmem:[%s11126_s15 + $0x40] sm:$0xf] }
  0x72   : > { %v8238_v21 = vcombine.low %v1558_v10, %v1559_v11 }
  0x74   : > { %v1722_v37 = vshll.u32 %v8238_v21, 16 }
  0x76   : > { %v1724_v54 = vrot.slane %v1722_v37, 4 }
  0x77   : > { %9471 = vmatmul.mubr.bf16.gmra.mxu0 %v8139_v27  ;;  %v8143_v27 = vcombine.low %v11354_v24, %v11365_v38  ;;  %v833_v24 = vor.u32 %v832_v4, %v829_v3  ;;  %v1695_v38 = vshll.u32 %v8235_v23, 16  ;;  %v1710_v4 = vshrl.u32 %v8237_v59, 16 }
  0x78   : > { %9547 = vmatmul.mubr.bf16.gmra.mxu1 %v789_v31  ;;  %9474 = vmatprep.mubr.msk.bf16.mxu0 %vm11000_vm0, %v14116_v1  ;;  %v1677_v31 = vrot.slane %v1675_v9, 3  ;;  %v1192_v9 = vor.u32 %v1190_v22, %v1188_v20  ;;  %v1222_v22 = vshrl.u32 %v11450_v60, 16  ;;  %v11603_v60 = vld [vmem:[%s11126_s15 + $0x60] sm:$0xf] }
  0x79   : > { %9550 = vmatprep.mubr.msk.bf16.mxu1 %vm11000_vm0, %v14116_v1  ;;  %v834_v51 = vsel %vm691_vm1, %v824_v17, %v833_v24  ;;  %v1712_v15 = vrot.slane %v1710_v4, 3  ;;  %v1715_v17 = vrot.slane %v1713_v7, 4 }
  0x7a   : > { %v1681_v40 = vor.u32 %v1680_v32, %v1677_v31  ;;  %v1197_v19 = vsel %vm1177_vm2, %v1192_v9, %v11420_v29  ;;  %v1226_v31 = vshll.u32 %v11475_v14, 16  ;;  %v10607_v32 = vld [vmem:[%s14109_s1 + $0x120] sm:$0xff]  }
  0x7b   : > { %v1560_v29 = vld [vmem:[%s11126_s15 + $0x44] sm:$0xf]  ;;  %v1716_v50 = vor.u32 %v1715_v17, %v1712_v15 }
  0x7c   : > { %v1690_v3 = vsel %vm691_vm1, %v1681_v40, %v1689_v41  ;;  %v11517_v24 = vrot.slane %v1226_v31, 1  ;;  %v10622_v40 = vld [vmem:[%s14109_s1 + $0x108] sm:$0xff]  }
  0x7f   : > { %9475 = vmatmul.mubr.bf16.gmra.mxu0 %v8140_v39  ;;  %v1692_v39 = vshrl.u32 %v8235_v23, 16  ;;  %v10627_v23 = vld [vmem:[%s14109_s1 + $0x168] sm:$0xff]  }
  0x80   : > { %9551 = vmatmul.mubr.bf16.gmra.mxu1 %v798_v42  ;;  %9478 = vmatprep.mubr.msk.bf16.mxu0 %vm11000_vm0, %v14116_v1  ;;  %v1555_v42 = vld [vmem:[%s11126_s15 + $0x30] sm:$0xf] }
  0x81   : > { %9554 = vmatprep.mubr.msk.bf16.mxu1 %vm11000_vm0, %v14116_v1  ;;  %v8236_v45 = vcombine.low %v1554_v35, %v1555_v42  ;;  %v1694_v48 = vrot.slane %v1692_v39, 3  ;;  %v1719_v35 = vshrl.u32 %v8238_v21, 16  ;;  %v10612_v39 = vld [vmem:[%s14109_s1 + $0x118] sm:$0xff]  }
  0x83   : > { %v1701_v53 = vshrl.u32 %v8236_v45, 16  ;;  %v1704_v55 = vshll.u32 %v8236_v45, 16  ;;  %v1230_v45 = vshrl.u32 %v11475_v14, 16  ;;  %v10613_v14 = vld [vmem:[%s11126_s15 + $0x54] sm:$0xff]  }
  0x85   : > { %v1703_v58 = vrot.slane %v1701_v53, 3  ;;  %v1706_v63 = vrot.slane %v1704_v55, 4  ;;  %v1721_v53 = vrot.slane %v1719_v35, 3 }
  0x87   : > { %9479 = vmatmul.mubr.bf16.gmra.mxu0 %v8141_v52  ;;  %v1697_v52 = vrot.slane %v1695_v38, 4  ;;  %v1707_v34 = vor.u32 %v1706_v63, %v1703_v58  ;;  %v10632_v38 = vld [vmem:[%s14109_s1 + $0x158] sm:$0xff]   ;;  %v10636_v58 = vld [vmem:[%s14109_s1 + $0x148] sm:$0xff]  }
  0x88   : > { %9555 = vmatmul.mubr.bf16.gmra.mxu1 %v807_v56  ;;  %9482 = vmatprep.mubr.msk.bf16.mxu0 %vm11000_vm0, %v14116_v1  ;;  %v11443_v56 = vrot.slane %v1210_v49, 1  ;;  %v10633_v49 = vld [vmem:[%s14109_s1 + $0x150] sm:$0xff]  }
  0x89   : > { %9558 = vmatprep.mubr.msk.bf16.mxu1 %vm11000_vm0, %v14116_v1  ;;  %v1698_v13 = vor.u32 %v1697_v52, %v1694_v48  ;;  %v1208_v48 = vor.u32 %v1206_v46, %v11434_v44  ;;  %v11539_v52 = vld [vmem:[%s11126_s15 + $0x44] sm:$0xff]   ;;  %v1562_v44 = vld [vmem:[%s11126_s15 + $0x4c] sm:$0xf]  ;;  %v1563_v46 = vld [vmem:[%s11126_s15 + $0x50] sm:$0xf]  ;;  %v1717_v55 = vsel %vm691_vm1, %v1707_v34, %v1716_v50 }
  0x8a   : > { %v1234_v59 = vshll.u32 %v11539_v52, 16  ;;  %v1216_v63 = vor.u32 %v1214_v0, %v11443_v56  ;;  %v8240_v4 = vcombine.low %v1562_v44, %v1563_v46  ;;  %v11581_v0 = vld [vmem:[%s11126_s15 + $0x58] sm:$0xf]  ;;  %v1238_v33 = vshrl.u32 %v11539_v52, 16  ;;  %v10615_v44 = vld [vmem:[%s11126_s15 + $0x5c] sm:$0xff]  }
  0x8b   : > { %v1699_v20 = vsel %vm691_vm1, %v1689_v41, %v1698_v13  ;;  %v1708_v42 = vsel %vm691_vm1, %v1698_v13, %v1707_v34  ;;  %v1213_v16 = vsel %vm1177_vm2, %v1208_v48, %v11443_v56  ;;  %v11578_v56 = vld [vmem:[%s11126_s15 + $0x54] sm:$0xf] }
  0x8c   : > { %v1236_v9 = vrot.slane %v1234_v59, 1  ;;  %v1737_v10 = vshrl.u32 %v8240_v4, 16  ;;  %v1740_v11 = vshll.u32 %v8240_v4, 16  ;;  %v8241_v17 = vcombine.low %v11578_v56, %v11581_v0 }
  0x8d   : > { %v1254_v59 = vshrl.u32 %v10613_v14, 16 }
  0x8e   : > { %v1749_v31 = vshll.u32 %v8241_v17, 16 }
  0x8f   : > { %9483 = vmatmul.mubr.bf16.gmra.mxu0 %v8142_v6  ;;  %v10598_v6 = vld [vmem:[%s14109_s1 + $0x130] sm:$0xff]  }
  0x90   : > { %9559 = vmatmul.mubr.bf16.gmra.mxu1 %v816_v12  ;;  %9486 = vmatprep.mubr.msk.bf16.mxu0 %vm11000_vm0, %v14116_v1  ;;  %v10624_v12 = vld [vmem:[%s14109_s1 + $0x170] sm:$0xff]  }
  0x91   : > { %9562 = vmatprep.mubr.msk.bf16.mxu1 %vm11000_vm0, %v14116_v1 }
  0x97   : > { %9487 = vmatmul.mubr.bf16.gmra.mxu0 %v8143_v27  ;;  %v11490_v27 = vrot.slane %v1218_v8, 1 }
  0x98   : > { %9563 = vmatmul.mubr.bf16.gmra.mxu1 %v825_v36  ;;  %9490 = vmatprep.mubr.msk.bf16.mxu0 %vm11000_vm0, %v14116_v1  ;;  %v10628_v36 = vld [vmem:[%s14109_s1 + $0x160] sm:$0xff]  }
  0x99   : > { %9566 = vmatprep.mubr.msk.bf16.mxu1 %vm11000_vm0, %v14116_v1  ;;  %v1221_v43 = vsel %vm1177_vm2, %v1216_v63, %v11490_v27  ;;  %v1224_v13 = vor.u32 %v1222_v22, %v11490_v27  ;;  %v1232_v22 = vor.u32 %v1230_v45, %v11517_v24  ;;  %v11626_v45 = vld [vmem:[%s11126_s15 + $0x68] sm:$0xf] }
  0x9f   : > { %9491 = vmatmul.mubr.bf16.gmra.mxu0 %v8144_v47  ;;  %v10617_v47 = vld [vmem:[%s14109_s1 + $0x110] sm:$0xff]  }
  0xa0   : > { %9567 = vmatmul.mubr.bf16.gmra.mxu1 %v834_v51  ;;  %9586 = vmatprep.mubr.msk.bf16.mxu0 %vm11000_vm0, %v14116_v1  ;;  %v8239_v51 = vcombine.low %v1560_v29, %v1561_v30 }
  0xa1   : > { %9662 = vmatprep.mubr.msk.bf16.mxu1 %vm11000_vm0, %v14116_v1 }
  0xa2   : > { %v1728_v57 = vshrl.u32 %v8239_v51, 16  ;;  %v1731_v41 = vshll.u32 %v8239_v51, 16 }
  0xa4   : > { %v1733_v7 = vrot.slane %v1731_v41, 4  ;;  %v11642_v41 = vld [vmem:[%s11126_s15 + $0x70] sm:$0xf] }
  0xa7   : > { %9587 = vmatmul.mubr.bf16.vlgmr.msra.gmra.mxu0 %v1189_v2  ;;  %v10637_v2 = vld [vmem:[%s14109_s1 + $0x140] sm:$0xff]  }
  0xa8   : > { %9723 = vmatpush3.bf16.msra.mxu0 %v10591_v62  ;;  %9663 = vmatmul.mubr.bf16.vlgmr.msra.gmra.mxu1 %v1690_v3  ;;  %v10631_v62 = vld [vmem:[%s14109_s1 + $0x100] sm:$0xff]   ;;  %v1725_v3 = vor.u32 %v1724_v54, %v1721_v53 }
  0xa9   : > { %9590 = vmatprep.mubr.msk.bf16.mxu0 %vm11000_vm0, %v14116_v1  ;;  %9666 = vmatprep.mubr.msk.bf16.mxu1 %vm11000_vm0, %v14116_v1 }
  0xaa   : > { %9724 = vmatprep.subr.bf16.mxu0 %v14116_v1  ;;  %9799 = vmatpush3.bf16.msra.mxu1 %v10623_v5  ;;  %v11571_v5 = vld [vmem:[%s11126_s15 + $0x4c] sm:$0xff]   ;;  %v1726_v8 = vsel %vm691_vm1, %v1716_v50, %v1725_v3 }
  0xab   : > { %9800 = vmatprep.subr.bf16.mxu1 %v14116_v1  ;;  %v1246_v48 = vshrl.u32 %v11571_v5, 16 }
  0xac   : > { %9725 = vmatpush3.bf16.msra.mxu0 %v10598_v6  ;;  %v1730_v6 = vrot.slane %v1728_v57, 3 }
  0xad   : > { %9726 = vmatprep.subr.bf16.mxu0 %v14116_v1 }
  0xae   : > { %9801 = vmatpush3.bf16.msra.mxu1 %v10624_v12  ;;  %v1242_v12 = vshll.u32 %v11571_v5, 16  ;;  %v1734_v15 = vor.u32 %v1733_v7, %v1730_v6  ;;  %v10618_v5 = vld [vmem:[%s11126_s15 + $0x64] sm:$0xff]  }
  0xaf   : > { %9591 = vmatmul.mubr.bf16.gmra.mxu0 %v1197_v19  ;;  %9802 = vmatprep.subr.bf16.mxu1 %v14116_v1  ;;  %v1742_v19 = vrot.slane %v1740_v11, 4  ;;  %v11657_v11 = vld [vmem:[%s11126_s15 + $0x78] sm:$0xf] }
  0xb0   : > { %9667 = vmatmul.mubr.bf16.gmra.mxu1 %v1699_v20  ;;  %9594 = vmatprep.mubr.msk.bf16.mxu0 %vm11000_vm0, %v14116_v1  ;;  %v1229_v20 = vsel %vm1177_vm2, %v1224_v13, %v11517_v24  ;;  %v1735_v21 = vsel %vm691_vm1, %v1725_v3, %v1734_v15  ;;  %v1244_v34 = vrot.slane %v1242_v12, 1  ;;  %v11621_v24 = vld [vmem:[%s11126_s15 + $0x64] sm:$0xf]  ;;  %v1262_v12 = vshrl.u32 %v10615_v44, 16 }
  0xb1   : > { %9670 = vmatprep.mubr.msk.bf16.mxu1 %vm11000_vm0, %v14116_v1  ;;  %9727 = vmatpush3.bf16.msra.mxu0 %v10602_v18  ;;  %v1739_v18 = vrot.slane %v1737_v10, 3  ;;  %v8243_v53 = vcombine.low %v11621_v24, %v11626_v45  ;;  %v11654_v10 = vld [vmem:[%s11126_s15 + $0x74] sm:$0xf]  ;;  %v1266_v13 = vshll.u32 %v10618_v5, 16 }
  0xb2   : > { %9728 = vmatprep.subr.bf16.mxu0 %v14116_v1  ;;  %9803 = vmatpush3.bf16.msra.mxu1 %v10627_v23  ;;  %v1746_v23 = vshrl.u32 %v8241_v17, 16  ;;  %v1248_v54 = vor.u32 %v1246_v48, %v1244_v34  ;;  %v8245_v17 = vcombine.low %v11654_v10, %v11657_v11 }
  0xb3   : > { %9804 = vmatprep.subr.bf16.mxu1 %v14116_v1  ;;  %v1743_v27 = vor.u32 %v1742_v19, %v1739_v18  ;;  %v1767_v57 = vshll.u32 %v8243_v53, 16 }
  0xb5   : > { %9729 = vmatpush3.bf16.msra.mxu0 %v10607_v32  ;;  %v11600_v32 = vld [vmem:[%s11126_s15 + $0x5c] sm:$0xf]  ;;  %v1744_v37 = vsel %vm691_vm1, %v1734_v15, %v1743_v27  ;;  %v1769_v3 = vrot.slane %v1767_v57, 4 }
  0xb6   : > { %9730 = vmatprep.subr.bf16.mxu0 %v14116_v1  ;;  %9805 = vmatpush3.bf16.msra.mxu1 %v10628_v36  ;;  %v8242_v35 = vcombine.low %v11600_v32, %v11603_v60  ;;  %v1237_v36 = vsel %vm1177_vm2, %v1232_v22, %v1236_v9 }
  0xb7   : > { %9595 = vmatmul.mubr.bf16.gmra.mxu0 %v1205_v61  ;;  %9806 = vmatprep.subr.bf16.mxu1 %v14116_v1  ;;  %v1751_v61 = vrot.slane %v1749_v31, 4  ;;  %v1268_v31 = vrot.slane %v1266_v13, 1 }
  0xb8   : > { %9671 = vmatmul.mubr.bf16.gmra.mxu1 %v1708_v42  ;;  %9598 = vmatprep.mubr.msk.bf16.mxu0 %vm11000_vm0, %v14116_v1  ;;  %v1755_v29 = vshrl.u32 %v8242_v35, 16  ;;  %v1758_v30 = vshll.u32 %v8242_v35, 16  ;;  %v1240_v42 = vor.u32 %v1238_v33, %v1236_v9  ;;  %v1782_v33 = vshrl.u32 %v8245_v17, 16 }
  0xb9   : > { %9674 = vmatprep.mubr.msk.bf16.mxu1 %vm11000_vm0, %v14116_v1  ;;  %9731 = vmatpush3.bf16.msra.mxu0 %v10612_v39  ;;  %v1748_v39 = vrot.slane %v1746_v23, 3 }
  0xba   : > { %9732 = vmatprep.subr.bf16.mxu0 %v14116_v1  ;;  %9807 = vmatpush3.bf16.msra.mxu1 %v10632_v38  ;;  %v1757_v51 = vrot.slane %v1755_v29, 3  ;;  %v1760_v52 = vrot.slane %v1758_v30, 4  ;;  %v1784_v48 = vrot.slane %v1782_v33, 3 }
  0xbb   : > { %9808 = vmatprep.subr.bf16.mxu1 %v14116_v1  ;;  %v1752_v38 = vor.u32 %v1751_v61, %v1748_v39  ;;  %v11671_v61 = vld [vmem:[%s11126_s15 + $0x7c] sm:$0xf] }
  0xbc   : > { %v1761_v46 = vor.u32 %v1760_v52, %v1757_v51 }
  0xbd   : > { %9733 = vmatpush3.bf16.msra.mxu0 %v10617_v47  ;;  %v1245_v47 = vsel %vm1177_vm2, %v1240_v42, %v1244_v34  ;;  %v1753_v50 = vsel %vm691_vm1, %v1743_v27, %v1752_v38  ;;  %v10620_v27 = vld [vmem:[%s11126_s15 + $0x6c] sm:$0xff]   ;;  %v1785_v34 = vshll.u32 %v8245_v17, 16 }
  0xbe   : > { %9734 = vmatprep.subr.bf16.mxu0 %v14116_v1  ;;  %9809 = vmatpush3.bf16.msra.mxu1 %v10633_v49  ;;  %v1250_v49 = vshll.u32 %v10613_v14, 16  ;;  %v1762_v63 = vsel %vm691_vm1, %v1752_v38, %v1761_v46  ;;  %v11674_v14 = vld [vmem:[%s11126_s15 + $0x80] sm:$0xf]  ;;  %v1270_v38 = vshrl.u32 %v10618_v5, 16 }
  0xbf   : > { %9599 = vmatmul.mubr.bf16.gmra.mxu0 %v1213_v16  ;;  %9810 = vmatprep.subr.bf16.mxu1 %v14116_v1 }
  0xc0   : > { %9675 = vmatmul.mubr.bf16.gmra.mxu1 %v1717_v55  ;;  %9602 = vmatprep.mubr.msk.bf16.mxu0 %vm11000_vm0, %v14116_v1  ;;  %v1252_v16 = vrot.slane %v1250_v49, 1  ;;  %v1764_v55 = vshrl.u32 %v8243_v53, 16  ;;  %v1787_v49 = vrot.slane %v1785_v34, 4  ;;  %v8246_v53 = vcombine.low %v11671_v61, %v11674_v14 }
  0xc1   : > { %9678 = vmatprep.mubr.msk.bf16.mxu1 %vm11000_vm0, %v14116_v1  ;;  %9735 = vmatpush3.bf16.msra.mxu0 %v10622_v40  ;;  %v11639_v40 = vld [vmem:[%s11126_s15 + $0x6c] sm:$0xf] }
  0xc2   : > { %9736 = vmatprep.subr.bf16.mxu0 %v14116_v1  ;;  %9811 = vmatpush3.bf16.msra.mxu1 %v10636_v58  ;;  %v1253_v58 = vsel %vm1177_vm2, %v1248_v54, %v1252_v16  ;;  %v8244_v4 = vcombine.low %v11639_v40, %v11642_v41  ;;  %v1256_v6 = vor.u32 %v1254_v59, %v1252_v16 }
  0xc3   : > { %9812 = vmatprep.subr.bf16.mxu1 %v14116_v1  ;;  %v1788_v57 = vor.u32 %v1787_v49, %v1784_v48 }
  0xc4   : > { %v1776_v9 = vshll.u32 %v8244_v4, 16 }
  0xc5   : > { %9737 = vmatpush3.bf16.msra.mxu0 %v10631_v62  ;;  %v1258_v62 = vshll.u32 %v10615_v44, 16 }
  0xc6   : > { %9813 = vmatpush3.bf16.msra.mxu1 %v10637_v2  ;;  %9874 = vmatprep.subr.bf16.mxu0 %v14116_v1  ;;  %v1766_v2 = vrot.slane %v1764_v55, 3 }
  0xc7   : > { %9603 = vmatmul.mubr.bf16.gmra.mxu0 %v1221_v43  ;;  %9950 = vmatprep.subr.bf16.mxu1 %v14116_v1  ;;  %v1260_v7 = vrot.slane %v1258_v62, 1  ;;  %v1791_v62 = vshrl.u32 %v8246_v53, 16 }
  0xc8   : > { %9679 = vmatmul.mubr.bf16.gmra.mxu1 %v1726_v8  ;;  %9606 = vmatprep.mubr.msk.bf16.mxu0 %vm11000_vm0, %v14116_v1  ;;  %v1770_v43 = vor.u32 %v1769_v3, %v1766_v2  ;;  %v1773_v8 = vshrl.u32 %v8244_v4, 16  ;;  %v11688_v3 = vld [vmem:[%s11126_s15 + $0x84] sm:$0xf]  ;;  %v11691_v4 = vld [vmem:[%s11126_s15 + $0x88] sm:$0xf] }
  0xc9   : > { %9682 = vmatprep.mubr.msk.bf16.mxu1 %vm11000_vm0, %v14116_v1  ;;  %v1261_v15 = vsel %vm1177_vm2, %v1256_v6, %v1260_v7  ;;  %v1264_v23 = vor.u32 %v1262_v12, %v1260_v7 }
  0xca   : > { %v1771_v18 = vsel %vm691_vm1, %v1761_v46, %v1770_v43  ;;  %v1775_v19 = vrot.slane %v1773_v8, 3  ;;  %v1272_v46 = vor.u32 %v1270_v38, %v1268_v31  ;;  %v1278_v8 = vshrl.u32 %v10620_v27, 16 }
  0xcb   : > { %v1269_v30 = vsel %vm1177_vm2, %v1264_v23, %v1268_v31 }
  0xcf   : > { %9607 = vmatmul.mubr.bf16.gmra.mxu0 %v1229_v20  ;;  %v1778_v20 = vrot.slane %v1776_v9, 4 }
  0xd0   : > { %9683 = vmatmul.mubr.bf16.gmra.mxu1 %v1735_v21  ;;  %9610 = vmatprep.mubr.msk.bf16.mxu0 %vm11000_vm0, %v14116_v1 }
  0xd1   : > { %9686 = vmatprep.mubr.msk.bf16.mxu1 %vm11000_vm0, %v14116_v1 }
  0xd7   : > { %9611 = vmatmul.mubr.bf16.gmra.mxu0 %v1237_v36 }
  0xd8   : > { %9687 = vmatmul.mubr.bf16.gmra.mxu1 %v1744_v37  ;;  %9614 = vmatprep.mubr.msk.bf16.mxu0 %vm11000_vm0, %v14116_v1  ;;  %v1779_v37 = vor.u32 %v1778_v20, %v1775_v19 }
  0xd9   : > { %9690 = vmatprep.mubr.msk.bf16.mxu1 %vm11000_vm0, %v14116_v1 }
  0xda   : > { %v1780_v52 = vsel %vm691_vm1, %v1770_v43, %v1779_v37  ;;  %v1789_v43 = vsel %vm691_vm1, %v1779_v37, %v1788_v57 }
  0xdf   : > { %9615 = vmatmul.mubr.bf16.gmra.mxu0 %v1245_v47  ;;  %v1274_v47 = vshll.u32 %v10620_v27, 16 }
  0xe0   : > { %9691 = vmatmul.mubr.bf16.gmra.mxu1 %v1753_v50  ;;  %9618 = vmatprep.mubr.msk.bf16.mxu0 %vm11000_vm0, %v14116_v1 }
  0xe1   : > { %9694 = vmatprep.mubr.msk.bf16.mxu1 %vm11000_vm0, %v14116_v1  ;;  %v1276_v55 = vrot.slane %v1274_v47, 1 }
  0xe3   : > { %v1277_v7 = vsel %vm1177_vm2, %v1272_v46, %v1276_v55  ;;  %v1280_v31 = vor.u32 %v1278_v8, %v1276_v55 }
  0xe7   : > { %9619 = vmatmul.mubr.bf16.gmra.mxu0 %v1253_v58  ;;  %v10625_v58 = vld [vmem:[%s11126_s15 + $0x74] sm:$0xff]  }
  0xe8   : > { %9695 = vmatmul.mubr.bf16.gmra.mxu1 %v1762_v63  ;;  %9622 = vmatprep.mubr.msk.bf16.mxu0 %vm11000_vm0, %v14116_v1  ;;  %v1794_v63 = vshll.u32 %v8246_v53, 16  ;;  %v1282_v9 = vshll.u32 %v10625_v58, 16 }
  0xe9   : > { %9698 = vmatprep.mubr.msk.bf16.mxu1 %vm11000_vm0, %v14116_v1 }
  0xea   : > { %v1796_v17 = vrot.slane %v1794_v63, 4 }
  0xef   : > { %v554_v21 = vpop.f32.mrf.mxu0  ;;  %9623 = vmatmul.mubr.bf16.gmra.mxu0 %v1261_v15  ;;  %v1793_v15 = vrot.slane %v1791_v62, 3 }
  0xf0   : > { %v932_v22 = vpop.f32.mrf.mxu1  ;;  %9699 = vmatmul.mubr.bf16.gmra.mxu1 %v1771_v18  ;;  %9626 = vmatprep.mubr.msk.bf16.mxu0 %vm11000_vm0, %v14116_v1  ;;  %v8247_v18 = vcombine.low %v11688_v3, %v11691_v4 }
  0xf1   : > { %v11666_v35 = vadd.f32 %v932_v22, %v554_v21  ;;  %v9436_v36 = vpop.f32.mrf.mxu0  ;;  %9702 = vmatprep.mubr.msk.bf16.mxu1 %vm11000_vm0, %v14116_v1  ;;  %v10629_v21 = vld [vmem:[%s11126_s15 + $0x7c] sm:$0xff]   ;;  %v1284_v22 = vrot.slane %v1282_v9, 1  ;;  %v1797_v34 = vor.u32 %v1796_v17, %v1793_v15 }
  0xf2   : > { %v9512_v39 = vpop.f32.mrf.mxu1  ;;  %v1800_v36 = vshrl.u32 %v8247_v18, 16  ;;  %v1803_v37 = vshll.u32 %v8247_v18, 16  ;;  %v1290_v38 = vshll.u32 %v10629_v21, 16  ;;  %v1294_v9 = vshrl.u32 %v10629_v21, 16 }
  0xf3   : > { %v557_v29 = vpop.f32.mrf.mxu0  ;;  %v11707_v39 = vld [vmem:[%s11126_s15 + $0x8c] sm:$0xf]  ;;  %v1285_v48 = vsel %vm1177_vm2, %v1280_v31, %v1284_v22 }
  0xf4   : > { %v935_v42 = vpop.f32.mrf.mxu1  ;;  %v8248_v49 = vcombine.low %v11707_v39, %v11707_v39  ;;  %v1802_v53 = vrot.slane %v1800_v36, 3  ;;  %v1292_v55 = vrot.slane %v1290_v38, 1 }
  0xf5   : > { %v11677_v50 = vadd.f32 %v935_v42, %v557_v29  ;;  %v9437_v51 = vpop.f32.mrf.mxu0  ;;  %v1286_v42 = vshrl.u32 %v10625_v58, 16  ;;  %v10634_v58 = vld [vmem:[%s11126_s15 + $0x84] ss:$0 sps:$4 sm:$0x11]  }
  0xf6   : > { %v9513_v54 = vpop.f32.mrf.mxu1  ;;  %v1809_v62 = vshrl.u32 %v8248_v49, 16  ;;  %v1812_v63 = vshll.u32 %v8248_v49, 16  ;;  %v1296_v36 = vor.u32 %v1294_v9, %v1292_v55 }
  0xf7   : > { %v562_v16 = vpop.f32.mrf.mxu0  ;;  %9627 = vmatmul.mubr.bf16.gmra.mxu0 %v1269_v30  ;;  %v1805_v54 = vrot.slane %v1803_v37, 4  ;;  %v1288_v46 = vor.u32 %v1286_v42, %v1284_v22 }
  0xf8   : > { %v940_v44 = vpop.f32.mrf.mxu1  ;;  %9703 = vmatmul.mubr.bf16.gmra.mxu1 %v1780_v52  ;;  %9630 = vmatprep.mubr.msk.bf16.mxu0 %vm11000_vm0, %v14116_v1  ;;  %v1798_v52 = vsel %vm691_vm1, %v1788_v57, %v1797_v34  ;;  %v1811_v15 = vrot.slane %v1809_v62, 3  ;;  %v1814_v17 = vrot.slane %v1812_v63, 4 }
  0xf9   : > { %v9440_v59 = vpop.f32.mrf.mxu0  ;;  %9706 = vmatprep.mubr.msk.bf16.mxu1 %vm11000_vm0, %v14116_v1  ;;  %v1806_v57 = vor.u32 %v1805_v54, %v1802_v53 }
  0xfa   : > { %v9516_v2 = vpop.f32.mrf.mxu1  ;;  %v1815_v37 = vor.u32 %v1814_v17, %v1811_v15 }
  0xfb   : > { %v565_v5 = vpop.f32.mrf.mxu0 }
  0xfc   : > { %v943_v6 = vpop.f32.mrf.mxu1  ;;  %v1816_v49 = vsel %vm691_vm1, %v1806_v57, %v1815_v37 }
  0xfd   : > { %v11695_v12 = vadd.f32 %v943_v6, %v565_v5  ;;  %v9441_v13 = vpop.f32.mrf.mxu0 }
  0xfe   : > { %v9517_v19 = vpop.f32.mrf.mxu1  ;;  %v1298_v13 = vshll.u32 %v10634_v58, 16 }
  0xff   : > { %v570_v20 = vpop.f32.mrf.mxu0  ;;  %9631 = vmatmul.mubr.bf16.gmra.mxu0 %v1277_v7 }
 0x100   : > { %v948_v23 = vpop.f32.mrf.mxu1  ;;  %9707 = vmatmul.mubr.bf16.gmra.mxu1 %v1789_v43  ;;  %9634 = vmatprep.mubr.msk.bf16.mxu0 %vm11000_vm0, %v14116_v1  ;;  %v1293_v43 = vsel %vm1177_vm2, %v1288_v46, %v1292_v55  ;;  %v1300_v21 = vrot.slane %v1298_v13, 1 }
 0x101   : > { %v11702_v27 = vadd.f32 %v948_v23, %v570_v20  ;;  %v9444_v33 = vpop.f32.mrf.mxu0  ;;  %9710 = vmatprep.mubr.msk.bf16.mxu1 %vm11000_vm0, %v14116_v1  ;;  %v1807_v20 = vsel %vm691_vm1, %v1797_v34, %v1806_v57  ;;  %v10639_v23 = vld [vmem:[%s11126_s15 + $0x18] sm:$0xff]  }
 0x102   : > { %v9520_v29 = vpop.f32.mrf.mxu1  ;;  %v2470_v42 = vshll.u32 %v10639_v23, 16  ;;  %v2468_v53 = vshrl.u32 %v10639_v23, 16 }
 0x103   : > { %v573_v30 = vpop.f32.mrf.mxu0 }
 0x104   : > { %v951_v47 = vpop.f32.mrf.mxu1  ;;  %v10640_v30 = vld [vmem:[%s11126_s15 + $0x20] sm:$0xff]   ;;  %v2472_v54 = vrot.slane %v2470_v42, 1 }
 0x105   : > { %v9445_v51 = vpop.f32.mrf.mxu0  ;;  %v2479_v13 = vshrl.u32 %v10640_v30, 16 }
 0x106   : > { %v9521_v16 = vpop.f32.mrf.mxu1  ;;  %v2473_v62 = vor.u32 %v2472_v54, %v2468_v53  ;;  %v10648_v53 = vld [vmem:[%s14109_s1 + $0x1a8] sm:$0xff]  }
 0x107   : > { %v578_v44 = vpop.f32.mrf.mxu0  ;;  %9635 = vmatmul.mubr.bf16.gmra.mxu0 %v1285_v48  ;;  %v1301_v48 = vsel %vm1177_vm2, %v1296_v36, %v1300_v21  ;;  %v2475_v16 = vshll.u32 %v10640_v30, 16  ;;  %v10670_v21 = vld [vmem:[%s14109_s1 + $0x1f0] sm:$0xff]   ;;  %v10925_v30 = vld [vmem:[%s11126_s15 + $0x24] sm:$0xf] }
 0x108   : > { %v956_v59 = vpop.f32.mrf.mxu1  ;;  %9711 = vmatmul.mubr.bf16.gmra.mxu1 %v1798_v52  ;;  %9638 = vmatprep.mubr.msk.bf16.mxu0 %vm11000_vm0, %v14116_v1 }
 0x109   : > { %v11716_v2 = vadd.f32 %v956_v59, %v578_v44  ;;  %v9448_v5 = vpop.f32.mrf.mxu0  ;;  %9714 = vmatprep.mubr.msk.bf16.mxu1 %vm11000_vm0, %v14116_v1  ;;  %v2477_v63 = vrot.slane %v2475_v16, 1  ;;  %v10673_v16 = vld [vmem:[%s14109_s1 + $0x1e8] sm:$0xff]  }
 0x10a   : > { %v9524_v6 = vpop.f32.mrf.mxu1  ;;  %v10642_v5 = vld [vmem:[%s11126_s15 + $0x28] sm:$0xff]  }
 0x10b   : > { %v581_v7 = vpop.f32.mrf.mxu0  ;;  %v2478_v9 = vsel %vm1177_vm2, %v2473_v62, %v2477_v63  ;;  %v2483_v15 = vshll.u32 %v10642_v5, 16  ;;  %v2481_v25 = vor.u32 %v2479_v13, %v2477_v63  ;;  %v11787_v63 = vld [vmem:[%s11126_s15 + $0x38] sm:$0xff]  }
 0x10c   : > { %v959_v8 = vpop.f32.mrf.mxu1 }
 0x10d   : > { %v11721_v18 = vadd.f32 %v959_v8, %v581_v7  ;;  %v9449_v19 = vpop.f32.mrf.mxu0  ;;  %v2485_v26 = vrot.slane %v2483_v15, 1 }
 0x10e   : > { %v9525_v31 = vpop.f32.mrf.mxu1  ;;  %v10669_v19 = vld [vmem:[%s14109_s1 + $0x1f8] sm:$0xff]  }
 0x10f   : > { %v586_v22 = vpop.f32.mrf.mxu0  ;;  %9639 = vmatmul.mubr.bf16.gmra.mxu0 %v1293_v43  ;;  %v10638_v43 = vld [vmem:[%s14109_s1 + $0x1b8] sm:$0xff]   ;;  %v10644_v31 = vld [vmem:[%s14109_s1 + $0x1b0] sm:$0xff]  }
 0x110   : > { %v964_v33 = vpop.f32.mrf.mxu1  ;;  %9715 = vmatmul.mubr.bf16.gmra.mxu1 %v1807_v20  ;;  %9642 = vmatprep.mubr.msk.bf16.mxu0 %vm11000_vm0, %v14116_v1 }
 0x111   : > { %v9452_v29 = vpop.f32.mrf.mxu0  ;;  %9718 = vmatprep.mubr.msk.bf16.mxu1 %vm11000_vm0, %v14116_v1 }
 0x112   : > { %v9528_v38 = vpop.f32.mrf.mxu1  ;;  %v10924_v29 = vld [vmem:[%s11126_s15 + $0x20] sm:$0xf] }
 0x113   : > { %v589_v34 = vpop.f32.mrf.mxu0  ;;  %v8274_v42 = vcombine.low %v10924_v29, %v10925_v30  ;;  %v11819_v30 = vld [vmem:[%s11126_s15 + $0x40] sm:$0xff]  }
 0x114   : > { %v967_v47 = vpop.f32.mrf.mxu1 }
 0x115   : > { %v11732_v51 = vadd.f32 %v967_v47, %v589_v34  ;;  %v9453_v52 = vpop.f32.mrf.mxu0 }
 0x116   : > { %v9529_v44 = vpop.f32.mrf.mxu1 }
 0x117   : > { %v594_v46 = vpop.f32.mrf.mxu0  ;;  %9643 = vmatmul.mubr.bf16.gmra.mxu0 %v1301_v48  ;;  %v2486_v48 = vsel %vm1177_vm2, %v2481_v25, %v2485_v26  ;;  %v10678_v25 = vld [vmem:[%s14109_s1 + $0x1d8] sm:$0xff]  }
 0x118   : > { %v972_v55 = vpop.f32.mrf.mxu1  ;;  %9719 = vmatmul.mubr.bf16.gmra.mxu1 %v1816_v49  ;;  %9738 = vmatprep.mubr.msk.bf16.mxu0 %vm11000_vm0, %v14116_v1  ;;  %v2487_v49 = vshrl.u32 %v10642_v5, 16  ;;  %v10653_v5 = vld [vmem:[%s14109_s1 + $0x1a0] sm:$0xff]  }
 0x119   : > { %v11736_v59 = vadd.f32 %v972_v55, %v594_v46  ;;  %v9456_v58 = vpop.f32.mrf.mxu0  ;;  %9814 = vmatprep.mubr.msk.bf16.mxu1 %vm11000_vm0, %v14116_v1 }
 0x11a   : > { %v9532_v57 = vpop.f32.mrf.mxu1  ;;  %v2489_v58 = vor.u32 %v2487_v49, %v2485_v26  ;;  %v10928_v49 = vld [vmem:[%s11126_s15 + $0x30] sm:$0xf] }
 0x11b   : > { %v597_v6 = vpop.f32.mrf.mxu0 }
 0x11c   : > { %v975_v7 = vpop.f32.mrf.mxu1  ;;  %v10674_v6 = vld [vmem:[%s14109_s1 + $0x1e0] sm:$0xff]  }
 0x11d   : > { %v9457_v8 = vpop.f32.mrf.mxu0 }
 0x11e   : > { %v9533_v17 = vpop.f32.mrf.mxu1  ;;  %v10927_v8 = vld [vmem:[%s11126_s15 + $0x2c] sm:$0xf] }
 0x11f   : > { %v602_v20 = vpop.f32.mrf.mxu0  ;;  %9739 = vmatmul.mubr.bf16.vlgmr.msra.gmra.mxu0 %v8273_v28  ;;  %v11761_v28 = vld [vmem:[%s11126_s15 + $0x30] sm:$0xff]  }
 0x120   : > { %v980_v23 = vpop.f32.mrf.mxu1  ;;  %9875 = vmatpush3.bf16.msra.mxu0 %v10638_v43  ;;  %9815 = vmatmul.mubr.bf16.vlgmr.msra.gmra.mxu1 %v2478_v9  ;;  %v2491_v52 = vshll.u32 %v11761_v28, 16  ;;  %v10926_v43 = vld [vmem:[%s11126_s15 + $0x28] sm:$0xf] }
 0x121   : > { %v11754_v22 = vadd.f32 %v980_v23, %v602_v20  ;;  %v9460_v33 = vpop.f32.mrf.mxu0  ;;  %9742 = vmatprep.mubr.msk.bf16.mxu0 %vm11000_vm0, %v14116_v1  ;;  %9818 = vmatprep.mubr.msk.bf16.mxu1 %vm11000_vm0, %v14116_v1  ;;  %v8275_v9 = vcombine.low %v10926_v43, %v10927_v8  ;;  %v2495_v20 = vshrl.u32 %v11761_v28, 16  ;;  %v2499_v23 = vshll.u32 %v11787_v63, 16 }
 0x122   : > { %v9536_v36 = vpop.f32.mrf.mxu1  ;;  %9876 = vmatprep.subr.bf16.mxu0 %v14116_v1  ;;  %9951 = vmatpush3.bf16.msra.mxu1 %v10669_v19  ;;  %v2493_v62 = vrot.slane %v2491_v52, 1  ;;  %v10929_v52 = vld [vmem:[%s11126_s15 + $0x34] sm:$0xf] }
 0x123   : > { %v605_v37 = vpop.f32.mrf.mxu0  ;;  %9952 = vmatprep.subr.bf16.mxu1 %v14116_v1  ;;  %v2501_v29 = vrot.slane %v2499_v23, 1  ;;  %v10930_v23 = vld [vmem:[%s11126_s15 + $0x38] sm:$0xf] }
 0x124   : > { %v983_v38 = vpop.f32.mrf.mxu1  ;;  %9877 = vmatpush3.bf16.msra.mxu0 %v10644_v31  ;;  %v2494_v19 = vsel %vm1177_vm2, %v2489_v58, %v2493_v62  ;;  %v10658_v31 = vld [vmem:[%s14109_s1 + $0x198] sm:$0xff]   ;;  %v10668_v58 = vld [vmem:[%s14109_s1 + $0x188] sm:$0xff]  }
 0x125   : > { %v11770_v34 = vadd.f32 %v983_v38, %v605_v37  ;;  %v9461_v47 = vpop.f32.mrf.mxu0  ;;  %9878 = vmatprep.subr.bf16.mxu0 %v14116_v1  ;;  %v2497_v37 = vor.u32 %v2495_v20, %v2493_v62 }
 0x126   : > { %v9537_v54 = vpop.f32.mrf.mxu1  ;;  %9953 = vmatpush3.bf16.msra.mxu1 %v10670_v21  ;;  %v10679_v47 = vld [vmem:[%s14109_s1 + $0x1d0] sm:$0xff]  }
 0x127   : > { %v610_v44 = vpop.f32.mrf.mxu0  ;;  %9743 = vmatmul.mubr.bf16.gmra.mxu0 %v8274_v42  ;;  %9954 = vmatprep.subr.bf16.mxu1 %v14116_v1  ;;  %v10663_v42 = vld [vmem:[%s14109_s1 + $0x190] sm:$0xff]  }
 0x128   : > { %v988_v46 = vpop.f32.mrf.mxu1  ;;  %9819 = vmatmul.mubr.bf16.gmra.mxu1 %v2486_v48  ;;  %9746 = vmatprep.mubr.msk.bf16.mxu0 %vm11000_vm0, %v14116_v1  ;;  %v2502_v44 = vsel %vm1177_vm2, %v2497_v37, %v2501_v29  ;;  %v2511_v37 = vshrl.u32 %v11819_v30, 16 }
 0x129   : > { %v9464_v55 = vpop.f32.mrf.mxu0  ;;  %9822 = vmatprep.mubr.msk.bf16.mxu1 %vm11000_vm0, %v14116_v1  ;;  %9879 = vmatpush3.bf16.msra.mxu0 %v10648_v53  ;;  %v8276_v53 = vcombine.low %v10928_v49, %v10929_v52  ;;  %v2503_v46 = vshrl.u32 %v11787_v63, 16  ;;  %v10655_v52 = vld [vmem:[%s11126_s15 + $0x50] sm:$0xff]  }
 0x12a   : > { %v9540_v57 = vpop.f32.mrf.mxu1  ;;  %9880 = vmatprep.subr.bf16.mxu0 %v14116_v1  ;;  %9955 = vmatpush3.bf16.msra.mxu1 %v10673_v16  ;;  %v2507_v55 = vshll.u32 %v11819_v30, 16 }
 0x12b   : > { %v613_v7 = vpop.f32.mrf.mxu0  ;;  %9956 = vmatprep.subr.bf16.mxu1 %v14116_v1  ;;  %v2505_v43 = vor.u32 %v2503_v46, %v2501_v29 }
 0x12c   : > { %v991_v13 = vpop.f32.mrf.mxu1  ;;  %v2509_v8 = vrot.slane %v2507_v55, 1 }
 0x12d   : > { %v11799_v15 = vadd.f32 %v991_v13, %v613_v7  ;;  %v9465_v17 = vpop.f32.mrf.mxu0  ;;  %9881 = vmatpush3.bf16.msra.mxu0 %v10653_v5  ;;  %v10682_v5 = vld [vmem:[%s14109_s1 + $0x1c8] sm:$0xff]   ;;  %v10677_v13 = vld [vmem:[%s14109_s1 + $0x180] sm:$0xff]  }
 0x12e   : > { %v9541_v33 = vpop.f32.mrf.mxu1  ;;  %9882 = vmatprep.subr.bf16.mxu0 %v14116_v1  ;;  %9957 = vmatpush3.bf16.msra.mxu1 %v10674_v6  ;;  %v2513_v30 = vor.u32 %v2511_v37, %v2509_v8 }
 0x12f   : > { %v618_v26 = vpop.f32.mrf.mxu0  ;;  %9747 = vmatmul.mubr.bf16.gmra.mxu0 %v8275_v9  ;;  %9958 = vmatprep.subr.bf16.mxu1 %v14116_v1  ;;  %v10652_v9 = vld [vmem:[%s11126_s15 + $0x48] sm:$0xff]  }
 0x130   : > { %v996_v28 = vpop.f32.mrf.mxu1  ;;  %9823 = vmatmul.mubr.bf16.gmra.mxu1 %v2494_v19  ;;  %9750 = vmatprep.mubr.msk.bf16.mxu0 %vm11000_vm0, %v14116_v1  ;;  %v10683_v19 = vld [vmem:[%s14109_s1 + $0x1c0] sm:$0xff]   ;;  %v2515_v29 = vshll.u32 %v10652_v9, 16 }
 0x131   : > { %v11814_v36 = vadd.f32 %v996_v28, %v618_v26  ;;  %v9468_v21 = vpop.f32.mrf.mxu0  ;;  %9826 = vmatprep.mubr.msk.bf16.mxu1 %vm11000_vm0, %v14116_v1  ;;  %9883 = vmatpush3.bf16.msra.mxu0 %v10658_v31  ;;  %v10931_v31 = vld [vmem:[%s11126_s15 + $0x3c] sm:$0xf] }
 0x132   : > { %v9544_v38 = vpop.f32.mrf.mxu1  ;;  %9884 = vmatprep.subr.bf16.mxu0 %v14116_v1  ;;  %9959 = vmatpush3.bf16.msra.mxu1 %v10678_v25  ;;  %v8277_v33 = vcombine.low %v10930_v23, %v10931_v31  ;;  %v2510_v21 = vsel %vm1177_vm2, %v2505_v43, %v2509_v8  ;;  %v2517_v49 = vrot.slane %v2515_v29, 1 }
 0x133   : > { %v621_v48 = vpop.f32.mrf.mxu0  ;;  %9960 = vmatprep.subr.bf16.mxu1 %v14116_v1 }
 0x134   : > { %v999_v54 = vpop.f32.mrf.mxu1 }
 0x135   : > { %v9469_v16 = vpop.f32.mrf.mxu0  ;;  %9885 = vmatpush3.bf16.msra.mxu0 %v10663_v42 }
 0x136   : > { %v9545_v62 = vpop.f32.mrf.mxu1  ;;  %9886 = vmatprep.subr.bf16.mxu0 %v14116_v1  ;;  %9961 = vmatpush3.bf16.msra.mxu1 %v10679_v47  ;;  %v10932_v16 = vld [vmem:[%s11126_s15 + $0x40] sm:$0xf] }
 0x137   : > { %v626_v57 = vpop.f32.mrf.mxu0  ;;  %9751 = vmatmul.mubr.bf16.gmra.mxu0 %v8276_v53  ;;  %9962 = vmatprep.subr.bf16.mxu1 %v14116_v1 }
 0x138   : > { %v1004_v63 = vpop.f32.mrf.mxu1  ;;  %9827 = vmatmul.mubr.bf16.gmra.mxu1 %v2502_v44  ;;  %9754 = vmatprep.mubr.msk.bf16.mxu0 %vm11000_vm0, %v14116_v1  ;;  %v10933_v44 = vld [vmem:[%s11126_s15 + $0x44] sm:$0xf] }
 0x139   : > { %v11844_v6 = vadd.f32 %v1004_v63, %v626_v57  ;;  %v9472_v7 = vpop.f32.mrf.mxu0  ;;  %9830 = vmatprep.mubr.msk.bf16.mxu1 %vm11000_vm0, %v14116_v1  ;;  %9887 = vmatpush3.bf16.msra.mxu0 %v10668_v58  ;;  %v8278_v46 = vcombine.low %v10932_v16, %v10933_v44  ;;  %v2519_v57 = vshrl.u32 %v10652_v9, 16  ;;  %v2523_v63 = vshll.u32 %v10655_v52, 16  ;;  %v10657_v9 = vld [vmem:[%s11126_s15 + $0x58] sm:$0xff]   ;;  %v10660_v44 = vld [vmem:[%s11126_s15 + $0x60] sm:$0xff]  }
 0x13a   : > { %v9548_v17 = vpop.f32.mrf.mxu1  ;;  %9888 = vmatprep.subr.bf16.mxu0 %v14116_v1  ;;  %9963 = vmatpush3.bf16.msra.mxu1 %v10682_v5  ;;  %v2518_v5 = vsel %vm1177_vm2, %v2513_v30, %v2517_v49 }
 0x13b   : > { %v629_v20 = vpop.f32.mrf.mxu0  ;;  %9964 = vmatprep.subr.bf16.mxu1 %v14116_v1 }
 0x13c   : > { %v1007_v25 = vpop.f32.mrf.mxu1 }
 0x13d   : > { %v11859_v26 = vadd.f32 %v1007_v25, %v629_v20  ;;  %v9473_v28 = vpop.f32.mrf.mxu0  ;;  %9889 = vmatpush3.bf16.msra.mxu0 %v10677_v13  ;;  %v2525_v20 = vrot.slane %v2523_v63, 1  ;;  %v10935_v25 = vld [vmem:[%s11126_s15 + $0x4c] sm:$0xf] }
 0x13e   : > { %v9549_v42 = vpop.f32.mrf.mxu1  ;;  %9965 = vmatpush3.bf16.msra.mxu1 %v10683_v19  ;;  %10026 = vmatprep.subr.bf16.mxu0 %v14116_v1  ;;  %v2521_v19 = vor.u32 %v2519_v57, %v2517_v49 }
 0x13f   : > { %v634_v38 = vpop.f32.mrf.mxu0  ;;  %9755 = vmatmul.mubr.bf16.gmra.mxu0 %v8277_v33  ;;  %v10934_v33 = vld [vmem:[%s11126_s15 + $0x48] sm:$0xf]  ;;  %v2527_v42 = vshrl.u32 %v10655_v52, 16 }
 0x140   : > { %v1012_v47 = vpop.f32.mrf.mxu1  ;;  %9831 = vmatmul.mubr.bf16.gmra.mxu1 %v2510_v21  ;;  %9758 = vmatprep.mubr.msk.bf16.mxu0 %vm11000_vm0, %v14116_v1  ;;  %v8279_v28 = vcombine.low %v10934_v33, %v10935_v25  ;;  %v2526_v29 = vsel %vm1177_vm2, %v2521_v19, %v2525_v20  ;;  %v2531_v38 = vshll.u32 %v10657_v9, 16  ;;  %v10662_v33 = vld [vmem:[%s11126_s15 + $0x68] sm:$0xff]  }
 0x141   : > { %v9476_v48 = vpop.f32.mrf.mxu0  ;;  %9834 = vmatprep.mubr.msk.bf16.mxu1 %vm11000_vm0, %v14116_v1 }
 0x142   : > { %v9552_v53 = vpop.f32.mrf.mxu1  ;;  %v2533_v16 = vrot.slane %v2531_v38, 1  ;;  %v2543_v38 = vshrl.u32 %v10660_v44, 16 }
 0x143   : > { %v637_v54 = vpop.f32.mrf.mxu0 }
 0x144   : > { %v1015_v55 = vpop.f32.mrf.mxu1 }
 0x145   : > { %v11871_v58 = vadd.f32 %v1015_v55, %v637_v54  ;;  %v9477_v62 = vpop.f32.mrf.mxu0  ;;  %v2529_v54 = vor.u32 %v2527_v42, %v2525_v20  ;;  %v10936_v55 = vld [vmem:[%s11126_s15 + $0x50] sm:$0xf] }
 0x146   : > { %v9553_v7 = vpop.f32.mrf.mxu1  ;;  %v8280_v62 = vcombine.low %v10936_v55, %v11578_v56  ;;  %v8282_v55 = vcombine.low %v11603_v60, %v11621_v24 }
 0x147   : > { %v642_v43 = vpop.f32.mrf.mxu0  ;;  %9759 = vmatmul.mubr.bf16.gmra.mxu0 %v8278_v46  ;;  %v2534_v7 = vsel %vm1177_vm2, %v2529_v54, %v2533_v16 }
 0x148   : > { %v1020_v8 = vpop.f32.mrf.mxu1  ;;  %9835 = vmatmul.mubr.bf16.gmra.mxu1 %v2518_v5  ;;  %9762 = vmatprep.mubr.msk.bf16.mxu0 %vm11000_vm0, %v14116_v1 }
 0x149   : > { %v11876_v13 = vadd.f32 %v1020_v8, %v642_v43  ;;  %v9480_v17 = vpop.f32.mrf.mxu0  ;;  %9838 = vmatprep.mubr.msk.bf16.mxu1 %vm11000_vm0, %v14116_v1  ;;  %v2535_v43 = vshrl.u32 %v10657_v9, 16  ;;  %v2539_v8 = vshll.u32 %v10660_v44, 16  ;;  %v8281_v9 = vcombine.low %v11581_v0, %v11600_v32 }
 0x14a   : > { %v9556_v23 = vpop.f32.mrf.mxu1 }
 0x14b   : > { %v645_v31 = vpop.f32.mrf.mxu0  ;;  %v2537_v56 = vor.u32 %v2535_v43, %v2533_v16 }
 0x14c   : > { %v1023_v21 = vpop.f32.mrf.mxu1  ;;  %v2541_v31 = vrot.slane %v2539_v8, 1 }
 0x14d   : > { %v9481_v37 = vpop.f32.mrf.mxu0 }
 0x14e   : > { %v9557_v47 = vpop.f32.mrf.mxu1  ;;  %v2542_v42 = vsel %vm1177_vm2, %v2537_v56, %v2541_v31  ;;  %v2545_v32 = vor.u32 %v2543_v38, %v2541_v31  ;;  %v10667_v56 = vld [vmem:[%s11126_s15 + $0x78] sm:$0xff]  }
 0x14f   : > { %v650_v48 = vpop.f32.mrf.mxu0  ;;  %9763 = vmatmul.mubr.bf16.gmra.mxu0 %v8279_v28  ;;  %v2547_v47 = vshll.u32 %v10662_v33, 16  ;;  %v2563_v38 = vshll.u32 %v10667_v56, 16 }
 0x150   : > { %v1028_v30 = vpop.f32.mrf.mxu1  ;;  %9839 = vmatmul.mubr.bf16.gmra.mxu1 %v2526_v29  ;;  %9766 = vmatprep.mubr.msk.bf16.mxu0 %vm11000_vm0, %v14116_v1 }
 0x151   : > { %v11886_v49 = vadd.f32 %v1028_v30, %v650_v48  ;;  %v9484_v53 = vpop.f32.mrf.mxu0  ;;  %9842 = vmatprep.mubr.msk.bf16.mxu1 %vm11000_vm0, %v14116_v1  ;;  %v2549_v16 = vrot.slane %v2547_v47, 1 }
 0x152   : > { %v9560_v52 = vpop.f32.mrf.mxu1 }
 0x153   : > { %v653_v46 = vpop.f32.mrf.mxu0  ;;  %v10665_v52 = vld [vmem:[%s11126_s15 + $0x70] sm:$0xff]  }
 0x154   : > { %v1031_v5 = vpop.f32.mrf.mxu1  ;;  %v2555_v43 = vshll.u32 %v10665_v52, 16 }
 0x155   : > { %v11893_v57 = vadd.f32 %v1031_v5, %v653_v46  ;;  %v9485_v63 = vpop.f32.mrf.mxu0 }
 0x156   : > { %v9561_v17 = vpop.f32.mrf.mxu1  ;;  %v2550_v63 = vsel %vm1177_vm2, %v2545_v32, %v2549_v16  ;;  %v2557_v24 = vrot.slane %v2555_v43, 1 }
 0x157   : > { %v658_v19 = vpop.f32.mrf.mxu0  ;;  %9767 = vmatmul.mubr.bf16.gmra.mxu0 %v8280_v62 }
 0x158   : > { %v1036_v20 = vpop.f32.mrf.mxu1  ;;  %9843 = vmatmul.mubr.bf16.gmra.mxu1 %v2534_v7  ;;  %9770 = vmatprep.mubr.msk.bf16.mxu0 %vm11000_vm0, %v14116_v1  ;;  %v2551_v7 = vshrl.u32 %v10662_v33, 16 }
 0x159   : > { %v9488_v23 = vpop.f32.mrf.mxu0  ;;  %9846 = vmatprep.mubr.msk.bf16.mxu1 %vm11000_vm0, %v14116_v1 }
 0x15a   : > { %v9564_v25 = vpop.f32.mrf.mxu1  ;;  %v2553_v60 = vor.u32 %v2551_v7, %v2549_v16 }
 0x15b   : > { %v661_v28 = vpop.f32.mrf.mxu0 }
 0x15c   : > { %v1039_v21 = vpop.f32.mrf.mxu1 }
 0x15d   : > { %v11903_v37 = vadd.f32 %v1039_v21, %v661_v28  ;;  %v9489_v29 = vpop.f32.mrf.mxu0  ;;  %v8283_v28 = vcombine.low %v11626_v45, %v11639_v40 }
 0x15e   : > { %v9565_v48 = vpop.f32.mrf.mxu1  ;;  %v2558_v29 = vsel %vm1177_vm2, %v2553_v60, %v2557_v24 }
 0x15f   : > { %v666_v30 = vpop.f32.mrf.mxu0  ;;  %9771 = vmatmul.mubr.bf16.gmra.mxu0 %v8281_v9 }
 0x160   : > { %v1044_v53 = vpop.f32.mrf.mxu1  ;;  %9847 = vmatmul.mubr.bf16.gmra.mxu1 %v2542_v42  ;;  %9774 = vmatprep.mubr.msk.bf16.mxu0 %vm11000_vm0, %v14116_v1  ;;  %v2559_v42 = vshrl.u32 %v10665_v52, 16  ;;  %v8284_v52 = vcombine.low %v11642_v41, %v11654_v10 }
 0x161   : > { %v11908_v54 = vadd.f32 %v1044_v53, %v666_v30  ;;  %v9492_v0 = vpop.f32.mrf.mxu0  ;;  %9850 = vmatprep.mubr.msk.bf16.mxu1 %vm11000_vm0, %v14116_v1 }
 0x162   : > { %v9568_v46 = vpop.f32.mrf.mxu1  ;;  %v2561_v40 = vor.u32 %v2559_v42, %v2557_v24  ;;  %v10672_v0 = vld [vmem:[%s11126_s15 + $0x80] sm:$0xff]  }
 0x163   : > { %v669_v44 = vpop.f32.mrf.mxu0 }
 0x164   : > { %v1047_v62 = vpop.f32.mrf.mxu1 }
 0x165   : > { %v9493_v5 = vpop.f32.mrf.mxu0 }
 0x166   : > { %v9569_v8 = vpop.f32.mrf.mxu1  ;;  %v2567_v5 = vshrl.u32 %v10667_v56, 16 }
 0x167   : > { %v1399_v17 = vpop.f32.mrf.mxu0  ;;  %9775 = vmatmul.mubr.bf16.gmra.mxu0 %v8282_v55 }
 0x168   : > { %v1518_v19 = vadd.f32 %v1399_v17, %v11666_v35  ;;  %v1914_v20 = vpop.f32.mrf.mxu1  ;;  %9851 = vmatmul.mubr.bf16.gmra.mxu1 %v2550_v63  ;;  %9778 = vmatprep.mubr.msk.bf16.mxu0 %vm11000_vm0, %v14116_v1  ;;  %v2571_v63 = vshll.u32 %v10672_v0, 16 }
 0x169   : > { %v9588_v23 = vpop.f32.mrf.mxu0  ;;  %9854 = vmatprep.mubr.msk.bf16.mxu1 %vm11000_vm0, %v14116_v1 }
 0x16a   : > { %v11922_v31 = vadd.f32 %v1914_v20, %v1518_v19  ;;  %v9664_v33 = vpop.f32.mrf.mxu1  ;;  %v10676_v20 = vld [vmem:[%s11126_s15 + $0x88] sm:$0xff]  }
 0x16b   : > { %v1402_v25 = vpop.f32.mrf.mxu0 }
 0x16c   : > { %v1519_v35 = vadd.f32 %v1402_v25, %v11677_v50  ;;  %v1917_v9 = vpop.f32.mrf.mxu1  ;;  %v2565_v50 = vrot.slane %v2563_v38, 1 }
 0x16d   : > { %v9589_v21 = vpop.f32.mrf.mxu0 }
 0x16e   : > { %v11928_v47 = vadd.f32 %v1917_v9, %v1519_v35  ;;  %v9665_v48 = vpop.f32.mrf.mxu1  ;;  %v2566_v62 = vsel %vm1177_vm2, %v2561_v40, %v2565_v50  ;;  %v2569_v10 = vor.u32 %v2567_v5, %v2565_v50  ;;  %v2579_v35 = vshll.u32 %v10676_v20, 16  ;;  %v11966_v40 = vld [vmem:[%s11126_s15 + $0x2c] sm:$0xf] }
 0x16f   : > { %v1407_v30 = vpop.f32.mrf.mxu0  ;;  %9779 = vmatmul.mubr.bf16.gmra.mxu0 %v8283_v28  ;;  %v2575_v28 = vshrl.u32 %v10672_v0, 16  ;;  %v2583_v5 = vshrl.u32 %v10676_v20, 16 }
 0x170   : > { %v1922_v53 = vpop.f32.mrf.mxu1  ;;  %9855 = vmatmul.mubr.bf16.gmra.mxu1 %v2558_v29  ;;  %9782 = vmatprep.mubr.msk.bf16.mxu0 %vm11000_vm0, %v14116_v1  ;;  %v10681_v29 = vld [vmem:[%s11126_s15 + $0x90] ss:$0 sps:$4 sm:$0x11]  }
 0x171   : > { %v9592_v45 = vpop.f32.mrf.mxu0  ;;  %9858 = vmatprep.mubr.msk.bf16.mxu1 %vm11000_vm0, %v14116_v1  ;;  %v2581_v53 = vrot.slane %v2579_v35, 1 }
 0x172   : > { %v9668_v32 = vpop.f32.mrf.mxu1  ;;  %v11963_v45 = vld [vmem:[%s11126_s15 + $0x28] sm:$0xf] }
 0x173   : > { %v1410_v16 = vpop.f32.mrf.mxu0  ;;  %v8286_v32 = vcombine.low %v11674_v14, %v11688_v3 }
 0x174   : > { %v1521_v46 = vadd.f32 %v1410_v16, %v11695_v12  ;;  %v1925_v44 = vpop.f32.mrf.mxu1  ;;  %v2573_v12 = vrot.slane %v2571_v63, 1  ;;  %v2587_v63 = vshll.u32 %v10681_v29, 16 }
 0x175   : > { %v9593_v55 = vpop.f32.mrf.mxu0 }
 0x176   : > { %v11939_v7 = vadd.f32 %v1925_v44, %v1521_v46  ;;  %v9669_v43 = vpop.f32.mrf.mxu1  ;;  %v2574_v25 = vsel %vm1177_vm2, %v2569_v10, %v2573_v12  ;;  %v2577_v30 = vor.u32 %v2575_v28, %v2573_v12  ;;  %v8353_v44 = vcombine.low %v11963_v45, %v11966_v40 }
 0x177   : > { %v1415_v8 = vpop.f32.mrf.mxu0  ;;  %9783 = vmatmul.mubr.bf16.gmra.mxu0 %v8284_v52  ;;  %v2585_v12 = vor.u32 %v2583_v5, %v2581_v53  ;;  %v2589_v20 = vrot.slane %v2587_v63, 1 }
 0x178   : > { %v1522_v17 = vadd.f32 %v1415_v8, %v11702_v27  ;;  %v1930_v19 = vpop.f32.mrf.mxu1  ;;  %9859 = vmatmul.mubr.bf16.gmra.mxu1 %v2566_v62  ;;  %9786 = vmatprep.mubr.msk.bf16.mxu0 %vm11000_vm0, %v14116_v1  ;;  %v8285_v27 = vcombine.low %v11657_v11, %v11671_v61  ;;  %v2837_v11 = vld [vmem:[%s11126_s15 + $0x20] sm:$0x8]  ;;  %v11958_v61 = vld [vmem:[%s11126_s15 + $0x24] sm:$0xf]  ;;  %v2582_v62 = vsel %vm1177_vm2, %v2577_v30, %v2581_v53 }
 0x179   : > { %v9596_v41 = vpop.f32.mrf.mxu0  ;;  %9862 = vmatprep.mubr.msk.bf16.mxu1 %vm11000_vm0, %v14116_v1  ;;  %v8352_v16 = vcombine.low %v2837_v11, %v11958_v61  ;;  %v2590_v11 = vsel %vm1177_vm2, %v2585_v12, %v2589_v20 }
 0x17a   : > { %v11947_v23 = vadd.f32 %v1930_v19, %v1522_v17  ;;  %v9672_v60 = vpop.f32.mrf.mxu1  ;;  %v2975_v41 = vshll.u32 %v8353_v44, 16 }
 0x17b   : > { %v1418_v24 = vpop.f32.mrf.mxu0  ;;  %v2964_v14 = vshrl.u32 %v8352_v16, 16  ;;  %v2967_v3 = vshll.u32 %v8352_v16, 16  ;;  %v11984_v60 = vld [vmem:[%s11126_s15 + $0x30] sm:$0xf]  ;;  %v12001_v16 = vld [vmem:[%s11126_s15 + $0x38] sm:$0xf] }
 0x17c   : > { %v1933_v56 = vpop.f32.mrf.mxu1  ;;  %v11987_v24 = vld [vmem:[%s11126_s15 + $0x34] sm:$0xf]  ;;  %v2977_v29 = vrot.slane %v2975_v41, 4 }
 0x17d   : > { %v9597_v33 = vpop.f32.mrf.mxu0  ;;  %v2969_v28 = vrot.slane %v2967_v3, 4 }
 0x17e   : > { %v9673_v9 = vpop.f32.mrf.mxu1  ;;  %v8287_v33 = vcombine.low %v11691_v4, %v11707_v39 }
 0x17f   : > { %v1423_v21 = vpop.f32.mrf.mxu0  ;;  %9787 = vmatmul.mubr.bf16.gmra.mxu0 %v8285_v27 }
 0x180   : > { %v1524_v42 = vadd.f32 %v1423_v21, %v11716_v2  ;;  %v1938_v38 = vpop.f32.mrf.mxu1  ;;  %9863 = vmatmul.mubr.bf16.gmra.mxu1 %v2574_v25  ;;  %9790 = vmatprep.mubr.msk.bf16.mxu0 %vm11000_vm0, %v14116_v1  ;;  %v2966_v25 = vrot.slane %v2964_v14, 3 }
 0x181   : > { %v9600_v48 = vpop.f32.mrf.mxu0  ;;  %9866 = vmatprep.mubr.msk.bf16.mxu1 %vm11000_vm0, %v14116_v1 }
 0x182   : > { %v11968_v50 = vadd.f32 %v1938_v38, %v1524_v42  ;;  %v9676_v2 = vpop.f32.mrf.mxu1  ;;  %v8354_v42 = vcombine.low %v11984_v60, %v11987_v24  ;;  %v2970_v4 = vor.u32 %v2969_v28, %v2966_v25  ;;  %v12030_v25 = vld [vmem:[%s11126_s15 + $0x44] sm:$0xf] }
 0x183   : > { %v1426_v0 = vpop.f32.mrf.mxu0 }
 0x184   : > { %v1525_v52 = vadd.f32 %v1426_v0, %v11721_v18  ;;  %v1941_v46 = vpop.f32.mrf.mxu1  ;;  %v2972_v18 = vshrl.u32 %v8353_v44, 16  ;;  %v2981_v0 = vshrl.u32 %v8354_v42, 16 }
 0x185   : > { %v9601_v55 = vpop.f32.mrf.mxu0 }
 0x186   : > { %v11977_v43 = vadd.f32 %v1941_v46, %v1525_v52  ;;  %v9677_v8 = vpop.f32.mrf.mxu1  ;;  %v2974_v21 = vrot.slane %v2972_v18, 3  ;;  %v12004_v52 = vld [vmem:[%s11126_s15 + $0x3c] sm:$0xf]  ;;  %v2983_v14 = vrot.slane %v2981_v0, 3 }
 0x187   : > { %v1431_v17 = vpop.f32.mrf.mxu0  ;;  %9791 = vmatmul.mubr.bf16.gmra.mxu0 %v8286_v32  ;;  %v2984_v32 = vshll.u32 %v8354_v42, 16  ;;  %v10686_v8 = vld [vmem:[%s14109_s1 + $0x238] sm:$0xff]  }
 0x188   : > { %v1946_v19 = vpop.f32.mrf.mxu1  ;;  %9867 = vmatmul.mubr.bf16.gmra.mxu1 %v2582_v62  ;;  %9794 = vmatprep.mubr.msk.bf16.mxu0 %vm11000_vm0, %v14116_v1  ;;  %v2978_v2 = vor.u32 %v2977_v29, %v2974_v21  ;;  %v8355_v62 = vcombine.low %v12001_v16, %v12004_v52  ;;  %v8392_v17 = vcombine.low %v11958_v61, %v11963_v45  ;;  %v10691_v61 = vld [vmem:[%s14109_s1 + $0x230] sm:$0xff]  }
 0x189   : > { %v9604_v10 = vpop.f32.mrf.mxu0  ;;  %9870 = vmatprep.mubr.msk.bf16.mxu1 %vm11000_vm0, %v14116_v1  ;;  %v2986_v3 = vrot.slane %v2984_v32, 4 }
 0x18a   : > { %v9680_v27 = vpop.f32.mrf.mxu1  ;;  %v2979_v63 = vsel %vm691_vm1, %v2970_v4, %v2978_v2  ;;  %v2990_v10 = vshrl.u32 %v8355_v62, 16  ;;  %v2993_v12 = vshll.u32 %v8355_v62, 16  ;;  %v10695_v4 = vld [vmem:[%s14109_s1 + $0x228] sm:$0xff]  }
 0x18b   : > { %v1434_v56 = vpop.f32.mrf.mxu0 }
 0x18c   : > { %v1527_v35 = vadd.f32 %v1434_v56, %v11732_v51  ;;  %v1949_v9 = vpop.f32.mrf.mxu1  ;;  %v2987_v56 = vor.u32 %v2986_v3, %v2983_v14  ;;  %v2995_v21 = vrot.slane %v2993_v12, 4 }
 0x18d   : > { %v9605_v38 = vpop.f32.mrf.mxu0 }
 0x18e   : > { %v11995_v48 = vadd.f32 %v1949_v9, %v1527_v35  ;;  %v9681_v30 = vpop.f32.mrf.mxu1  ;;  %v2992_v9 = vrot.slane %v2990_v10, 3  ;;  %v2988_v38 = vsel %vm691_vm1, %v2978_v2, %v2987_v56  ;;  %v10705_v10 = vld [vmem:[%s14109_s1 + $0x218] sm:$0xff]  }
 0x18f   : > { %v1439_v53 = vpop.f32.mrf.mxu0  ;;  %9795 = vmatmul.mubr.bf16.gmra.mxu0 %v8287_v33  ;;  %v12027_v33 = vld [vmem:[%s11126_s15 + $0x40] sm:$0xf] }
 0x190   : > { %v1528_v39 = vadd.f32 %v1439_v53, %v11736_v59  ;;  %v1954_v51 = vpop.f32.mrf.mxu1  ;;  %9871 = vmatmul.mubr.bf16.gmra.mxu1 %v2590_v11  ;;  %9890 = vmatprep.mubr.msk.bf16.mxu0 %vm11000_vm0, %v14116_v1  ;;  %v8393_v11 = vcombine.low %v11966_v40, %v11984_v60  ;;  %v8356_v30 = vcombine.low %v12027_v33, %v12030_v25 }
 0x191   : > { %v9608_v46 = vpop.f32.mrf.mxu0  ;;  %9966 = vmatprep.mubr.msk.bf16.mxu1 %vm11000_vm0, %v14116_v1  ;;  %v2996_v2 = vor.u32 %v2995_v21, %v2992_v9 }
 0x192   : > { %v12008_v44 = vadd.f32 %v1954_v51, %v1528_v39  ;;  %v9684_v55 = vpop.f32.mrf.mxu1  ;;  %v2999_v60 = vshrl.u32 %v8356_v30, 16  ;;  %v3002_v0 = vshll.u32 %v8356_v30, 16  ;;  %v12052_v46 = vld [vmem:[%s11126_s15 + $0x48] sm:$0xf]  ;;  %v8395_v30 = vcombine.low %v12004_v52, %v12027_v33 }
 0x193   : > { %v1442_v59 = vpop.f32.mrf.mxu0  ;;  %v12055_v55 = vld [vmem:[%s11126_s15 + $0x4c] sm:$0xf] }
 0x194   : > { %v1957_v5 = vpop.f32.mrf.mxu1  ;;  %v10700_v59 = vld [vmem:[%s14109_s1 + $0x220] sm:$0xff]   ;;  %v3001_v3 = vrot.slane %v2999_v60, 3 }
 0x195   : > { %v9609_v19 = vpop.f32.mrf.mxu0 }
 0x196   : > { %v9685_v18 = vpop.f32.mrf.mxu1  ;;  %v3004_v19 = vrot.slane %v3002_v0, 4 }
 0x197   : > { %v1447_v41 = vpop.f32.mrf.mxu0  ;;  %9891 = vmatmul.mubr.bf16.vlgmr.msra.gmra.mxu0 %v2979_v63  ;;  %v2997_v63 = vsel %vm691_vm1, %v2987_v56, %v2996_v2  ;;  %v8357_v18 = vcombine.low %v12052_v46, %v12055_v55 }
 0x198   : > { %v1530_v20 = vadd.f32 %v1447_v41, %v11754_v22  ;;  %10027 = vmatpush3.bf16.msra.mxu0 %v10686_v8  ;;  %v1962_v27 = vpop.f32.mrf.mxu1  ;;  %9967 = vmatmul.mubr.bf16.vlgmr.msra.gmra.mxu1 %v8392_v17  ;;  %v8394_v8 = vcombine.low %v11987_v24, %v12001_v16 }
 0x199   : > { %v9612_v45 = vpop.f32.mrf.mxu0  ;;  %9894 = vmatprep.mubr.msk.bf16.mxu0 %vm11000_vm0, %v14116_v1  ;;  %9970 = vmatprep.mubr.msk.bf16.mxu1 %vm11000_vm0, %v14116_v1  ;;  %v3008_v56 = vshrl.u32 %v8357_v18, 16 }
 0x19a   : > { %v12032_v22 = vadd.f32 %v1962_v27, %v1530_v20  ;;  %v9688_v28 = vpop.f32.mrf.mxu1  ;;  %10028 = vmatprep.subr.bf16.mxu0 %v14116_v1  ;;  %v3005_v27 = vor.u32 %v3004_v19, %v3001_v3  ;;  %v12077_v45 = vld [vmem:[%s11126_s15 + $0x50] sm:$0xf] }
 0x19b   : > { %v1450_v35 = vpop.f32.mrf.mxu0  ;;  %v12080_v28 = vld [vmem:[%s11126_s15 + $0x54] sm:$0xf] }
 0x19c   : > { %v1531_v29 = vadd.f32 %v1450_v35, %v11770_v34  ;;  %v1965_v42 = vpop.f32.mrf.mxu1  ;;  %10029 = vmatpush3.bf16.msra.mxu0 %v10691_v61  ;;  %v3011_v61 = vshll.u32 %v8357_v18, 16 }
 0x19d   : > { %v9613_v53 = vpop.f32.mrf.mxu0  ;;  %10030 = vmatprep.subr.bf16.mxu0 %v14116_v1 }
 0x19e   : > { %v12045_v34 = vadd.f32 %v1965_v42, %v1531_v29  ;;  %v9689_v39 = vpop.f32.mrf.mxu1  ;;  %v8358_v42 = vcombine.low %v12077_v45, %v12080_v28  ;;  %v3010_v53 = vrot.slane %v3008_v56, 3 }
 0x19f   : > { %v1455_v51 = vpop.f32.mrf.mxu0  ;;  %9895 = vmatmul.mubr.bf16.gmra.mxu0 %v2988_v38 }
 0x1a0   : > { %v1970_v40 = vpop.f32.mrf.mxu1  ;;  %9971 = vmatmul.mubr.bf16.gmra.mxu1 %v8393_v11  ;;  %9898 = vmatprep.mubr.msk.bf16.mxu0 %vm11000_vm0, %v14116_v1  ;;  %v3006_v11 = vsel %vm691_vm1, %v2996_v2, %v3005_v27  ;;  %v10715_v51 = vld [vmem:[%s14109_s1 + $0x208] sm:$0xff]   ;;  %v3017_v0 = vshrl.u32 %v8358_v42, 16  ;;  %v3020_v2 = vshll.u32 %v8358_v42, 16 }
 0x1a1   : > { %v9616_v32 = vpop.f32.mrf.mxu0  ;;  %9974 = vmatprep.mubr.msk.bf16.mxu1 %vm11000_vm0, %v14116_v1  ;;  %10031 = vmatpush3.bf16.msra.mxu0 %v10695_v4  ;;  %v3013_v4 = vrot.slane %v3011_v61, 4 }
 0x1a2   : > { %v9692_v62 = vpop.f32.mrf.mxu1  ;;  %10032 = vmatprep.subr.bf16.mxu0 %v14116_v1  ;;  %v3022_v3 = vrot.slane %v3020_v2, 4 }
 0x1a3   : > { %v1458_v5 = vpop.f32.mrf.mxu0  ;;  %v3014_v33 = vor.u32 %v3013_v4, %v3010_v53  ;;  %v12105_v62 = vld [vmem:[%s11126_s15 + $0x58] sm:$0xf] }
 0x1a4   : > { %v1533_v17 = vadd.f32 %v1458_v5, %v11799_v15  ;;  %v1973_v14 = vpop.f32.mrf.mxu1  ;;  %v12108_v5 = vld [vmem:[%s11126_s15 + $0x5c] sm:$0xf] }
 0x1a5   : > { %v9617_v41 = vpop.f32.mrf.mxu0  ;;  %10033 = vmatpush3.bf16.msra.mxu0 %v10700_v59 }
 0x1a6   : > { %v12070_v12 = vadd.f32 %v1973_v14, %v1533_v17  ;;  %v9693_v20 = vpop.f32.mrf.mxu1  ;;  %10034 = vmatprep.subr.bf16.mxu0 %v14116_v1  ;;  %v3019_v14 = vrot.slane %v3017_v0, 3  ;;  %v3015_v41 = vsel %vm691_vm1, %v3005_v27, %v3014_v33 }
 0x1a7   : > { %v1463_v15 = vpop.f32.mrf.mxu0  ;;  %9899 = vmatmul.mubr.bf16.gmra.mxu0 %v2997_v63  ;;  %v10720_v63 = vld [vmem:[%s14109_s1 + $0x200] sm:$0xff]   ;;  %v8359_v20 = vcombine.low %v12105_v62, %v12108_v5 }
 0x1a8   : > { %v1534_v24 = vadd.f32 %v1463_v15, %v11814_v36  ;;  %v1978_v16 = vpop.f32.mrf.mxu1  ;;  %9975 = vmatmul.mubr.bf16.gmra.mxu1 %v8394_v8  ;;  %9902 = vmatprep.mubr.msk.bf16.mxu0 %vm11000_vm0, %v14116_v1  ;;  %v10710_v36 = vld [vmem:[%s14109_s1 + $0x210] sm:$0xff]   ;;  %v3023_v61 = vor.u32 %v3022_v3, %v3019_v14 }
 0x1a9   : > { %v9620_v35 = vpop.f32.mrf.mxu0  ;;  %9978 = vmatprep.mubr.msk.bf16.mxu1 %vm11000_vm0, %v14116_v1  ;;  %10035 = vmatpush3.bf16.msra.mxu0 %v10705_v10  ;;  %v8396_v10 = vcombine.low %v12030_v25, %v12052_v46  ;;  %v3026_v27 = vshrl.u32 %v8359_v20, 16  ;;  %v3029_v25 = vshll.u32 %v8359_v20, 16 }
 0x1aa   : > { %v12087_v9 = vadd.f32 %v1978_v16, %v1534_v24  ;;  %v9696_v21 = vpop.f32.mrf.mxu1  ;;  %10036 = vmatprep.subr.bf16.mxu0 %v14116_v1  ;;  %v12129_v35 = vld [vmem:[%s11126_s15 + $0x60] sm:$0xf]  ;;  %v3024_v42 = vsel %vm691_vm1, %v3014_v33, %v3023_v61  ;;  %v12149_v33 = vld [vmem:[%s11126_s15 + $0x6c] sm:$0xf] }
 0x1ab   : > { %v1466_v29 = vpop.f32.mrf.mxu0  ;;  %v3028_v53 = vrot.slane %v3026_v27, 3  ;;  %v3031_v4 = vrot.slane %v3029_v25, 4 }
 0x1ac   : > { %v1981_v38 = vpop.f32.mrf.mxu1 }
 0x1ad   : > { %v9621_v39 = vpop.f32.mrf.mxu0  ;;  %10037 = vmatpush3.bf16.msra.mxu0 %v10710_v36  ;;  %v12132_v36 = vld [vmem:[%s11126_s15 + $0x64] sm:$0xf]  ;;  %v8397_v38 = vcombine.low %v12055_v55, %v12077_v45 }
 0x1ae   : > { %v9697_v40 = vpop.f32.mrf.mxu1  ;;  %10038 = vmatprep.subr.bf16.mxu0 %v14116_v1  ;;  %v8360_v39 = vcombine.low %v12129_v35, %v12132_v36 }
 0x1af   : > { %v1471_v60 = vpop.f32.mrf.mxu0  ;;  %9903 = vmatmul.mubr.bf16.gmra.mxu0 %v3006_v11 }
 0x1b0   : > { %v1536_v32 = vadd.f32 %v1471_v60, %v11844_v6  ;;  %v1986_v52 = vpop.f32.mrf.mxu1  ;;  %9979 = vmatmul.mubr.bf16.gmra.mxu1 %v8395_v30  ;;  %9906 = vmatprep.mubr.msk.bf16.mxu0 %vm11000_vm0, %v14116_v1  ;;  %v3035_v55 = vshrl.u32 %v8360_v39, 16  ;;  %v3038_v45 = vshll.u32 %v8360_v39, 16 }
 0x1b1   : > { %v9624_v59 = vpop.f32.mrf.mxu0  ;;  %9982 = vmatprep.mubr.msk.bf16.mxu1 %vm11000_vm0, %v14116_v1  ;;  %10039 = vmatpush3.bf16.msra.mxu0 %v10715_v51 }
 0x1b2   : > { %v12113_v6 = vadd.f32 %v1986_v52, %v1536_v32  ;;  %v9700_v8 = vpop.f32.mrf.mxu1  ;;  %10040 = vmatprep.subr.bf16.mxu0 %v14116_v1  ;;  %v12146_v52 = vld [vmem:[%s11126_s15 + $0x68] sm:$0xf] }
 0x1b3   : > { %v1474_v17 = vpop.f32.mrf.mxu0 }
 0x1b4   : > { %v1537_v19 = vadd.f32 %v1474_v17, %v11859_v26  ;;  %v1989_v18 = vpop.f32.mrf.mxu1  ;;  %v8361_v17 = vcombine.low %v12146_v52, %v12149_v33 }
 0x1b5   : > { %v9625_v15 = vpop.f32.mrf.mxu0  ;;  %10041 = vmatpush3.bf16.msra.mxu0 %v10720_v63 }
 0x1b6   : > { %v12122_v24 = vadd.f32 %v1989_v18, %v1537_v19  ;;  %v9701_v16 = vpop.f32.mrf.mxu1  ;;  %v8398_v19 = vcombine.low %v12080_v28, %v12105_v62  ;;  %v3037_v18 = vrot.slane %v3035_v55, 3  ;;  %v12166_v28 = vld [vmem:[%s11126_s15 + $0x70] sm:$0xf]  ;;  %v12169_v62 = vld [vmem:[%s11126_s15 + $0x74] sm:$0xf] }
 0x1b7   : > { %v1479_v56 = vpop.f32.mrf.mxu0  ;;  %9907 = vmatmul.mubr.bf16.gmra.mxu0 %v3015_v41  ;;  %v3040_v41 = vrot.slane %v3038_v45, 4  ;;  %v3044_v16 = vshrl.u32 %v8361_v17, 16 }
 0x1b8   : > { %v1994_v26 = vpop.f32.mrf.mxu1  ;;  %9983 = vmatmul.mubr.bf16.gmra.mxu1 %v8396_v10  ;;  %9910 = vmatprep.mubr.msk.bf16.mxu0 %vm11000_vm0, %v14116_v1  ;;  %v3047_v56 = vshll.u32 %v8361_v17, 16 }
 0x1b9   : > { %v9628_v46 = vpop.f32.mrf.mxu0  ;;  %9986 = vmatprep.mubr.msk.bf16.mxu1 %vm11000_vm0, %v14116_v1 }
 0x1ba   : > { %v9704_v21 = vpop.f32.mrf.mxu1 }
 0x1bb   : > { %v1482_v29 = vpop.f32.mrf.mxu0 }
 0x1bc   : > { %v1539_v11 = vadd.f32 %v1482_v29, %v11871_v58  ;;  %v1997_v30 = vpop.f32.mrf.mxu1  ;;  %v3032_v58 = vor.u32 %v3031_v4, %v3028_v53  ;;  %v8399_v53 = vcombine.low %v12108_v5, %v12129_v35  ;;  %v8362_v4 = vcombine.low %v12166_v28, %v12169_v62  ;;  %v12186_v5 = vld [vmem:[%s11126_s15 + $0x78] sm:$0xf]  ;;  %v12189_v35 = vld [vmem:[%s11126_s15 + $0x7c] sm:$0xf] }
 0x1bd   : > { %v9629_v51 = vpop.f32.mrf.mxu0 }
 0x1be   : > { %v12140_v40 = vadd.f32 %v1997_v30, %v1539_v11  ;;  %v9705_v60 = vpop.f32.mrf.mxu1  ;;  %v3033_v3 = vsel %vm691_vm1, %v3023_v61, %v3032_v58  ;;  %v3041_v61 = vor.u32 %v3040_v41, %v3037_v18  ;;  %v8363_v18 = vcombine.low %v12186_v5, %v12189_v35 }
 0x1bf   : > { %v1487_v0 = vpop.f32.mrf.mxu0  ;;  %9911 = vmatmul.mubr.bf16.gmra.mxu0 %v3024_v42  ;;  %v3046_v42 = vrot.slane %v3044_v16, 3 }
 0x1c0   : > { %v1540_v2 = vadd.f32 %v1487_v0, %v11876_v13  ;;  %v2002_v32 = vpop.f32.mrf.mxu1  ;;  %9987 = vmatmul.mubr.bf16.gmra.mxu1 %v8397_v38  ;;  %9914 = vmatprep.mubr.msk.bf16.mxu0 %vm11000_vm0, %v14116_v1  ;;  %v3042_v30 = vsel %vm691_vm1, %v3032_v58, %v3041_v61  ;;  %v3056_v58 = vshll.u32 %v8362_v4, 16 }
 0x1c1   : > { %v9632_v59 = vpop.f32.mrf.mxu0  ;;  %9990 = vmatprep.mubr.msk.bf16.mxu1 %vm11000_vm0, %v14116_v1 }
 0x1c2   : > { %v12153_v63 = vadd.f32 %v2002_v32, %v1540_v2  ;;  %v9708_v8 = vpop.f32.mrf.mxu1 }
 0x1c3   : > { %v1490_v13 = vpop.f32.mrf.mxu0 }
 0x1c4   : > { %v2005_v14 = vpop.f32.mrf.mxu1  ;;  %v8400_v13 = vcombine.low %v12132_v36, %v12146_v52  ;;  %v3062_v36 = vshrl.u32 %v8363_v18, 16  ;;  %v3065_v52 = vshll.u32 %v8363_v18, 16 }
 0x1c5   : > { %v9633_v10 = vpop.f32.mrf.mxu0 }
 0x1c6   : > { %v9709_v20 = vpop.f32.mrf.mxu1 }
 0x1c7   : > { %v1495_v15 = vpop.f32.mrf.mxu0  ;;  %9915 = vmatmul.mubr.bf16.gmra.mxu0 %v3033_v3 }
 0x1c8   : > { %v1542_v26 = vadd.f32 %v1495_v15, %v11886_v49  ;;  %v2010_v27 = vpop.f32.mrf.mxu1  ;;  %9991 = vmatmul.mubr.bf16.gmra.mxu1 %v8398_v19  ;;  %9918 = vmatprep.mubr.msk.bf16.mxu0 %vm11000_vm0, %v14116_v1  ;;  %v3049_v49 = vrot.slane %v3047_v56, 4  ;;  %v3058_v19 = vrot.slane %v3056_v58, 4 }
 0x1c9   : > { %v9636_v25 = vpop.f32.mrf.mxu0  ;;  %9994 = vmatprep.mubr.msk.bf16.mxu1 %vm11000_vm0, %v14116_v1 }
 0x1ca   : > { %v12171_v46 = vadd.f32 %v2010_v27, %v1542_v26  ;;  %v9712_v21 = vpop.f32.mrf.mxu1  ;;  %v3050_v2 = vor.u32 %v3049_v49, %v3046_v42  ;;  %v12203_v26 = vld [vmem:[%s11126_s15 + $0x80] sm:$0xf]  ;;  %v12206_v27 = vld [vmem:[%s11126_s15 + $0x84] sm:$0xf] }
 0x1cb   : > { %v1498_v29 = vpop.f32.mrf.mxu0 }
 0x1cc   : > { %v1543_v38 = vadd.f32 %v1498_v29, %v11893_v57  ;;  %v2013_v11 = vpop.f32.mrf.mxu1  ;;  %v3053_v57 = vshrl.u32 %v8362_v4, 16  ;;  %v3051_v8 = vsel %vm691_vm1, %v3041_v61, %v3050_v2  ;;  %v8364_v29 = vcombine.low %v12203_v26, %v12206_v27 }
 0x1cd   : > { %v9637_v39 = vpop.f32.mrf.mxu0 }
 0x1ce   : > { %v12179_v51 = vadd.f32 %v2013_v11, %v1543_v38  ;;  %v9713_v60 = vpop.f32.mrf.mxu1  ;;  %v3055_v3 = vrot.slane %v3053_v57, 3  ;;  %v8401_v38 = vcombine.low %v12149_v33, %v12166_v28  ;;  %v3064_v11 = vrot.slane %v3062_v36, 3  ;;  %v12223_v33 = vld [vmem:[%s11126_s15 + $0x88] sm:$0xf]  ;;  %v12226_v28 = vld [vmem:[%s11126_s15 + $0x8c] sm:$0xf] }
 0x1cf   : > { %v1503_v0 = vpop.f32.mrf.mxu0  ;;  %9919 = vmatmul.mubr.bf16.gmra.mxu0 %v3042_v30  ;;  %v3067_v30 = vrot.slane %v3065_v52, 4  ;;  %v3071_v60 = vshrl.u32 %v8364_v29, 16 }
 0x1d0   : > { %v2018_v32 = vpop.f32.mrf.mxu1  ;;  %9995 = vmatmul.mubr.bf16.gmra.mxu1 %v8399_v53  ;;  %9922 = vmatprep.mubr.msk.bf16.mxu0 %vm11000_vm0, %v14116_v1  ;;  %v3074_v0 = vshll.u32 %v8364_v29, 16 }
 0x1d1   : > { %v9640_v55 = vpop.f32.mrf.mxu0  ;;  %9998 = vmatprep.mubr.msk.bf16.mxu1 %vm11000_vm0, %v14116_v1 }
 0x1d2   : > { %v9716_v45 = vpop.f32.mrf.mxu1 }
 0x1d3   : > { %v1506_v59 = vpop.f32.mrf.mxu0 }
 0x1d4   : > { %v1545_v17 = vadd.f32 %v1506_v59, %v11903_v37  ;;  %v2021_v14 = vpop.f32.mrf.mxu1  ;;  %v3059_v37 = vor.u32 %v3058_v19, %v3055_v3  ;;  %v8402_v3 = vcombine.low %v12169_v62, %v12186_v5  ;;  %v8365_v19 = vcombine.low %v12223_v33, %v12226_v28  ;;  %v12243_v62 = vld [vmem:[%s11126_s15 + $0x90] sm:$0xf]  ;;  %v12246_v5 = vld [vmem:[%s11126_s15 + $0x94] sm:$0xf] }
 0x1d5   : > { %v9641_v41 = vpop.f32.mrf.mxu0 }
 0x1d6   : > { %v12197_v10 = vadd.f32 %v2021_v14, %v1545_v17  ;;  %v9717_v20 = vpop.f32.mrf.mxu1  ;;  %v3060_v49 = vsel %vm691_vm1, %v3050_v2, %v3059_v37  ;;  %v3068_v2 = vor.u32 %v3067_v30, %v3064_v11  ;;  %v8366_v11 = vcombine.low %v12243_v62, %v12246_v5 }
 0x1d7   : > { %v1511_v15 = vpop.f32.mrf.mxu0  ;;  %9923 = vmatmul.mubr.bf16.gmra.mxu0 %v3051_v8  ;;  %v3073_v8 = vrot.slane %v3071_v60, 3 }
 0x1d8   : > { %v1546_v16 = vadd.f32 %v1511_v15, %v11908_v54  ;;  %v2026_v56 = vpop.f32.mrf.mxu1  ;;  %9999 = vmatmul.mubr.bf16.gmra.mxu1 %v8400_v13  ;;  %9926 = vmatprep.mubr.msk.bf16.mxu0 %vm11000_vm0, %v14116_v1  ;;  %v3069_v14 = vsel %vm691_vm1, %v3059_v37, %v3068_v2  ;;  %v3083_v37 = vshll.u32 %v8365_v19, 16 }
 0x1d9   : > { %v9644_v61 = vpop.f32.mrf.mxu0  ;;  %10002 = vmatprep.mubr.msk.bf16.mxu1 %vm11000_vm0, %v14116_v1 }
 0x1da   : > { %v12210_v25 = vadd.f32 %v2026_v56, %v1546_v16  ;;  %v9720_v21 = vpop.f32.mrf.mxu1 }
 0x1db   : > { %v1514_v54 = vpop.f32.mrf.mxu0 }
 0x1dc   : > { %v2029_v42 = vpop.f32.mrf.mxu1  ;;  %v8403_v54 = vcombine.low %v12189_v35, %v12203_v26  ;;  %v3089_v35 = vshrl.u32 %v8366_v11, 16  ;;  %v3092_v26 = vshll.u32 %v8366_v11, 16 }
 0x1dd   : > { %v9645_v53 = vpop.f32.mrf.mxu0 }
 0x1de   : > { %v9721_v4 = vpop.f32.mrf.mxu1 }
 0x1df   : > { %v2192_v39 = vpop.f32.mrf.mxu0  ;;  %9927 = vmatmul.mubr.bf16.gmra.mxu0 %v3060_v49 }
 0x1e0   : > { %v2311_v32 = vadd.f32 %v2192_v39, %v11922_v31  ;;  %v2688_v57 = vpop.f32.mrf.mxu1  ;;  %10003 = vmatmul.mubr.bf16.gmra.mxu1 %v8401_v38  ;;  %9930 = vmatprep.mubr.msk.bf16.mxu0 %vm11000_vm0, %v14116_v1  ;;  %v3076_v31 = vrot.slane %v3074_v0, 4  ;;  %v3085_v38 = vrot.slane %v3083_v37, 4 }
 0x1e1   : > { %v9740_v58 = vpop.f32.mrf.mxu0  ;;  %10006 = vmatprep.mubr.msk.bf16.mxu1 %vm11000_vm0, %v14116_v1 }
 0x1e2   : > { %v12228_v55 = vadd.f32 %v2688_v57, %v2311_v32  ;;  %v9816_v45 = vpop.f32.mrf.mxu1  ;;  %v3077_v16 = vor.u32 %v3076_v31, %v3073_v8  ;;  %v12260_v32 = vld [vmem:[%s11126_s15 + $0x98] sm:$0xf]  ;;  %v8404_v31 = vcombine.low %v12206_v27, %v12223_v33 }
 0x1e3   : > { %v2195_v59 = vpop.f32.mrf.mxu0 }
 0x1e4   : > { %v2312_v13 = vadd.f32 %v2195_v59, %v11928_v47  ;;  %v2691_v17 = vpop.f32.mrf.mxu1  ;;  %v3080_v47 = vshrl.u32 %v8365_v19, 16  ;;  %v3078_v21 = vsel %vm691_vm1, %v3068_v2, %v3077_v16 }
 0x1e5   : > { %v9741_v18 = vpop.f32.mrf.mxu0 }
 0x1e6   : > { %v12236_v41 = vadd.f32 %v2691_v17, %v2312_v13  ;;  %v9817_v20 = vpop.f32.mrf.mxu1  ;;  %v3082_v49 = vrot.slane %v3080_v47, 3  ;;  %v3091_v13 = vrot.slane %v3089_v35, 3  ;;  %v3094_v17 = vrot.slane %v3092_v26, 4 }
 0x1e7   : > { %v2200_v15 = vpop.f32.mrf.mxu0  ;;  %9931 = vmatmul.mubr.bf16.gmra.mxu0 %v3069_v14 }
 0x1e8   : > { %v2696_v56 = vpop.f32.mrf.mxu1  ;;  %10007 = vmatmul.mubr.bf16.gmra.mxu1 %v8402_v3  ;;  %9934 = vmatprep.mubr.msk.bf16.mxu0 %vm11000_vm0, %v14116_v1 }
 0x1e9   : > { %v9744_v36 = vpop.f32.mrf.mxu0  ;;  %10010 = vmatprep.mubr.msk.bf16.mxu1 %vm11000_vm0, %v14116_v1 }
 0x1ea   : > { %v9820_v52 = vpop.f32.mrf.mxu1 }
 0x1eb   : > { %v2203_v61 = vpop.f32.mrf.mxu0 }
 0x1ec   : > { %v2314_v29 = vadd.f32 %v2203_v61, %v11939_v7  ;;  %v2699_v42 = vpop.f32.mrf.mxu1  ;;  %v3086_v7 = vor.u32 %v3085_v38, %v3082_v49 }
 0x1ed   : > { %v9745_v30 = vpop.f32.mrf.mxu0 }
 0x1ee   : > { %v12254_v53 = vadd.f32 %v2699_v42, %v2314_v29  ;;  %v9821_v4 = vpop.f32.mrf.mxu1  ;;  %v3087_v8 = vsel %vm691_vm1, %v3077_v16, %v3086_v7  ;;  %v3095_v16 = vor.u32 %v3094_v17, %v3091_v13  ;;  %v10723_v29 = vld [vmem:[%s11126_s15 + $0x24] sm:$0xff]  }
 0x1ef   : > { %v2208_v39 = vpop.f32.mrf.mxu0  ;;  %9935 = vmatmul.mubr.bf16.gmra.mxu0 %v3078_v21 }
 0x1f0   : > { %v2315_v60 = vadd.f32 %v2208_v39, %v11947_v23  ;;  %v2704_v0 = vpop.f32.mrf.mxu1  ;;  %10011 = vmatmul.mubr.bf16.gmra.mxu1 %v8403_v54  ;;  %9938 = vmatprep.mubr.msk.bf16.mxu0 %vm11000_vm0, %v14116_v1  ;;  %v8367_v23 = vcombine.low %v12260_v32, %v12260_v32  ;;  %v3096_v21 = vsel %vm691_vm1, %v3086_v7, %v3095_v16  ;;  %v3759_v39 = vshll.u32 %v10723_v29, 16 }
 0x1f1   : > { %v9748_v57 = vpop.f32.mrf.mxu0  ;;  %10014 = vmatprep.mubr.msk.bf16.mxu1 %vm11000_vm0, %v14116_v1  ;;  %v8405_v54 = vcombine.low %v12226_v28, %v12243_v62  ;;  %v8406_v7 = vcombine.low %v12246_v5, %v12260_v32  ;;  %v10725_v32 = vld [vmem:[%s11126_s15 + $0x34] sm:$0xff]  }
 0x1f2   : > { %v12264_v2 = vadd.f32 %v2704_v0, %v2315_v60  ;;  %v9824_v58 = vpop.f32.mrf.mxu1  ;;  %v3098_v18 = vshrl.u32 %v8367_v23, 16  ;;  %v3101_v20 = vshll.u32 %v8367_v23, 16  ;;  %v3757_v57 = vshrl.u32 %v10723_v29, 16 }
 0x1f3   : > { %v2211_v45 = vpop.f32.mrf.mxu0  ;;  %v3761_v58 = vrot.slane %v3759_v39, 1 }
 0x1f4   : > { %v2707_v59 = vpop.f32.mrf.mxu1  ;;  %v3100_v36 = vrot.slane %v3098_v18, 3  ;;  %v3103_v52 = vrot.slane %v3101_v20, 4 }
 0x1f5   : > { %v9749_v14 = vpop.f32.mrf.mxu0  ;;  %v3762_v5 = vor.u32 %v3761_v58, %v3757_v57 }
 0x1f6   : > { %v9825_v3 = vpop.f32.mrf.mxu1  ;;  %v3104_v30 = vor.u32 %v3103_v52, %v3100_v36 }
 0x1f7   : > { %v2216_v19 = vpop.f32.mrf.mxu0  ;;  %9939 = vmatmul.mubr.bf16.gmra.mxu0 %v3087_v8 }
 0x1f8   : > { %v2317_v15 = vadd.f32 %v2216_v19, %v11968_v50  ;;  %v2712_v56 = vpop.f32.mrf.mxu1  ;;  %10015 = vmatmul.mubr.bf16.gmra.mxu1 %v8404_v31  ;;  %9942 = vmatprep.mubr.msk.bf16.mxu0 %vm11000_vm0, %v14116_v1  ;;  %v3105_v0 = vsel %vm691_vm1, %v3095_v16, %v3104_v30  ;;  %v3772_v16 = vshll.u32 %v10725_v32, 16 }
 0x1f9   : > { %v9752_v47 = vpop.f32.mrf.mxu0  ;;  %10018 = vmatprep.mubr.msk.bf16.mxu1 %vm11000_vm0, %v14116_v1 }
 0x1fa   : > { %v12276_v27 = vadd.f32 %v2712_v56, %v2317_v15  ;;  %v9828_v33 = vpop.f32.mrf.mxu1 }
 0x1fb   : > { %v2219_v37 = vpop.f32.mrf.mxu0 }
 0x1fc   : > { %v2318_v50 = vadd.f32 %v2219_v37, %v11977_v43  ;;  %v2715_v61 = vpop.f32.mrf.mxu1  ;;  %v10724_v43 = vld [vmem:[%s11126_s15 + $0x2c] sm:$0xff]  }
 0x1fd   : > { %v9753_v42 = vpop.f32.mrf.mxu0  ;;  %v3764_v45 = vshll.u32 %v10724_v43, 16  ;;  %v3768_v56 = vshrl.u32 %v10724_v43, 16 }
 0x1fe   : > { %v12283_v49 = vadd.f32 %v2715_v61, %v2318_v50  ;;  %v9829_v38 = vpop.f32.mrf.mxu1  ;;  %v3774_v50 = vrot.slane %v3772_v16, 1  ;;  %v10726_v61 = vld [vmem:[%s11126_s15 + $0x3c] sm:$0xff]  }
 0x1ff   : > { %v2224_v11 = vpop.f32.mrf.mxu0  ;;  %9943 = vmatmul.mubr.bf16.gmra.mxu0 %v3096_v21 }
 0x200   : > { %v2720_v4 = vpop.f32.mrf.mxu1  ;;  %10019 = vmatmul.mubr.bf16.gmra.mxu1 %v8405_v54  ;;  %9946 = vmatprep.mubr.msk.bf16.mxu0 %vm11000_vm0, %v14116_v1 }
 0x201   : > { %v9756_v60 = vpop.f32.mrf.mxu0  ;;  %10022 = vmatprep.mubr.msk.bf16.mxu1 %vm11000_vm0, %v14116_v1  ;;  %v3776_v4 = vshrl.u32 %v10725_v32, 16 }
 0x202   : > { %v9832_v28 = vpop.f32.mrf.mxu1 }
 0x203   : > { %v2227_v62 = vpop.f32.mrf.mxu0 }
 0x204   : > { %v2320_v35 = vadd.f32 %v2227_v62, %v11995_v48  ;;  %v2723_v26 = vpop.f32.mrf.mxu1  ;;  %v3766_v48 = vrot.slane %v3764_v45, 1 }
 0x205   : > { %v9757_v23 = vpop.f32.mrf.mxu0 }
 0x206   : > { %v12294_v59 = vadd.f32 %v2723_v26, %v2320_v35  ;;  %v9833_v8 = vpop.f32.mrf.mxu1  ;;  %v3767_v15 = vsel %vm1177_vm2, %v3762_v5, %v3766_v48  ;;  %v3770_v52 = vor.u32 %v3768_v56, %v3766_v48  ;;  %v10727_v35 = vld [vmem:[%s11126_s15 + $0x44] sm:$0xff]  }
 0x207   : > { %v2232_v31 = vpop.f32.mrf.mxu0  ;;  %9947 = vmatmul.mubr.bf16.gmra.mxu0 %v3105_v0  ;;  %v3778_v0 = vor.u32 %v3776_v4, %v3774_v50  ;;  %v3784_v8 = vshrl.u32 %v10726_v61, 16 }
 0x208   : > { %v2321_v13 = vadd.f32 %v2232_v31, %v12008_v44  ;;  %v2728_v17 = vpop.f32.mrf.mxu1  ;;  %10023 = vmatmul.mubr.bf16.gmra.mxu1 %v8406_v7  ;;  %10042 = vmatprep.mubr.msk.bf16.mxu0 %vm11000_vm0, %v14116_v1  ;;  %v3775_v30 = vsel %vm1177_vm2, %v3770_v52, %v3774_v50  ;;  %v3788_v31 = vshll.u32 %v10727_v35, 16  ;;  %v10739_v52 = vld [vmem:[%s14112_s4 + $0x78] sm:$0xff]  }
 0x209   : > { %v9760_v14 = vpop.f32.mrf.mxu0  ;;  %10102 = vmatprep.subr.bf16.mxu1 %v10739_v52 }
 0x20a   : > { %v12300_v3 = vadd.f32 %v2728_v17, %v2321_v13  ;;  %v9836_v19 = vpop.f32.mrf.mxu1  ;;  %10103 = vmatpush3.bf16.msra.mxu1 %v10739_v52 }
 0x20b   : > { %v2235_v18 = vpop.f32.mrf.mxu0 }
 0x20c   : > { %v2731_v20 = vpop.f32.mrf.mxu1  ;;  %v3790_v18 = vrot.slane %v3788_v31, 1  ;;  %v10740_v31 = vld [vmem:[%s14112_s4 + $0x70] sm:$0xff]  }
 0x20d   : > { %v9761_v44 = vpop.f32.mrf.mxu0  ;;  %10104 = vmatprep.subr.bf16.mxu1 %v10740_v31 }
 0x20e   : > { %v9837_v47 = vpop.f32.mrf.mxu1  ;;  %10105 = vmatpush3.bf16.msra.mxu1 %v10740_v31 }
 0x20f   : > { %v2240_v33 = vpop.f32.mrf.mxu0  ;;  %10043 = vmatmul.mubr.bf16.vlgmr.msra.gmra.mxu0 %v3767_v15 }
 0x210   : > { %v2323_v37 = vadd.f32 %v2240_v33, %v12032_v22  ;;  %v2736_v36 = vpop.f32.mrf.mxu1  ;;  %10046 = vmatprep.mubr.msk.bf16.mxu0 %vm11000_vm0, %v14116_v1  ;;  %v3780_v22 = vshll.u32 %v10726_v61, 16  ;;  %v3792_v33 = vshrl.u32 %v10727_v35, 16 }
 0x211   : > { %v9764_v21 = vpop.f32.mrf.mxu0 }
 0x212   : > { %v12307_v54 = vadd.f32 %v2736_v36, %v2323_v37  ;;  %v9840_v29 = vpop.f32.mrf.mxu1  ;;  %v3782_v7 = vrot.slane %v3780_v22, 1 }
 0x213   : > { %v2243_v42 = vpop.f32.mrf.mxu0  ;;  %v3794_v29 = vor.u32 %v3792_v33, %v3790_v18 }
 0x214   : > { %v2324_v38 = vadd.f32 %v2243_v42, %v12045_v34  ;;  %v2739_v11 = vpop.f32.mrf.mxu1  ;;  %v3783_v23 = vsel %vm1177_vm2, %v3778_v0, %v3782_v7  ;;  %v3786_v19 = vor.u32 %v3784_v8, %v3782_v7 }
 0x215   : > { %v9765_v43 = vpop.f32.mrf.mxu0 }
 0x216   : > { %v12311_v39 = vadd.f32 %v2739_v11, %v2324_v38  ;;  %v9841_v60 = vpop.f32.mrf.mxu1  ;;  %v3791_v47 = vsel %vm1177_vm2, %v3786_v19, %v3790_v18  ;;  %v10729_v38 = vld [vmem:[%s11126_s15 + $0x54] sm:$0xff]  }
 0x217   : > { %v2248_v28 = vpop.f32.mrf.mxu0  ;;  %10047 = vmatmul.mubr.bf16.gmra.mxu0 %v3775_v30 }
 0x218   : > { %v2744_v62 = vpop.f32.mrf.mxu1  ;;  %10050 = vmatprep.mubr.msk.bf16.mxu0 %vm11000_vm0, %v14116_v1 }
 0x219   : > { %v9768_v26 = vpop.f32.mrf.mxu0  ;;  %v3804_v62 = vshll.u32 %v10729_v38, 16 }
 0x21a   : > { %v9844_v34 = vpop.f32.mrf.mxu1 }
 0x21b   : > { %v2251_v57 = vpop.f32.mrf.mxu0 }
 0x21c   : > { %v2326_v58 = vadd.f32 %v2251_v57, %v12070_v12  ;;  %v2747_v45 = vpop.f32.mrf.mxu1  ;;  %v10728_v12 = vld [vmem:[%s11126_s15 + $0x4c] sm:$0xff]  }
 0x21d   : > { %v9769_v13 = vpop.f32.mrf.mxu0  ;;  %v3796_v37 = vshll.u32 %v10728_v12, 16  ;;  %v3800_v28 = vshrl.u32 %v10728_v12, 16 }
 0x21e   : > { %v12318_v17 = vadd.f32 %v2747_v45, %v2326_v58  ;;  %v9845_v5 = vpop.f32.mrf.mxu1  ;;  %v3806_v58 = vrot.slane %v3804_v62, 1  ;;  %v10730_v45 = vld [vmem:[%s11126_s15 + $0x5c] sm:$0xff]  }
 0x21f   : > { %v2256_v48 = vpop.f32.mrf.mxu0  ;;  %10051 = vmatmul.mubr.bf16.gmra.mxu0 %v3783_v23  ;;  %v3798_v42 = vrot.slane %v3796_v37, 1 }
 0x220   : > { %v2327_v32 = vadd.f32 %v2256_v48, %v12087_v9  ;;  %v2752_v14 = vpop.f32.mrf.mxu1  ;;  %10054 = vmatprep.mubr.msk.bf16.mxu0 %vm11000_vm0, %v14116_v1 }
 0x221   : > { %v9772_v20 = vpop.f32.mrf.mxu0  ;;  %v3802_v57 = vor.u32 %v3800_v28, %v3798_v42 }
 0x222   : > { %v12324_v15 = vadd.f32 %v2752_v14, %v2327_v32  ;;  %v9848_v56 = vpop.f32.mrf.mxu1  ;;  %v3808_v32 = vshrl.u32 %v10729_v38, 16  ;;  %v3812_v14 = vshll.u32 %v10730_v45, 16 }
 0x223   : > { %v2259_v16 = vpop.f32.mrf.mxu0  ;;  %v3807_v48 = vsel %vm1177_vm2, %v3802_v57, %v3806_v58  ;;  %v10741_v57 = vld [vmem:[%s14112_s4 + $0x68] sm:$0xff]  }
 0x224   : > { %v2755_v44 = vpop.f32.mrf.mxu1  ;;  %10106 = vmatprep.subr.bf16.mxu1 %v10741_v57 }
 0x225   : > { %v9773_v36 = vpop.f32.mrf.mxu0  ;;  %v3814_v44 = vrot.slane %v3812_v14, 1  ;;  %10107 = vmatpush3.bf16.msra.mxu1 %v10741_v57  ;;  %v10742_v57 = vld [vmem:[%s14112_s4 + $0x60] sm:$0xff]  }
 0x226   : > { %v9849_v9 = vpop.f32.mrf.mxu1  ;;  %10108 = vmatprep.subr.bf16.mxu1 %v10742_v57 }
 0x227   : > { %v2264_v50 = vpop.f32.mrf.mxu0  ;;  %10055 = vmatmul.mubr.bf16.gmra.mxu0 %v3791_v47  ;;  %v10731_v47 = vld [vmem:[%s11126_s15 + $0x64] sm:$0xff]  }
 0x228   : > { %v2329_v61 = vadd.f32 %v2264_v50, %v12113_v6  ;;  %v2760_v21 = vpop.f32.mrf.mxu1  ;;  %10058 = vmatprep.mubr.msk.bf16.mxu0 %vm11000_vm0, %v14116_v1  ;;  %v3799_v6 = vsel %vm1177_vm2, %v3794_v29, %v3798_v42 }
 0x229   : > { %v9776_v11 = vpop.f32.mrf.mxu0  ;;  %10109 = vmatpush3.bf16.msra.mxu1 %v10742_v57 }
 0x22a   : > { %v12334_v30 = vadd.f32 %v2760_v21, %v2329_v61  ;;  %v9852_v4 = vpop.f32.mrf.mxu1  ;;  %v3816_v61 = vshrl.u32 %v10730_v45, 16  ;;  %v3820_v21 = vshll.u32 %v10731_v47, 16 }
 0x22b   : > { %v2267_v22 = vpop.f32.mrf.mxu0 }
 0x22c   : > { %v2330_v43 = vadd.f32 %v2267_v22, %v12122_v24  ;;  %v2763_v60 = vpop.f32.mrf.mxu1  ;;  %v3818_v4 = vor.u32 %v3816_v61, %v3814_v44  ;;  %v3822_v22 = vrot.slane %v3820_v21, 1 }
 0x22d   : > { %v9777_v0 = vpop.f32.mrf.mxu0 }
 0x22e   : > { %v12338_v7 = vadd.f32 %v2763_v60, %v2330_v43  ;;  %v9853_v35 = vpop.f32.mrf.mxu1  ;;  %v10732_v43 = vld [vmem:[%s11126_s15 + $0x6c] sm:$0xff]  }
 0x22f   : > { %v2272_v26 = vpop.f32.mrf.mxu0  ;;  %10059 = vmatmul.mubr.bf16.gmra.mxu0 %v3799_v6 }
 0x230   : > { %v2768_v34 = vpop.f32.mrf.mxu1  ;;  %10062 = vmatprep.mubr.msk.bf16.mxu0 %vm11000_vm0, %v14116_v1  ;;  %v3823_v26 = vsel %vm1177_vm2, %v3818_v4, %v3822_v22 }
 0x231   : > { %v9780_v23 = vpop.f32.mrf.mxu0  ;;  %v3824_v34 = vshrl.u32 %v10731_v47, 16 }
 0x232   : > { %v9856_v24 = vpop.f32.mrf.mxu1 }
 0x233   : > { %v2275_v8 = vpop.f32.mrf.mxu0 }
 0x234   : > { %v2332_v13 = vadd.f32 %v2275_v8, %v12140_v40  ;;  %v2771_v5 = vpop.f32.mrf.mxu1  ;;  %v3810_v40 = vor.u32 %v3808_v32, %v3806_v58 }
 0x235   : > { %v9781_v19 = vpop.f32.mrf.mxu0 }
 0x236   : > { %v12348_v18 = vadd.f32 %v2771_v5, %v2332_v13  ;;  %v9857_v12 = vpop.f32.mrf.mxu1  ;;  %v3815_v50 = vsel %vm1177_vm2, %v3810_v40, %v3814_v44  ;;  %v10733_v13 = vld [vmem:[%s11126_s15 + $0x74] sm:$0xff]  }
 0x237   : > { %v2280_v20 = vpop.f32.mrf.mxu0  ;;  %10063 = vmatmul.mubr.bf16.gmra.mxu0 %v3807_v48 }
 0x238   : > { %v2333_v56 = vadd.f32 %v2280_v20, %v12153_v63  ;;  %v2776_v16 = vpop.f32.mrf.mxu1  ;;  %10066 = vmatprep.mubr.msk.bf16.mxu0 %vm11000_vm0, %v14116_v1  ;;  %v3832_v20 = vshrl.u32 %v10732_v43, 16 }
 0x239   : > { %v9784_v33 = vpop.f32.mrf.mxu0 }
 0x23a   : > { %v12354_v37 = vadd.f32 %v2776_v16, %v2333_v56  ;;  %v9860_v36 = vpop.f32.mrf.mxu1  ;;  %v3836_v56 = vshll.u32 %v10733_v13, 16 }
 0x23b   : > { %v2283_v9 = vpop.f32.mrf.mxu0 }
 0x23c   : > { %v2779_v52 = vpop.f32.mrf.mxu1 }
 0x23d   : > { %v9785_v29 = vpop.f32.mrf.mxu0  ;;  %v3838_v52 = vrot.slane %v3836_v56, 1 }
 0x23e   : > { %v9861_v63 = vpop.f32.mrf.mxu1 }
 0x23f   : > { %v2288_v42 = vpop.f32.mrf.mxu0  ;;  %10067 = vmatmul.mubr.bf16.gmra.mxu0 %v3815_v50 }
 0x240   : > { %v2335_v38 = vadd.f32 %v2288_v42, %v12171_v46  ;;  %v2784_v11 = vpop.f32.mrf.mxu1  ;;  %10070 = vmatprep.mubr.msk.bf16.mxu0 %vm11000_vm0, %v14116_v1  ;;  %v3828_v46 = vshll.u32 %v10732_v43, 16 }
 0x241   : > { %v9788_v60 = vpop.f32.mrf.mxu0 }
 0x242   : > { %v12361_v6 = vadd.f32 %v2784_v11, %v2335_v38  ;;  %v9864_v28 = vpop.f32.mrf.mxu1  ;;  %v3830_v31 = vrot.slane %v3828_v46, 1  ;;  %v3840_v38 = vshrl.u32 %v10733_v13, 16 }
 0x243   : > { %v2291_v62 = vpop.f32.mrf.mxu0 }
 0x244   : > { %v2336_v0 = vadd.f32 %v2291_v62, %v12179_v51  ;;  %v2787_v35 = vpop.f32.mrf.mxu1  ;;  %v3826_v51 = vor.u32 %v3824_v34, %v3822_v22  ;;  %v3834_v9 = vor.u32 %v3832_v20, %v3830_v31  ;;  %v3842_v28 = vor.u32 %v3840_v38, %v3838_v52 }
 0x245   : > { %v9789_v58 = vpop.f32.mrf.mxu0 }
 0x246   : > { %v12368_v45 = vadd.f32 %v2787_v35, %v2336_v0  ;;  %v9865_v23 = vpop.f32.mrf.mxu1  ;;  %v3831_v12 = vsel %vm1177_vm2, %v3826_v51, %v3830_v31  ;;  %v3839_v42 = vsel %vm1177_vm2, %v3834_v9, %v3838_v52  ;;  %v10735_v0 = vld [vmem:[%s11126_s15 + $0x84] sm:$0xff]   ;;  %v11001_v51 = vmov 0   ;;  %v10743_v9 = vld [vmem:[%s14112_s4 + $0x58] sm:$0xff]  }
 0x247   : > { %v2296_v24 = vpop.f32.mrf.mxu0  ;;  %10071 = vmatmul.mubr.bf16.gmra.mxu0 %v3823_v26  ;;  %4230 = vst [vmem:[#allocation2 + $0x8] sm:$0xf] %v11001_v51  ;;  %4231 = vst [vmem:[#allocation2 + $0x84] sm:$0xf] %v11001_v51  ;;  %10110 = vmatprep.subr.bf16.mxu1 %v10743_v9 }
 0x248   : > { %v2792_v8 = vpop.f32.mrf.mxu1  ;;  %10074 = vmatprep.mubr.msk.bf16.mxu0 %vm11000_vm0, %v14116_v1  ;;  %10111 = vmatpush3.bf16.msra.mxu1 %v10743_v9  ;;  %v10755_v9 = vld [vmem:[%s14112_s4 + $0xd8] sm:$0xff]  }
 0x249   : > { %v9792_v5 = vpop.f32.mrf.mxu0  ;;  %v3852_v8 = vshll.u32 %v10735_v0, 16 }
 0x24a   : > { %v9868_v48 = vpop.f32.mrf.mxu1 }
 0x24b   : > { %v2299_v32 = vpop.f32.mrf.mxu0 }
 0x24c   : > { %v2338_v14 = vadd.f32 %v2299_v32, %v12197_v10  ;;  %v2795_v19 = vpop.f32.mrf.mxu1  ;;  %v10734_v10 = vld [vmem:[%s11126_s15 + $0x7c] sm:$0xff]  }
 0x24d   : > { %v9793_v16 = vpop.f32.mrf.mxu0  ;;  %v3844_v11 = vshll.u32 %v10734_v10, 16  ;;  %v3848_v24 = vshrl.u32 %v10734_v10, 16 }
 0x24e   : > { %v12375_v40 = vadd.f32 %v2795_v19, %v2338_v14  ;;  %v9869_v44 = vpop.f32.mrf.mxu1  ;;  %v3854_v14 = vrot.slane %v3852_v8, 1  ;;  %v10736_v19 = vld [vmem:[%s11126_s15 + $0x8c] sm:$0xff]  }
 0x24f   : > { %v2304_v47 = vpop.f32.mrf.mxu0  ;;  %10075 = vmatmul.mubr.bf16.gmra.mxu0 %v3831_v12  ;;  %v3846_v62 = vrot.slane %v3844_v11, 1  ;;  %v10737_v11 = vld [vmem:[%s11126_s15 + $0x94] sm:$0xff]  }
 0x250   : > { %v2339_v33 = vadd.f32 %v2304_v47, %v12210_v25  ;;  %v2800_v36 = vpop.f32.mrf.mxu1  ;;  %10078 = vmatprep.mubr.msk.bf16.mxu0 %vm11000_vm0, %v14116_v1 }
 0x251   : > { %v9796_v50 = vpop.f32.mrf.mxu0 }
 0x252   : > { %v12381_v61 = vadd.f32 %v2800_v36, %v2339_v33  ;;  %v9872_v21 = vpop.f32.mrf.mxu1  ;;  %v3856_v33 = vshrl.u32 %v10735_v0, 16  ;;  %v3860_v36 = vshll.u32 %v10736_v19, 16  ;;  %v3864_v0 = vshrl.u32 %v10736_v19, 16 }
 0x253   : > { %v2307_v29 = vpop.f32.mrf.mxu0 }
 0x254   : > { %v2803_v63 = vpop.f32.mrf.mxu1  ;;  %v3862_v38 = vrot.slane %v3860_v36, 1 }
 0x255   : > { %v9797_v4 = vpop.f32.mrf.mxu0 }
 0x256   : > { %v9873_v25 = vpop.f32.mrf.mxu1  ;;  %v10745_v4 = vld [vmem:[%s14112_s4 + $0x50] sm:$0xff]   ;;  %v3866_v8 = vor.u32 %v3864_v0, %v3862_v38 }
 0x257   : > { %v3203_v22 = vpop.f32.mrf.mxu0  ;;  %10079 = vmatmul.mubr.bf16.gmra.mxu0 %v3839_v42  ;;  %v3858_v42 = vor.u32 %v3856_v33, %v3854_v14  ;;  %10112 = vmatprep.subr.bf16.mxu1 %v10745_v4 }
 0x258   : > { %v3322_v43 = vadd.f32 %v3203_v22, %v12228_v55  ;;  %v3481_v60 = vpop.f32.mrf.mxu1  ;;  %10082 = vmatprep.mubr.msk.bf16.mxu0 %vm11000_vm0, %v14116_v1  ;;  %v3847_v55 = vsel %vm1177_vm2, %v3842_v28, %v3846_v62  ;;  %10113 = vmatpush3.bf16.msra.mxu1 %v10745_v4 }
 0x259   : > { %v9892_v35 = vpop.f32.mrf.mxu0 }
 0x25a   : > { %v12388_v26 = vadd.f32 %v3481_v60, %v3322_v43  ;;  %v9968_v34 = vpop.f32.mrf.mxu1  ;;  %v3868_v35 = vshll.u32 %v10737_v11, 16 }
 0x25b   : > { %v3206_v46 = vpop.f32.mrf.mxu0  ;;  %v10751_v34 = vld [vmem:[%s14112_s4 + $0x48] sm:$0xff]  }
 0x25c   : > { %v3323_v58 = vadd.f32 %v3206_v46, %v12236_v41  ;;  %v3484_v23 = vpop.f32.mrf.mxu1  ;;  %v3850_v41 = vor.u32 %v3848_v24, %v3846_v62  ;;  %v3863_v62 = vsel %vm1177_vm2, %v3858_v42, %v3862_v38  ;;  %10114 = vmatprep.subr.bf16.mxu1 %v10751_v34  ;;  %v3870_v51 = vrot.slane %v3868_v35, 1 }
 0x25d   : > { %v9893_v31 = vpop.f32.mrf.mxu0  ;;  %10115 = vmatpush3.bf16.msra.mxu1 %v10751_v34 }
 0x25e   : > { %v12395_v13 = vadd.f32 %v3484_v23, %v3323_v58  ;;  %v9969_v5 = vpop.f32.mrf.mxu1  ;;  %v3855_v47 = vsel %vm1177_vm2, %v3850_v41, %v3854_v14  ;;  %v10752_v23 = vld [vmem:[%s14112_s4 + $0xe8] sm:$0xff]   ;;  %v10738_v31 = vld [vmem:[%s11126_s15 + $0x9c] ss:$0 sps:$4 sm:$0x11]  }
 0x25f   : > { %v3211_v48 = vpop.f32.mrf.mxu0  ;;  %10083 = vmatmul.mubr.bf16.gmra.mxu0 %v3847_v55  ;;  %v10753_v5 = vld [vmem:[%s14112_s4 + $0x40] sm:$0xff]  }
 0x260   : > { %v3489_v32 = vpop.f32.mrf.mxu1  ;;  %10086 = vmatprep.mubr.msk.bf16.mxu0 %vm11000_vm0, %v14116_v1  ;;  %10116 = vmatprep.subr.bf16.mxu1 %v10753_v5 }
 0x261   : > { %v9896_v12 = vpop.f32.mrf.mxu0  ;;  %10117 = vmatpush3.bf16.msra.mxu1 %v10753_v5 }
 0x262   : > { %v9972_v20 = vpop.f32.mrf.mxu1 }
 0x263   : > { %v3214_v56 = vpop.f32.mrf.mxu0  ;;  %v3871_v20 = vsel %vm1177_vm2, %v3866_v8, %v3870_v51 }
 0x264   : > { %v3325_v16 = vadd.f32 %v3214_v56, %v12254_v53  ;;  %v3492_v44 = vpop.f32.mrf.mxu1  ;;  %v10744_v53 = vld [vmem:[%s14112_s4 + $0xf8] sm:$0xff]   ;;  %v3872_v56 = vshrl.u32 %v10737_v11, 16 }
 0x265   : > { %v9897_v52 = vpop.f32.mrf.mxu0  ;;  %10222 = vmatprep.subr.bf16.mxu0 %v10744_v53 }
 0x266   : > { %v12405_v10 = vadd.f32 %v3492_v44, %v3325_v16  ;;  %v9973_v50 = vpop.f32.mrf.mxu1  ;;  %10223 = vmatpush3.bf16.msra.mxu0 %v10744_v53  ;;  %v3876_v16 = vshll.u32 %v10738_v31, 16 }
 0x267   : > { %v3219_v21 = vpop.f32.mrf.mxu0  ;;  %10087 = vmatmul.mubr.bf16.gmra.mxu0 %v3855_v47 }
 0x268   : > { %v3326_v29 = vadd.f32 %v3219_v21, %v12264_v2  ;;  %v3497_v63 = vpop.f32.mrf.mxu1  ;;  %10090 = vmatprep.mubr.msk.bf16.mxu0 %vm11000_vm0, %v14116_v1  ;;  %v10750_v2 = vld [vmem:[%s14112_s4 + $0xf0] sm:$0xff]   ;;  %v3878_v50 = vrot.slane %v3876_v16, 1 }
 0x269   : > { %v9900_v25 = vpop.f32.mrf.mxu0  ;;  %10224 = vmatprep.subr.bf16.mxu0 %v10750_v2 }
 0x26a   : > { %v12417_v22 = vadd.f32 %v3497_v63, %v3326_v29  ;;  %v9976_v43 = vpop.f32.mrf.mxu1  ;;  %10225 = vmatpush3.bf16.msra.mxu0 %v10750_v2  ;;  %v10756_v63 = vld [vmem:[%s14112_s4 + $0xd0] sm:$0xff]   ;;  %v10760_v2 = vld [vmem:[%s14112_s4 + $0xc8] sm:$0xff]  }
 0x26b   : > { %v3222_v60 = vpop.f32.mrf.mxu0  ;;  %10226 = vmatprep.subr.bf16.mxu0 %v10752_v23 }
 0x26c   : > { %v3500_v28 = vpop.f32.mrf.mxu1 }
 0x26d   : > { %v9901_v46 = vpop.f32.mrf.mxu0 }
 0x26e   : > { %v9977_v57 = vpop.f32.mrf.mxu1  ;;  %10227 = vmatpush3.bf16.msra.mxu0 %v10752_v23  ;;  %v10762_v46 = vld [vmem:[%s14112_s4 + $0xc0] sm:$0xff]  }
 0x26f   : > { %v3227_v58 = vpop.f32.mrf.mxu0  ;;  %10091 = vmatmul.mubr.bf16.gmra.mxu0 %v3863_v62 }
 0x270   : > { %v3328_v55 = vadd.f32 %v3227_v58, %v12276_v27  ;;  %v3505_v24 = vpop.f32.mrf.mxu1  ;;  %10094 = vmatprep.mubr.msk.bf16.mxu0 %vm11000_vm0, %v14116_v1  ;;  %v10754_v27 = vld [vmem:[%s14112_s4 + $0xe0] sm:$0xff]  }
 0x271   : > { %v9904_v48 = vpop.f32.mrf.mxu0  ;;  %10228 = vmatprep.subr.bf16.mxu0 %v10754_v27 }
 0x272   : > { %v12436_v32 = vadd.f32 %v3505_v24, %v3328_v55  ;;  %v9980_v41 = vpop.f32.mrf.mxu1  ;;  %10229 = vmatpush3.bf16.msra.mxu0 %v10754_v27 }
 0x273   : > { %v3230_v14 = vpop.f32.mrf.mxu0  ;;  %10230 = vmatprep.subr.bf16.mxu0 %v10755_v9 }
 0x274   : > { %v3329_v19 = vadd.f32 %v3230_v14, %v12283_v49  ;;  %v3508_v12 = vpop.f32.mrf.mxu1  ;;  %v3874_v49 = vor.u32 %v3872_v56, %v3870_v51 }
 0x275   : > { %v9905_v44 = vpop.f32.mrf.mxu0 }
 0x276   : > { %v12443_v47 = vadd.f32 %v3508_v12, %v3329_v19  ;;  %v9981_v33 = vpop.f32.mrf.mxu1  ;;  %10231 = vmatpush3.bf16.msra.mxu0 %v10755_v9  ;;  %v3879_v11 = vsel %vm1177_vm2, %v3874_v49, %v3878_v50 }
 0x277   : > { %v3235_v36 = vpop.f32.mrf.mxu0  ;;  %10095 = vmatmul.mubr.bf16.gmra.mxu0 %v3871_v20  ;;  %10232 = vmatprep.subr.bf16.mxu0 %v10756_v63 }
 0x278   : > { %v3513_v52 = vpop.f32.mrf.mxu1  ;;  %10098 = vmatprep.mubr.msk.bf16.mxu0 %vm11000_vm0, %v14116_v1 }
 0x279   : > { %v9908_v21 = vpop.f32.mrf.mxu0 }
 0x27a   : > { %v9984_v53 = vpop.f32.mrf.mxu1  ;;  %10233 = vmatpush3.bf16.msra.mxu0 %v10756_v63 }
 0x27b   : > { %v3238_v29 = vpop.f32.mrf.mxu0  ;;  %10234 = vmatprep.subr.bf16.mxu0 %v10760_v2 }
 0x27c   : > { %v3331_v42 = vadd.f32 %v3238_v29, %v12294_v59  ;;  %v3516_v38 = vpop.f32.mrf.mxu1 }
 0x27d   : > { %v9909_v4 = vpop.f32.mrf.mxu0 }
 0x27e   : > { %v12455_v25 = vadd.f32 %v3516_v38, %v3331_v42  ;;  %v9985_v43 = vpop.f32.mrf.mxu1  ;;  %10235 = vmatpush3.bf16.msra.mxu0 %v10760_v2 }
 0x27f   : > { %v3243_v60 = vpop.f32.mrf.mxu0  ;;  %10099 = vmatmul.mubr.bf16.gmra.mxu0 %v3879_v11  ;;  %10236 = vmatprep.subr.bf16.mxu0 %v10762_v46 }
 0x280   : > { %v3332_v28 = vadd.f32 %v3243_v60, %v12300_v3  ;;  %v3521_v62 = vpop.f32.mrf.mxu1 }
 0x281   : > { %v9912_v0 = vpop.f32.mrf.mxu0 }
 0x282   : > { %v12461_v59 = vadd.f32 %v3521_v62, %v3332_v28  ;;  %v9988_v35 = vpop.f32.mrf.mxu1  ;;  %10237 = vmatpush3.bf16.msra.mxu0 %v10762_v46 }
 0x283   : > { %v3246_v34 = vpop.f32.mrf.mxu0 }
 0x284   : > { %v3524_v57 = vpop.f32.mrf.mxu1 }
 0x285   : > { %v9913_v58 = vpop.f32.mrf.mxu0 }
 0x286   : > { %v9989_v23 = vpop.f32.mrf.mxu1  ;;  %v12487_v58 = vld [vmem:[%s14112_s4 + $0x38] sm:$0xff]  }
 0x287   : > { %v3251_v55 = vpop.f32.mrf.mxu0  ;;  %10142 = vmatprep.subr.bf16.mxu1 %v12487_v58 }
 0x288   : > { %v3334_v3 = vadd.f32 %v3251_v55, %v12307_v54  ;;  %v3529_v24 = vpop.f32.mrf.mxu1 }
 0x289   : > { %v9916_v8 = vpop.f32.mrf.mxu0 }
 0x28a   : > { %v12467_v51 = vadd.f32 %v3529_v24, %v3334_v3  ;;  %v9992_v31 = vpop.f32.mrf.mxu1 }
 0x28b   : > { %v3254_v5 = vpop.f32.mrf.mxu0 }
 0x28c   : > { %v3335_v48 = vadd.f32 %v3254_v5, %v12311_v39  ;;  %v3532_v41 = vpop.f32.mrf.mxu1 }
 0x28d   : > { %v9917_v14 = vpop.f32.mrf.mxu0 }
 0x28e   : > { %v12470_v27 = vadd.f32 %v3532_v41, %v3335_v48  ;;  %v9993_v19 = vpop.f32.mrf.mxu1 }
 0x28f   : > { %v3259_v12 = vpop.f32.mrf.mxu0 }
 0x290   : > { %v3537_v20 = vpop.f32.mrf.mxu1 }
 0x291   : > { %v9920_v56 = vpop.f32.mrf.mxu0 }
 0x292   : > { %v9996_v16 = vpop.f32.mrf.mxu1 }
 0x293   : > { %v3262_v44 = vpop.f32.mrf.mxu0 }
 0x294   : > { %v3337_v54 = vadd.f32 %v3262_v44, %v12318_v17  ;;  %v3540_v33 = vpop.f32.mrf.mxu1 }
 0x295   : > { %v9921_v36 = vpop.f32.mrf.mxu0 }
 0x296   : > { %v12473_v9 = vadd.f32 %v3540_v33, %v3337_v54  ;;  %v9997_v52 = vpop.f32.mrf.mxu1 }
 0x297   : > { %v3267_v49 = vpop.f32.mrf.mxu0 }
 0x298   : > { %v3338_v39 = vadd.f32 %v3267_v49, %v12324_v15  ;;  %v3545_v50 = vpop.f32.mrf.mxu1 }
 0x299   : > { %v9924_v21 = vpop.f32.mrf.mxu0 }
 0x29a   : > { %v12476_v53 = vadd.f32 %v3545_v50, %v3338_v39  ;;  %v10000_v29 = vpop.f32.mrf.mxu1 }
 0x29b   : > { %v3270_v63 = vpop.f32.mrf.mxu0 }
 0x29c   : > { %v3548_v42 = vpop.f32.mrf.mxu1  ;;  %v12503_v63 = vld [vmem:[%s14112_s4 + $0x178] sm:$0xff]  }
 0x29d   : > { %v9925_v38 = vpop.f32.mrf.mxu0  ;;  %10302 = vmatprep.subr.bf16.mxu0 %v12503_v63 }
 0x29e   : > { %v10001_v11 = vpop.f32.mrf.mxu1 }
 0x29f   : > { %v3275_v4 = vpop.f32.mrf.mxu0 }
 0x2a0   : > { %v3340_v17 = vadd.f32 %v3275_v4, %v12334_v30  ;;  %v3553_v43 = vpop.f32.mrf.mxu1 }
 0x2a1   : > { %v9928_v60 = vpop.f32.mrf.mxu0 }
 0x2a2   : > { %v12479_v2 = vadd.f32 %v3553_v43, %v3340_v17  ;;  %v10004_v28 = vpop.f32.mrf.mxu1 }
 0x2a3   : > { %v3278_v62 = vpop.f32.mrf.mxu0 }
 0x2a4   : > { %v3341_v15 = vadd.f32 %v3278_v62, %v12338_v7  ;;  %v3556_v0 = vpop.f32.mrf.mxu1 }
 0x2a5   : > { %v9929_v35 = vpop.f32.mrf.mxu0 }
 0x2a6   : > { %v12482_v34 = vadd.f32 %v3556_v0, %v3341_v15  ;;  %v10005_v46 = vpop.f32.mrf.mxu1 }
 0x2a7   : > { %v3283_v57 = vpop.f32.mrf.mxu0 }
 0x2a8   : > { %v3561_v30 = vpop.f32.mrf.mxu1 }
 0x2a9   : > { %v9932_v23 = vpop.f32.mrf.mxu0 }
 0x2aa   : > { %v10008_v55 = vpop.f32.mrf.mxu1 }
 0x2ab   : > { %v3286_v3 = vpop.f32.mrf.mxu0 }
 0x2ac   : > { %v3343_v24 = vadd.f32 %v3286_v3, %v12348_v18  ;;  %v3564_v7 = vpop.f32.mrf.mxu1 }
 0x2ad   : > { %v9933_v8 = vpop.f32.mrf.mxu0 }
 0x2ae   : > { %v12491_v31 = vadd.f32 %v3564_v7, %v3343_v24  ;;  %v10009_v5 = vpop.f32.mrf.mxu1 }
 0x2af   : > { %v3291_v48 = vpop.f32.mrf.mxu0  ;;  %v12520_v5 = vstv %s8458_s11 }
 0x2b0   : > { %v3344_v41 = vadd.f32 %v3291_v48, %v12354_v37  ;;  %v3569_v14 = vpop.f32.mrf.mxu1  ;;  %v12526_v48 = vld [vmem:[%s14111_s3] ss:$0 sm:$0xff]  ;;  %vm4253_vm3 = vcmp.ge.s32.totalorder %v12520_v5, 0  ;;  %vm4293_vm4 = vcmp.lt.s32.totalorder %v12520_v5, 16 }
 0x2b1   : > { %v9936_v19 = vpop.f32.mrf.mxu0  ;;  %vm4303_vm5 = vmand %vm4253_vm3, %vm4293_vm4 }
 0x2b2   : > { %v12494_v12 = vadd.f32 %v3569_v14, %v3344_v41  ;;  %v10012_v20 = vpop.f32.mrf.mxu1 }
 0x2b3   : > { %v3294_v56 = vpop.f32.mrf.mxu0 }
 0x2b4   : > { %v3572_v16 = vpop.f32.mrf.mxu1 }
 0x2b5   : > { %v9937_v44 = vpop.f32.mrf.mxu0 }
 0x2b6   : > { %v10013_v54 = vpop.f32.mrf.mxu1 }
 0x2b7   : > { %v3299_v33 = vpop.f32.mrf.mxu0 }
 0x2b8   : > { %v3346_v18 = vadd.f32 %v3299_v33, %v12361_v6  ;;  %v3577_v36 = vpop.f32.mrf.mxu1 }
 0x2b9   : > { %v9940_v52 = vpop.f32.mrf.mxu0 }
 0x2ba   : > { %v12497_v49 = vadd.f32 %v3577_v36, %v3346_v18  ;;  %v10016_v39 = vpop.f32.mrf.mxu1 }
 0x2bb   : > { %v3302_v50 = vpop.f32.mrf.mxu0 }
 0x2bc   : > { %v3347_v37 = vadd.f32 %v3302_v50, %v12368_v45  ;;  %v3580_v21 = vpop.f32.mrf.mxu1 }
 0x2bd   : > { %v9941_v29 = vpop.f32.mrf.mxu0 }
 0x2be   : > { %v12505_v42 = vadd.f32 %v3580_v21, %v3347_v37  ;;  %v10017_v38 = vpop.f32.mrf.mxu1 }
 0x2bf   : > { %v3307_v6 = vpop.f32.mrf.mxu0 }
 0x2c0   : > { %v3585_v11 = vpop.f32.mrf.mxu1  ;;  %v4241_v6 = vadd.s32 1, %v12520_v5 }
 0x2c1   : > { %v9944_v4 = vpop.f32.mrf.mxu0 }
 0x2c2   : > { %v10020_v17 = vpop.f32.mrf.mxu1  ;;  %vm4254_vm6 = vcmp.ge.s32.totalorder %v4241_v6, 0  ;;  %vm4294_vm7 = vcmp.lt.s32.totalorder %v4241_v6, 16 }
 0x2c3   : > { %v3310_v43 = vpop.f32.mrf.mxu0  ;;  %vm4306_vm8 = vmand %vm4254_vm6, %vm4294_vm7 }
 0x2c4   : > { %v3349_v45 = vadd.f32 %v3310_v43, %v12375_v40  ;;  %v3588_v60 = vpop.f32.mrf.mxu1  ;;  %v12518_v40 = vld [vmem:[%s14110_s2] ss:$0 sm:$0xff]  ;;  %v4575_v43 = vld [vmem:[#allocation2 + $0x8] sm:$0x8] }
 0x2c5   : > { %v9945_v28 = vpop.f32.mrf.mxu0 }
 0x2c6   : > { %v12509_v62 = vadd.f32 %v3588_v60, %v3349_v45  ;;  %v10021_v15 = vpop.f32.mrf.mxu1 }
 0x2c7   : > { %v3315_v0 = vpop.f32.mrf.mxu0 }
 0x2c8   : > { %v3350_v35 = vadd.f32 %v3315_v0, %v12381_v61  ;;  %v3593_v46 = vpop.f32.mrf.mxu1 }
 0x2c9   : > { %v9948_v57 = vpop.f32.mrf.mxu0 }
 0x2ca   : > { %v12513_v30 = vadd.f32 %v3593_v46, %v3350_v35  ;;  %v10024_v23 = vpop.f32.mrf.mxu1 }
 0x2cb   : > { %v3318_v55 = vpop.f32.mrf.mxu0 }
 0x2cc   : > { %v3596_v3 = vpop.f32.mrf.mxu1 }
 0x2cd   : > { %v9949_v24 = vpop.f32.mrf.mxu0  ;;  %v4242_v3 = vadd.s32 2, %v12520_v5 }
 0x2ce   : > { %v10025_v7 = vpop.f32.mrf.mxu1 }
 0x2cf   : > { %v3977_v8 = vpop.f32.mrf.mxu0  ;;  %vm4255_vm9 = vcmp.ge.s32.totalorder %v4242_v3, 0  ;;  %vm4295_vm10 = vcmp.lt.s32.totalorder %v4242_v3, 16 }
 0x2d0   : > { %v4096_v61 = vadd.f32 %v3977_v8, %v12388_v26  ;;  %vm12548_vm11 = vmand %vm4255_vm9, %vm4295_vm10 }
 0x2d1   : > { %v10044_v41 = vpop.f32.mrf.mxu0 }
 0x2d2   : > { %v4132_v14 = vmul.f32 %v12518_v40, %v4096_v61 }
 0x2d3   : > { %v3980_v19 = vpop.f32.mrf.mxu0 }
 0x2d4   : > { %v4168_v20 = vadd.f32 %v12526_v48, %v4132_v14  ;;  %v4097_v56 = vadd.f32 %v3980_v19, %v12395_v13 }
 0x2d5   : > { %v10045_v16 = vpop.f32.mrf.mxu0 }
 0x2d6   : > { %v4198_v26 = vmax.f32 %v4168_v20, 0.0  ;;  %v4133_v44 = vmul.f32 %v12518_v40, %v4097_v56 }
 0x2d7   : > { %v3985_v54 = vpop.f32.mrf.mxu0 }
 0x2d8   : > { %v4393_v33 = vsel %vm4303_vm5, %v4198_v26, 0.0  ;;  %v4169_v18 = vadd.f32 %v12526_v48, %v4133_v44 }
 0x2d9   : > { %v8831_v36 = vpack.c.bf16 %v4393_v33, %v4393_v33  ;;  %v10048_v52 = vpop.f32.mrf.mxu0 }
 0x2da   : > { %v4199_v39 = vmax.f32 %v4169_v18, 0.0 }
 0x2db   : > { %4543 = vst [vmem:[#allocation2 + $0xc] sm:$0xf] %v8831_v36  ;;  %v3988_v50 = vpop.f32.mrf.mxu0 }
 0x2dc   : > { %v4394_v37 = vsel %vm4303_vm5, %v4199_v39, 0.0  ;;  %v4099_v21 = vadd.f32 %v3988_v50, %v12405_v10 }
 0x2dd   : > { %v8887_v29 = vpack.c.bf16 %v14116_v1, %v4394_v37  ;;  %v10049_v13 = vpop.f32.mrf.mxu0 }
 0x2de   : > { %v4135_v38 = vmul.f32 %v12518_v40, %v4099_v21 }
 0x2df   : > { %9006 = vst [vmem:[#allocation2 + $0x10] sm:$0xff] %v8887_v29   ;;  %v3993_v11 = vpop.f32.mrf.mxu0 }
 0x2e0   : > { %v4171_v4 = vadd.f32 %v12526_v48, %v4135_v38  ;;  %v4100_v17 = vadd.f32 %v3993_v11, %v12417_v22 }
 0x2e1   : > { %v10052_v45 = vpop.f32.mrf.mxu0 }
 0x2e2   : > { %v4136_v60 = vmul.f32 %v12518_v40, %v4100_v17  ;;  %v4576_v10 = vld [vmem:[#allocation2 + $0xc] sm:$0xf]  ;;  %v4201_v0 = vmax.f32 %v4171_v4, 0.0  ;;  %v4243_v45 = vadd.s32 3, %v12520_v5 }
 0x2e3   : > { %v3996_v28 = vpop.f32.mrf.mxu0  ;;  %v8525_v15 = vcombine.low %v4575_v43, %v4576_v10 }
 0x2e4   : > { %v4172_v35 = vadd.f32 %v12526_v48, %v4136_v60  ;;  %v4396_v41 = vsel %vm4306_vm8, %v4201_v0, 0.0  ;;  %vm4256_vm12 = vcmp.ge.s32.totalorder %v4243_v45, 0  ;;  %vm4296_vm13 = vcmp.lt.s32.totalorder %v4243_v45, 16 }
 0x2e5   : > { %v10053_v46 = vpop.f32.mrf.mxu0  ;;  %v4898_v57 = vshrl.u32 %v8525_v15, 16  ;;  %v4901_v23 = vshll.u32 %v8525_v15, 16  ;;  %v10778_v15 = vld [vmem:[%s14112_s4 + $0x30] sm:$0xff]   ;;  %vm12586_vm14 = vmand %vm4256_vm12, %vm4296_vm13 }
 0x2e6   : > { %v4202_v55 = vmax.f32 %v4172_v35, 0.0  ;;  %v4577_v22 = vld [vmem:[#allocation2 + $0x10] sm:$0xf]  ;;  %v4578_v24 = vld [vmem:[#allocation2 + $0x14] sm:$0xf] }
 0x2e7   : > { %v4001_v7 = vpop.f32.mrf.mxu0  ;;  %v8505_v8 = vcombine.low %v4576_v10, %v4577_v22  ;;  %v8526_v61 = vcombine.low %v4577_v22, %v4578_v24  ;;  %v4900_v20 = vrot.slane %v4898_v57, 3  ;;  %v4903_v54 = vrot.slane %v4901_v23, 4  ;;  %v5620_v57 = vld [vmem:[#allocation2 + $0x14] sm:$0x8] }
 0x2e8   : > { %v4397_v14 = vsel %vm4306_vm8, %v4202_v55, 0.0  ;;  %v4102_v19 = vadd.f32 %v4001_v7, %v12436_v32 }
 0x2e9   : > { %v8892_v56 = vpack.c.bf16 %v4397_v14, %v4396_v41  ;;  %v10056_v16 = vpop.f32.mrf.mxu0  ;;  %10118 = vmatprep.mubr.bf16.mxu1 %v8505_v8  ;;  %v4906_v26 = vshrl.u32 %v8526_v61, 16  ;;  %v4909_v44 = vshll.u32 %v8526_v61, 16  ;;  %v4904_v21 = vor.u32 %v4903_v54, %v4900_v20 }
 0x2ea   : > { %v4138_v33 = vmul.f32 %v12518_v40, %v4102_v19  ;;  %v12576_v14 = vadd.s32 4, %v12520_v5  ;;  %v10780_v16 = vld [vmem:[%s14112_s4 + $0x28] sm:$0xff]  }
 0x2eb   : > { %9007 = vst [vmem:[#allocation2 + $0x18] sm:$0xff] %v8892_v56   ;;  %v4004_v18 = vpop.f32.mrf.mxu0  ;;  %v4908_v36 = vrot.slane %v4906_v26, 3  ;;  %v4911_v52 = vrot.slane %v4909_v44, 4 }
 0x2ec   : > { %v4174_v39 = vadd.f32 %v12526_v48, %v4138_v33  ;;  %v4103_v50 = vadd.f32 %v4004_v18, %v12443_v47  ;;  %vm4257_vm15 = vcmp.ge.s32.totalorder %v12576_v14, 0  ;;  %vm4297_vm0 = vcmp.lt.s32.totalorder %v12576_v14, 16  ;;  %v10796_v14 = vld [vmem:[%s14112_s4 + $0x8] sm:$0xff]  }
 0x2ed   : > { %v10057_v37 = vpop.f32.mrf.mxu0  ;;  %v12552_v29 = vor.u32 %v4911_v52, %v4908_v36  ;;  %vm12639_vm3 = vmand %vm4257_vm15, %vm4297_vm0 }
 0x2ee   : > { %v4204_v13 = vmax.f32 %v4174_v39, 0.0  ;;  %v4139_v38 = vmul.f32 %v12518_v40, %v4103_v50 }
 0x2ef   : > { %v4009_v6 = vpop.f32.mrf.mxu0  ;;  %v12557_v11 = vsel %vm691_vm1, %v4904_v21, %v12552_v29 }
 0x2f0   : > { %v4399_v4 = vsel %vm12548_vm11, %v4204_v13, 0.0  ;;  %v4175_v47 = vadd.f32 %v12526_v48, %v4139_v38 }
 0x2f1   : > { %v8896_v17 = vpack.c.bf16 %v4399_v4, %v14116_v1  ;;  %v10060_v43 = vpop.f32.mrf.mxu0 }
 0x2f2   : > { %v4579_v60 = vld [vmem:[#allocation2 + $0x18] sm:$0xf]  ;;  %v4205_v10 = vmax.f32 %v4175_v47, 0.0  ;;  %v4580_v28 = vld [vmem:[#allocation2 + $0x1c] sm:$0xf] }
 0x2f3   : > { %9008 = vst [vmem:[#allocation2 + $0x20] sm:$0xff] %v8896_v17   ;;  %v8506_v0 = vcombine.low %v4578_v24, %v4579_v60  ;;  %v4012_v35 = vpop.f32.mrf.mxu0  ;;  %v8527_v46 = vcombine.low %v4579_v60, %v4580_v28  ;;  %v12567_v23 = vld [vmem:[#allocation2 + $0x18] sm:$0xf]  ;;  %v12578_v19 = vld [vmem:[#allocation2 + $0x1c] sm:$0xf] }
 0x2f4   : > { %14144 = vst [vmem:[#allocation3_spill] sm:$0xff] %v12567_v23  ;;  %v4400_v55 = vsel %vm12548_vm11, %v4205_v10, 0.0  ;;  %v4105_v3 = vadd.f32 %v4012_v35, %v12455_v25  ;;  %v8599_v22 = vcombine.low %v5620_v57, %v12567_v23  ;;  %14145 = vst [vmem:[#allocation4_spill] sm:$0xff] %v12578_v19 }
 0x2f5   : > { %v8900_v7 = vpack.c.bf16 %v14116_v1, %v4400_v55  ;;  %v10061_v8 = vpop.f32.mrf.mxu0  ;;  %10119 = vmatmul.mubr.bf16.vlgmr.msra.gmra.mxu1 %v8506_v0  ;;  %v4915_v61 = vshrl.u32 %v8527_v46, 16  ;;  %v4918_v41 = vshll.u32 %v8527_v46, 16 }
 0x2f6   : > { %v4141_v24 = vmul.f32 %v12518_v40, %v4105_v3  ;;  %10143 = vmatpush3.bf16.msra.mxu1 %v12487_v58  ;;  %v5726_v54 = vshrl.u32 %v8599_v22, 16  ;;  %v5729_v36 = vshll.u32 %v8599_v22, 16 }
 0x2f7   : > { %9009 = vst [vmem:[#allocation2 + $0x28] sm:$0xff] %v8900_v7   ;;  %v4017_v25 = vpop.f32.mrf.mxu0  ;;  %v4917_v20 = vrot.slane %v4915_v61, 3  ;;  %v4920_v56 = vrot.slane %v4918_v41, 4  ;;  %10144 = vmatprep.subr.bf16.mxu1 %v10778_v15  ;;  %v10788_v41 = vld [vmem:[%s14112_s4 + $0x18] sm:$0xff]  }
 0x2f8   : > { %v4177_v26 = vadd.f32 %v12526_v48, %v4141_v24  ;;  %v4106_v44 = vadd.f32 %v4017_v25, %v12461_v59  ;;  %v10785_v59 = vld [vmem:[%s14112_s4 + $0x20] sm:$0xff]   ;;  %v5728_v45 = vrot.slane %v5726_v54, 3  ;;  %v5731_v35 = vrot.slane %v5729_v36, 4 }
 0x2f9   : > { %v10064_v18 = vpop.f32.mrf.mxu0  ;;  %v12590_v58 = vor.u32 %v4920_v56, %v4917_v20 }
 0x2fa   : > { %v4207_v39 = vmax.f32 %v4177_v26, 0.0  ;;  %v4142_v50 = vmul.f32 %v12518_v40, %v4106_v44  ;;  %v4581_v32 = vld [vmem:[#allocation2 + $0x20] sm:$0xf]  ;;  %v4582_v37 = vld [vmem:[#allocation2 + $0x24] sm:$0xf]  ;;  %10145 = vmatpush3.bf16.msra.mxu1 %v10778_v15 }
 0x2fb   : > { %v4020_v21 = vpop.f32.mrf.mxu0  ;;  %v8507_v13 = vcombine.low %v4580_v28, %v4581_v32  ;;  %v8528_v38 = vcombine.low %v4581_v32, %v4582_v37  ;;  %v12600_v6 = vld [vmem:[#allocation2 + $0x20] sm:$0xf]  ;;  %v12602_v4 = vld [vmem:[#allocation2 + $0x24] sm:$0xf]  ;;  %10146 = vmatprep.subr.bf16.mxu1 %v10780_v16  ;;  %v12607_v47 = vsel %vm691_vm1, %v12552_v29, %v12590_v58 }
 0x2fc   : > { %14148 = vst [vmem:[#allocation5_spill] sm:$0xff] %v12600_v6  ;;  %14149 = vst [vmem:[#allocation6_spill] sm:$0xff] %v12602_v4  ;;  %v4178_v17 = vadd.f32 %v12526_v48, %v4142_v50  ;;  %v8600_v43 = vcombine.low %v12578_v19, %v12600_v6  ;;  %v4402_v10 = vsel %vm12586_vm14, %v4207_v39, 0.0  ;;  %v5732_v21 = vor.u32 %v5731_v35, %v5728_v45 }
 0x2fd   : > { %v10065_v28 = vpop.f32.mrf.mxu0  ;;  %10122 = vmatprep.mubr.bf16.mxu1 %v8507_v13  ;;  %v4924_v15 = vshrl.u32 %v8528_v38, 16  ;;  %v4927_v0 = vshll.u32 %v8528_v38, 16 }
 0x2fe   : > { %v4208_v46 = vmax.f32 %v4178_v17, 0.0  ;;  %v4583_v29 = vld [vmem:[#allocation2 + $0x28] sm:$0xf]  ;;  %v5734_v55 = vshrl.u32 %v8600_v43, 16  ;;  %10147 = vmatpush3.bf16.msra.mxu1 %v10780_v16  ;;  %v5737_v8 = vshll.u32 %v8600_v43, 16  ;;  %v10790_v17 = vld [vmem:[%s14112_s4 + $0x10] sm:$0xff]  }
 0x2ff   : > { %v12616_v57 = vld [vmem:[#allocation2 + $0x28] sm:$0xf]  ;;  %v4025_v3 = vpop.f32.mrf.mxu0  ;;  %v8508_v22 = vcombine.low %v4582_v37, %v4583_v29  ;;  %v12620_v61 = vld [vmem:[#allocation2 + $0x2c] sm:$0xf]  ;;  %10148 = vmatprep.subr.bf16.mxu1 %v10785_v59  ;;  %v4926_v24 = vrot.slane %v4924_v15, 3  ;;  %v4929_v37 = vrot.slane %v4927_v0, 4 }
 0x300   : > { %14150 = vst [vmem:[#allocation7_spill] sm:$0xff] %v12616_v57  ;;  %v8601_v7 = vcombine.low %v12602_v4, %v12616_v57  ;;  %v4403_v25 = vsel %vm12586_vm14, %v4208_v46, 0.0  ;;  %v4108_v20 = vadd.f32 %v4025_v3, %v12467_v51  ;;  %v5736_v56 = vrot.slane %v5734_v55, 3 }
 0x301   : > { %v8529_v16 = vcombine.low %v4583_v29, %v12620_v61  ;;  %v8905_v26 = vpack.c.bf16 %v4403_v25, %v4402_v10  ;;  %v10068_v44 = vpop.f32.mrf.mxu0  ;;  %10123 = vmatmul.mubr.bf16.gmra.mxu1 %v8508_v22  ;;  %v5739_v54 = vrot.slane %v5737_v8, 4  ;;  %v4930_v46 = vor.u32 %v4929_v37, %v4926_v24  ;;  %v6716_v22 = vld [vmem:[#allocation2 + $0x28] sm:$0xf] }
 0x302   : > { %v5743_v18 = vshrl.u32 %v8601_v7, 16  ;;  %v5746_v36 = vshll.u32 %v8601_v7, 16  ;;  %v4144_v39 = vmul.f32 %v12518_v40, %v4108_v20  ;;  %10149 = vmatpush3.bf16.msra.mxu1 %v10785_v59  ;;  %v12670_v44 = vadd.s32 5, %v12520_v5 }
 0x303   : > { %v4933_v50 = vshrl.u32 %v8529_v16, 16  ;;  %v4936_v32 = vshll.u32 %v8529_v16, 16  ;;  %9010 = vst [vmem:[#allocation2 + $0x30] sm:$0xff] %v8905_v26   ;;  %v4028_v33 = vpop.f32.mrf.mxu0  ;;  %v5740_v13 = vor.u32 %v5739_v54, %v5736_v56  ;;  %10150 = vmatprep.subr.bf16.mxu1 %v10788_v41  ;;  %v12659_v24 = vsel %vm691_vm1, %v12590_v58, %v4930_v46  ;;  %v10798_v58 = vld [vmem:[%s14112_s4 + $0x168] sm:$0xff]  }
 0x304   : > { %v5745_v51 = vrot.slane %v5743_v18, 3  ;;  %v5748_v38 = vrot.slane %v5746_v36, 4  ;;  %v4180_v43 = vadd.f32 %v12526_v48, %v4144_v39  ;;  %v4109_v10 = vadd.f32 %v4028_v33, %v12470_v27  ;;  %v10795_v27 = vld [vmem:[%s14112_s4 + $0x170] sm:$0xff]   ;;  %v10801_v39 = vld [vmem:[%s14112_s4] sm:$0xff]   ;;  %v12685_v33 = vld [vmem:[#allocation2 + $0x2c] sm:$0xf] }
 0x305   : > { %v4935_v28 = vrot.slane %v4933_v50, 3  ;;  %v4938_v15 = vrot.slane %v4936_v32, 4  ;;  %v5741_v45 = vsel %vm691_vm1, %v5732_v21, %v5740_v13  ;;  %v10069_v0 = vpop.f32.mrf.mxu0  ;;  %14153 = vst [vmem:[#allocation8_spill] sm:$0xff] %v12685_v33  ;;  %vm4258_vm4 = vcmp.ge.s32.totalorder %v12670_v44, 0 }
 0x306   : > { %v12644_v35 = vor.u32 %v5748_v38, %v5745_v51  ;;  %v4210_v29 = vmax.f32 %v4180_v43, 0.0  ;;  %v4145_v55 = vmul.f32 %v12518_v40, %v4109_v10  ;;  %10238 = vmatprep.mubr.bf16.mxu0 %v5741_v45  ;;  %10151 = vmatpush3.bf16.msra.mxu1 %v10788_v41  ;;  %v6717_v41 = vld [vmem:[#allocation2 + $0x2c] sm:$0xf]  ;;  %vm4298_vm5 = vcmp.lt.s32.totalorder %v12670_v44, 16  ;;  %v12704_v0 = vld [vmem:[%s14112_s4 + $0xb8] sm:$0xff]  }
 0x307   : > { %v12653_v3 = vor.u32 %v4938_v15, %v4935_v28  ;;  %v4033_v7 = vpop.f32.mrf.mxu0  ;;  %10152 = vmatprep.subr.bf16.mxu1 %v10790_v17  ;;  %v12681_v50 = vcombine.low %v6716_v22, %v6717_v41  ;;  %vm12729_vm6 = vmand %vm4258_vm4, %vm4298_vm5 }
 0x308   : > { %v5750_v8 = vsel %vm691_vm1, %v5740_v13, %v12644_v35  ;;  %v4405_v25 = vsel %vm12639_vm3, %v4210_v29, 0.0  ;;  %v4181_v20 = vadd.f32 %v12526_v48, %v4145_v55 }
 0x309   : > { %10239 = vmatmul.mubr.bf16.vlgmr.msra.gmra.mxu0 %v5750_v8  ;;  %v12666_v56 = vsel %vm691_vm1, %v4930_v46, %v12653_v3  ;;  %v8909_v16 = vpack.c.bf16 %v4405_v25, %v14116_v1  ;;  %v10072_v26 = vpop.f32.mrf.mxu0 }
 0x30a   : > { %10303 = vmatpush3.bf16.msra.mxu0 %v12503_v63  ;;  %v4211_v54 = vmax.f32 %v4181_v20, 0.0  ;;  %v4585_v18 = vld [vmem:[#allocation2 + $0x30] sm:$0xf]  ;;  %v12676_v36 = vld [vmem:[#allocation2 + $0x34] sm:$0xf]  ;;  %10153 = vmatpush3.bf16.msra.mxu1 %v10790_v17 }
 0x30b   : > { %10304 = vmatprep.subr.bf16.mxu0 %v10795_v27  ;;  %9011 = vst [vmem:[#allocation2 + $0x38] sm:$0xff] %v8909_v16   ;;  %v4036_v32 = vpop.f32.mrf.mxu0  ;;  %v8509_v63 = vcombine.low %v12620_v61, %v4585_v18  ;;  %v8530_v37 = vcombine.low %v4585_v18, %v12676_v36  ;;  %v12687_v21 = vld [vmem:[#allocation2 + $0x30] sm:$0xf]  ;;  %10154 = vmatprep.subr.bf16.mxu1 %v10796_v14  ;;  %v12708_v8 = vld [vmem:[#allocation2 + $0x34] sm:$0xf] }
 0x30c   : > { %14154 = vst [vmem:[#allocation9_spill] sm:$0xff] %v12687_v21  ;;  %v4406_v13 = vsel %vm12639_vm3, %v4211_v54, 0.0  ;;  %v4111_v51 = vadd.f32 %v4036_v32, %v12473_v9  ;;  %v8602_v38 = vcombine.low %v12685_v33, %v12687_v21  ;;  %v10802_v9 = vld [vmem:[%s14112_s4 + $0x160] sm:$0xff]   ;;  %14155 = vst [vmem:[#allocation10_spill] sm:$0xff] %v12708_v8  ;;  %v6718_v25 = vld [vmem:[#allocation2 + $0x30] sm:$0xf] }
 0x30d   : > { %v8913_v17 = vpack.c.bf16 %v14116_v1, %v4406_v13  ;;  %v10073_v43 = vpop.f32.mrf.mxu0  ;;  %10126 = vmatprep.mubr.bf16.mxu1 %v8509_v63  ;;  %v4942_v61 = vshrl.u32 %v8530_v37, 16  ;;  %v4945_v10 = vshll.u32 %v8530_v37, 16  ;;  %v6719_v18 = vld [vmem:[#allocation2 + $0x34] sm:$0xf] }
 0x30e   : > { %10305 = vmatpush3.bf16.msra.mxu0 %v10795_v27  ;;  %v4147_v28 = vmul.f32 %v12518_v40, %v4111_v51  ;;  %v5752_v15 = vshrl.u32 %v8602_v38, 16  ;;  %v5755_v45 = vshll.u32 %v8602_v38, 16  ;;  %10155 = vmatpush3.bf16.msra.mxu1 %v10796_v14 }
 0x30f   : > { %10306 = vmatprep.subr.bf16.mxu0 %v10798_v58  ;;  %9012 = vst [vmem:[#allocation2 + $0x40] sm:$0xff] %v8913_v17   ;;  %v4041_v59 = vpop.f32.mrf.mxu0  ;;  %10156 = vmatprep.subr.bf16.mxu1 %v10801_v39  ;;  %v4944_v46 = vrot.slane %v4942_v61, 3  ;;  %v4947_v29 = vrot.slane %v4945_v10, 4 }
 0x310   : > { %v4183_v55 = vadd.f32 %v12526_v48, %v4147_v28  ;;  %v4112_v27 = vadd.f32 %v4041_v59, %v12476_v53  ;;  %v5754_v14 = vrot.slane %v5752_v15, 3  ;;  %v5757_v22 = vrot.slane %v5755_v45, 4 }
 0x311   : > { %v10076_v7 = vpop.f32.mrf.mxu0  ;;  %v12710_v41 = vor.u32 %v4947_v29, %v4944_v46  ;;  %v12741_v59 = vcombine.low %v6718_v25, %v6719_v18 }
 0x312   : > { %10307 = vmatpush3.bf16.msra.mxu0 %v10798_v58  ;;  %v4148_v20 = vmul.f32 %v12518_v40, %v4112_v27  ;;  %v12713_v16 = vor.u32 %v5757_v22, %v5754_v14  ;;  %v4587_v26 = vld [vmem:[#allocation2 + $0x38] sm:$0xf]  ;;  %v4588_v54 = vld [vmem:[#allocation2 + $0x3c] sm:$0xf]  ;;  %10157 = vmatpush3.bf16.msra.mxu1 %v10801_v39  ;;  %v4213_v32 = vmax.f32 %v4183_v55, 0.0  ;;  %v10807_v22 = vld [vmem:[%s14112_s4 + $0x150] sm:$0xff]  }
 0x313   : > { %10308 = vmatprep.subr.bf16.mxu0 %v10802_v9  ;;  %v4044_v53 = vpop.f32.mrf.mxu0  ;;  %v8510_v63 = vcombine.low %v12676_v36, %v4587_v26  ;;  %v8531_v37 = vcombine.low %v4587_v26, %v4588_v54  ;;  %v5629_v13 = vld [vmem:[#allocation2 + $0x38] sm:$0xf]  ;;  %10182 = vmatprep.subr.bf16.mxu1 %v12704_v0  ;;  %v12723_v51 = vsel %vm691_vm1, %v12653_v3, %v12710_v41  ;;  %v4246_v3 = vadd.s32 6, %v12520_v5  ;;  %v5630_v45 = vld [vmem:[#allocation2 + $0x3c] sm:$0xf] }
 0x314   : > { %v10804_v58 = vld [vmem:[%s14112_s4 + $0x158] sm:$0xff]   ;;  %v4184_v36 = vadd.f32 %v12526_v48, %v4148_v20  ;;  %v5759_v38 = vsel %vm691_vm1, %v12644_v35, %v12713_v16  ;;  %v8603_v17 = vcombine.low %v12708_v8, %v5629_v13  ;;  %v4408_v35 = vsel %vm12729_vm6, %v4213_v32, 0.0 }
 0x315   : > { %10242 = vmatprep.mubr.bf16.mxu0 %v5759_v38  ;;  %v10077_v43 = vpop.f32.mrf.mxu0  ;;  %10127 = vmatmul.mubr.bf16.gmra.mxu1 %v8510_v63  ;;  %v4951_v61 = vshrl.u32 %v8531_v37, 16  ;;  %v4954_v10 = vshll.u32 %v8531_v37, 16  ;;  %vm4259_vm7 = vcmp.ge.s32.totalorder %v4246_v3, 0  ;;  %vm4299_vm8 = vcmp.lt.s32.totalorder %v4246_v3, 16 }
 0x316   : > { %v4214_v44 = vmax.f32 %v4184_v36, 0.0  ;;  %v12739_v28 = vld [vmem:[#allocation2 + $0x40] sm:$0xf]  ;;  %v5761_v15 = vshrl.u32 %v8603_v17, 16  ;;  %10309 = vmatpush3.bf16.msra.mxu0 %v10802_v9  ;;  %v5764_v20 = vshll.u32 %v8603_v17, 16  ;;  %vm12766_vm9 = vmand %vm4259_vm7, %vm4299_vm8  ;;  %v12801_v43 = vld [vmem:[#allocation2 + $0xc] sm:$0xff]  }
 0x317   : > { %v4049_v46 = vpop.f32.mrf.mxu0  ;;  %v8511_v29 = vcombine.low %v4588_v54, %v12739_v28  ;;  %v4953_v55 = vrot.slane %v4951_v61, 3  ;;  %v4956_v27 = vrot.slane %v4954_v10, 4  ;;  %v5631_v14 = vld [vmem:[#allocation2 + $0x40] sm:$0xf]  ;;  %10310 = vmatprep.subr.bf16.mxu0 %v10804_v58  ;;  %14160 = vst [vmem:[#allocation11_spill] sm:$0xff] %v12801_v43 }
 0x318   : > { %v4409_v7 = vsel %vm12729_vm6, %v4214_v44, 0.0  ;;  %v4114_v9 = vadd.f32 %v4049_v46, %v12479_v2  ;;  %v5763_v25 = vrot.slane %v5761_v15, 3  ;;  %v8604_v54 = vcombine.low %v5630_v45, %v5631_v14  ;;  %v10810_v2 = vld [vmem:[%s14112_s4 + $0x148] sm:$0xff]  }
 0x319   : > { %v8918_v26 = vpack.c.bf16 %v4409_v7, %v4408_v35  ;;  %v10080_v18 = vpop.f32.mrf.mxu0  ;;  %10130 = vmatprep.mubr.bf16.mxu1 %v8511_v29  ;;  %v5766_v53 = vrot.slane %v5764_v20, 4  ;;  %v12753_v63 = vor.u32 %v4956_v27, %v4953_v55  ;;  %v6720_v35 = vld [vmem:[#allocation2 + $0x38] sm:$0xf]  ;;  %v6721_v29 = vld [vmem:[#allocation2 + $0x3c] sm:$0xf] }
 0x31a   : > { %v4150_v32 = vmul.f32 %v12518_v40, %v4114_v9  ;;  %10311 = vmatpush3.bf16.msra.mxu0 %v10804_v58  ;;  %v5770_v13 = vshrl.u32 %v8604_v54, 16  ;;  %v5773_v39 = vshll.u32 %v8604_v54, 16  ;;  %v12780_v7 = vld [vmem:[#allocation2 + $0x44] sm:$0xf]  ;;  %v12785_v18 = vcombine.low %v6720_v35, %v6721_v29  ;;  %v6722_v35 = vld [vmem:[#allocation2 + $0x40] sm:$0xf] }
 0x31b   : > { %9013 = vst [vmem:[#allocation2 + $0x48] sm:$0xff] %v8918_v26   ;;  %v4052_v37 = vpop.f32.mrf.mxu0  ;;  %10312 = vmatprep.subr.bf16.mxu0 %v10807_v22  ;;  %v5767_v17 = vor.u32 %v5766_v53, %v5763_v25  ;;  %v12763_v58 = vsel %vm691_vm1, %v12710_v41, %v12753_v63  ;;  %v10813_v41 = vld [vmem:[%s14112_s4 + $0x140] sm:$0xff]  }
 0x31c   : > { %v4186_v36 = vadd.f32 %v12526_v48, %v4150_v32  ;;  %v4115_v38 = vadd.f32 %v4052_v37, %v12482_v34  ;;  %v5772_v10 = vrot.slane %v5770_v13, 3  ;;  %v5775_v44 = vrot.slane %v5773_v39, 4  ;;  %v5632_v9 = vld [vmem:[#allocation2 + $0x44] sm:$0xf]  ;;  %v12793_v13 = vld [vmem:[%s14112_s4 + $0x1f8] sm:$0xff]  }
 0x31d   : > { %v10081_v61 = vpop.f32.mrf.mxu0  ;;  %v5768_v34 = vsel %vm691_vm1, %v12713_v16, %v5767_v17  ;;  %v4247_v32 = vadd.s32 7, %v12520_v5 }
 0x31e   : > { %v4216_v15 = vmax.f32 %v4186_v36, 0.0  ;;  %v4151_v45 = vmul.f32 %v12518_v40, %v4115_v38  ;;  %10313 = vmatpush3.bf16.msra.mxu0 %v10807_v22  ;;  %v5776_v46 = vor.u32 %v5775_v44, %v5772_v10 }
 0x31f   : > { %10243 = vmatmul.mubr.bf16.gmra.mxu0 %v5768_v34  ;;  %v4057_v3 = vpop.f32.mrf.mxu0  ;;  %10314 = vmatprep.subr.bf16.mxu0 %v10810_v2  ;;  %vm4260_vm10 = vcmp.ge.s32.totalorder %v4247_v32, 0  ;;  %vm4300_vm11 = vcmp.lt.s32.totalorder %v4247_v32, 16 }
 0x320   : > { %v4411_v55 = vsel %vm12766_vm9, %v4216_v15, 0.0  ;;  %v4187_v27 = vadd.f32 %v12526_v48, %v4151_v45  ;;  %v5777_v16 = vsel %vm691_vm1, %v5767_v17, %v5776_v46  ;;  %v6723_v3 = vld [vmem:[#allocation2 + $0x44] sm:$0xf]  ;;  %vm12819_vm12 = vmand %vm4260_vm10, %vm4300_vm11 }
 0x321   : > { %v8922_v14 = vpack.c.bf16 %v4411_v55, %v14116_v1  ;;  %v10084_v22 = vpop.f32.mrf.mxu0  ;;  %10246 = vmatprep.mubr.bf16.mxu0 %v5777_v16 }
 0x322   : > { %v4217_v25 = vmax.f32 %v4187_v27, 0.0  ;;  %v12783_v20 = vld [vmem:[#allocation2 + $0x48] sm:$0xf]  ;;  %10315 = vmatpush3.bf16.msra.mxu0 %v10810_v2  ;;  %v12805_v27 = vld [vmem:[#allocation2 + $0x4c] sm:$0xf] }
 0x323   : > { %v5633_v26 = vld [vmem:[#allocation2 + $0x48] sm:$0xf]  ;;  %9014 = vst [vmem:[#allocation2 + $0x50] sm:$0xff] %v8922_v14   ;;  %v4060_v54 = vpop.f32.mrf.mxu0  ;;  %v8512_v53 = vcombine.low %v12780_v7, %v12783_v20  ;;  %10316 = vmatprep.subr.bf16.mxu0 %v10813_v41 }
 0x324   : > { %v8605_v37 = vcombine.low %v5632_v9, %v5633_v26  ;;  %v4412_v39 = vsel %vm12766_vm9, %v4217_v25, 0.0  ;;  %v4117_v2 = vadd.f32 %v4060_v54, %v12491_v31  ;;  %v6724_v22 = vld [vmem:[#allocation2 + $0x48] sm:$0xf]  ;;  %v6725_v9 = vld [vmem:[#allocation2 + $0x4c] sm:$0xf] }
 0x325   : > { %v8926_v36 = vpack.c.bf16 %v14116_v1, %v4412_v39  ;;  %v10085_v38 = vpop.f32.mrf.mxu0  ;;  %10131 = vmatmul.mubr.bf16.gmra.mxu1 %v8512_v53  ;;  %v12854_v39 = vadd.s32 9, %v12520_v5 }
 0x326   : > { %v5779_v17 = vshrl.u32 %v8605_v37, 16  ;;  %v5782_v61 = vshll.u32 %v8605_v37, 16  ;;  %v4153_v10 = vmul.f32 %v12518_v40, %v4117_v2  ;;  %10317 = vmatpush3.bf16.msra.mxu0 %v10813_v41  ;;  %v5634_v41 = vld [vmem:[#allocation2 + $0x4c] sm:$0xf]  ;;  %v12815_v37 = vcombine.low %v6722_v35, %v6723_v3 }
 0x327   : > { %9015 = vst [vmem:[#allocation2 + $0x58] sm:$0xff] %v8926_v36   ;;  %v4065_v44 = vpop.f32.mrf.mxu0  ;;  %10382 = vmatprep.subr.bf16.mxu0 %v12793_v13  ;;  %vm4262_vm0 = vcmp.ge.s32.totalorder %v12854_v39, 0  ;;  %vm4302_vm3 = vcmp.lt.s32.totalorder %v12854_v39, 16 }
 0x328   : > { %v5781_v15 = vrot.slane %v5779_v17, 3  ;;  %v5784_v45 = vrot.slane %v5782_v61, 4  ;;  %v4189_v31 = vadd.f32 %v12526_v48, %v4153_v10  ;;  %v4118_v34 = vadd.f32 %v4065_v44, %v12494_v12  ;;  %vm12960_vm4 = vmand %vm4262_vm0, %vm4302_vm3 }
 0x329   : > { %v10088_v29 = vpop.f32.mrf.mxu0  ;;  %v4248_v17 = vadd.s32 8, %v12520_v5  ;;  %v5310_v61 = vshll.u32 %v12801_v43, 16  ;;  %v12865_v5 = vld [vmem:[#allocation2 + $0x28] sm:$0xff]  }
 0x32a   : > { %v5785_v55 = vor.u32 %v5784_v45, %v5781_v15  ;;  %v4154_v14 = vmul.f32 %v12518_v40, %v4118_v34  ;;  %v12808_v16 = vld [vmem:[#allocation2 + $0x50] sm:$0xf]  ;;  %v4219_v25 = vmax.f32 %v4189_v31, 0.0  ;;  %v12831_v45 = vcombine.low %v6724_v22, %v6725_v9  ;;  %v12837_v3 = vld [vmem:[#allocation2 + $0x54] sm:$0xf] }
 0x32b   : > { %v4068_v26 = vpop.f32.mrf.mxu0  ;;  %v8513_v12 = vcombine.low %v12805_v27, %v12808_v16  ;;  %v12813_v53 = vld [vmem:[#allocation2 + $0x50] sm:$0xf]  ;;  %vm4261_vm13 = vcmp.ge.s32.totalorder %v4248_v17, 0  ;;  %vm4301_vm14 = vcmp.lt.s32.totalorder %v4248_v17, 16  ;;  %v6421_v57 = vshrl.u32 %v12865_v5, 16 }
 0x32c   : > { %v5786_v54 = vsel %vm691_vm1, %v5776_v46, %v5785_v55  ;;  %v4190_v2 = vadd.f32 %v12526_v48, %v4154_v14  ;;  %v8606_v36 = vcombine.low %v5634_v41, %v12813_v53  ;;  %v12825_v46 = vld [vmem:[#allocation2 + $0x54] sm:$0xf]  ;;  %v4414_v31 = vsel %vm12819_vm12, %v4219_v25, 0.0  ;;  %vm12871_vm15 = vmand %vm4261_vm13, %vm4301_vm14 }
 0x32d   : > { %10247 = vmatmul.mubr.bf16.gmra.mxu0 %v5786_v54  ;;  %v10089_v38 = vpop.f32.mrf.mxu0  ;;  %10134 = vmatprep.mubr.bf16.mxu1 %v8513_v12  ;;  %v12848_v54 = vld [vmem:[#allocation2 + $0x18] sm:$0xff]  }
 0x32e   : > { %v4220_v10 = vmax.f32 %v4190_v2, 0.0  ;;  %v12829_v44 = vld [vmem:[#allocation2 + $0x58] sm:$0xf]  ;;  %v5788_v32 = vshrl.u32 %v8606_v36, 16  ;;  %v5791_v15 = vshll.u32 %v8606_v36, 16  ;;  %v6402_v41 = vshrl.u32 %v12848_v54, 16 }
 0x32f   : > { %v4073_v34 = vpop.f32.mrf.mxu0  ;;  %v8514_v35 = vcombine.low %v12825_v46, %v12829_v44  ;;  %v12839_v29 = vld [vmem:[#allocation2 + $0x58] sm:$0xf]  ;;  %v6729_v17 = vld [vmem:[#allocation2 + $0x5c] sm:$0xf] }
 0x330   : > { %v4415_v22 = vsel %vm12819_vm12, %v4220_v10, 0.0  ;;  %v4120_v9 = vadd.f32 %v4073_v34, %v12497_v49  ;;  %v5790_v25 = vrot.slane %v5788_v32, 3  ;;  %v5793_v26 = vrot.slane %v5791_v15, 4  ;;  %v6728_v60 = vld [vmem:[#allocation2 + $0x58] sm:$0xf] }
 0x331   : > { %v8931_v12 = vpack.c.bf16 %v4415_v22, %v4414_v31  ;;  %v10092_v2 = vpop.f32.mrf.mxu0  ;;  %10135 = vmatmul.mubr.bf16.gmra.mxu1 %v8514_v35  ;;  %v8607_v36 = vcombine.low %v12837_v3, %v12839_v29  ;;  %v12857_v31 = vrot.slane %v5310_v61, 1 }
 0x332   : > { %v4156_v38 = vmul.f32 %v12518_v40, %v4120_v9  ;;  %v5794_v14 = vor.u32 %v5793_v26, %v5790_v25  ;;  %v12862_v9 = vld [vmem:[#allocation2 + $0x20] sm:$0xff]   ;;  %v6404_v25 = vshll.u32 %v12848_v54, 16  ;;  %v12867_v26 = vld [vmem:[#allocation2 + $0x14] sm:$0xff]  }
 0x333   : > { %9016 = vst [vmem:[#allocation2 + $0x60] sm:$0xff] %v8931_v12   ;;  %v4076_v49 = vpop.f32.mrf.mxu0  ;;  %v5797_v10 = vshrl.u32 %v8607_v36, 16  ;;  %v5800_v32 = vshll.u32 %v8607_v36, 16  ;;  %14163 = vst [vmem:[#allocation12_spill] sm:$0xff] %v12857_v31  ;;  %v6726_v36 = vld [vmem:[#allocation2 + $0x50] sm:$0xf] }
 0x334   : > { %v4192_v34 = vadd.f32 %v12526_v48, %v4156_v38  ;;  %v4121_v35 = vadd.f32 %v4076_v49, %v12505_v42  ;;  %v5795_v22 = vsel %vm691_vm1, %v5785_v55, %v5794_v14  ;;  %14164 = vst [vmem:[#allocation13_spill] sm:$0xff] %v12867_v26  ;;  %v6727_v55 = vld [vmem:[#allocation2 + $0x54] sm:$0xf]  ;;  %v6409_v54 = vshll.u32 %v12862_v9, 16  ;;  %v10937_v12 = vld [vmem:[%s14110_s2] ss:$0 sm:$0xff] }
 0x335   : > { %10250 = vmatprep.mubr.bf16.mxu0 %v5795_v22  ;;  %v10093_v61 = vpop.f32.mrf.mxu0  ;;  %v5799_v2 = vrot.slane %v5797_v10, 3  ;;  %v5802_v42 = vrot.slane %v5800_v32, 4  ;;  %v5315_v10 = vshll.u32 %v12867_v26, 16  ;;  %v14167_v32 = vmov 0.0  }
 0x336   : > { %v4222_v38 = vmax.f32 %v4192_v34, 0.0  ;;  %v4157_v49 = vmul.f32 %v12518_v40, %v4121_v35  ;;  %v6406_v61 = vrot.slane %v6404_v25, 1  ;;  %v12888_v35 = vld [vmem:[#allocation2 + $0x30] sm:$0xff]   ;;  %v6413_v33 = vshrl.u32 %v12862_v9, 16 }
 0x337   : > { %v4081_v52 = vpop.f32.mrf.mxu0  ;;  %v12877_v15 = vor.u32 %v5802_v42, %v5799_v2  ;;  %v12900_v42 = vcombine.low %v6728_v60, %v6729_v17  ;;  %v6411_v17 = vrot.slane %v6409_v54, 1  ;;  %v6425_v54 = vshll.u32 %v12888_v35, 16 }
 0x338   : > { %v4417_v1 = vsel %vm12871_vm15, %v4222_v38, 0.0  ;;  %v4193_v22 = vadd.f32 %v12526_v48, %v4157_v49  ;;  %v6417_v52 = vshll.u32 %v12865_v5, 16  ;;  %v12892_v48 = vld [vmem:[#allocation2 + $0x5c] sm:$0xf]  ;;  %v6407_v6 = vor.u32 %v6406_v61, %v6402_v41 }
 0x339   : > { %v8935_v8 = vpack.c.bf16 %v4417_v1, %v14167_v32  ;;  %v5804_v40 = vsel %vm691_vm1, %v5794_v14, %v12877_v15  ;;  %v10096_v34 = vpop.f32.mrf.mxu0  ;;  %v12896_v1 = vld [vmem:[#allocation2 + $0x38] sm:$0xff]   ;;  %v12898_v14 = vcombine.low %v6726_v36, %v6727_v55  ;;  %v12913_v55 = vrot.slane %v5315_v10, 1 }
 0x33a   : > { %v4223_v2 = vmax.f32 %v4193_v22, 0.0  ;;  %10251 = vmatmul.mubr.bf16.gmra.mxu0 %v5804_v40  ;;  %v12894_v25 = vld [vmem:[#allocation2 + $0x60] sm:$0xf]  ;;  %v12904_v22 = vld [vmem:[#allocation2 + $0x5c] sm:$0xf]  ;;  %v6419_v4 = vrot.slane %v6417_v52, 1  ;;  %v12923_v10 = vcombine.low %v12739_v28, %v12780_v7 }
 0x33b   : > { %9017 = vst [vmem:[#allocation2 + $0x68] sm:$0xff] %v8935_v8   ;;  %v4084_v38 = vpop.f32.mrf.mxu0  ;;  %v8515_v49 = vcombine.low %v12892_v48, %v12894_v25  ;;  %14168 = vst [vmem:[#allocation14_spill] sm:$0xff] %v12904_v22  ;;  %v12906_v40 = vld [vmem:[#allocation2 + $0x60] sm:$0xf]  ;;  %v6433_v5 = vshll.u32 %v12896_v1, 16 }
 0x33c   : > { %14169 = vst [vmem:[#allocation15_spill] sm:$0xff] %v12906_v40  ;;  %v4418_v34 = vsel %vm12871_vm15, %v4223_v2, 0.0  ;;  %v4123_v21 = vadd.f32 %v4084_v38, %v12509_v62  ;;  %v8608_v36 = vcombine.low %v12904_v22, %v12906_v40  ;;  %14170 = vst [vmem:[#allocation16_spill] sm:$0xff] %v12913_v55  ;;  %v12932_v28 = vld [vmem:[#allocation2 + $0x24] sm:$0xf]  ;;  %v14185_v40 = vshll.u32 %v12681_v50, 16 }
 0x33d   : > { %v8939_v60 = vpack.c.bf16 %v14167_v32, %v4418_v34  ;;  %v10097_v8 = vpop.f32.mrf.mxu0  ;;  %10138 = vmatprep.mubr.bf16.mxu1 %v8515_v49  ;;  %v10938_v49 = vld [vmem:[%s14111_s3] ss:$0 sm:$0xff]  ;;  %14171 = vst [vmem:[#allocation17_spill] sm:$0xff] %v12932_v28  ;;  %v12934_v7 = vld [vmem:[#allocation2 + $0x64] sm:$0xf] }
 0x33e   : > { %v4159_v2 = vmul.f32 %v10937_v12, %v4123_v21  ;;  %v5806_v62 = vshrl.u32 %v8608_v36, 16  ;;  %v5809_v38 = vshll.u32 %v8608_v36, 16  ;;  %v6714_v8 = vld [vmem:[#allocation2 + $0x20] sm:$0x8]  ;;  %v12951_v41 = vld [vmem:[#allocation2 + $0x64] sm:$0xf] }
 0x33f   : > { %9018 = vst [vmem:[#allocation2 + $0x70] sm:$0xff] %v8939_v60   ;;  %v4089_v32 = vpop.f32.mrf.mxu0  ;;  %v12936_v60 = vld [vmem:[#allocation2 + $0x64] sm:$0xf]  ;;  %14175 = vst [vmem:[#allocation21_spill] sm:$0xff] %v12951_v41  ;;  %v6833_v22 = vrot.slane %v14185_v40, 4 }
 0x340   : > { %v4195_v21 = vadd.f32 %v10938_v49, %v4159_v2  ;;  %v4124_v34 = vadd.f32 %v4089_v32, %v12513_v30  ;;  %v5808_v52 = vrot.slane %v5806_v62, 3  ;;  %v5811_v36 = vrot.slane %v5809_v38, 4  ;;  %14172 = vst [vmem:[#allocation18_spill] sm:$0xff] %v12936_v60  ;;  %v12942_v2 = vld [vmem:[#allocation2 + $0x60] sm:$0xf] }
 0x341   : > { %v10100_v9 = vpop.f32.mrf.mxu0  ;;  %14174 = vst [vmem:[#allocation20_spill] sm:$0xff] %v12942_v2  ;;  %v12949_v38 = vsel %vm1177_vm2, %v6407_v6, %v6411_v17  ;;  %v6415_v32 = vor.u32 %v6413_v33, %v6411_v17 }
 0x342   : > { %v4160_v19 = vmul.f32 %v10937_v12, %v4124_v34  ;;  %v5812_v23 = vor.u32 %v5811_v36, %v5808_v52  ;;  %v12938_v26 = vld [vmem:[#allocation2 + $0x68] sm:$0xf]  ;;  %v4960_v12 = vshrl.u32 %v12923_v10, 16  ;;  %v4225_v9 = vmax.f32 %v4195_v21, 0.0  ;;  %v12964_v17 = vld [vmem:[#allocation2 + $0x6c] sm:$0xf] }
 0x343   : > { %v12940_v55 = vld [vmem:[#allocation2 + $0x68] sm:$0xf]  ;;  %v8516_v30 = vcombine.low %v12934_v7, %v12938_v26  ;;  %v4092_v61 = vpop.f32.mrf.mxu0  ;;  %14178 = vst [vmem:[#allocation22_spill] sm:$0xff] %v12964_v17  ;;  %v12967_v21 = vsel %vm1177_vm2, %v6415_v32, %v6419_v4  ;;  %v8534_v36 = vcombine.low %v12808_v16, %v12825_v46  ;;  %v8536_v16 = vcombine.low %v12894_v25, %v12934_v7 }
 0x344   : > { %14173 = vst [vmem:[#allocation19_spill] sm:$0xff] %v12940_v55  ;;  %v8609_v62 = vcombine.low %v12936_v60, %v12940_v55  ;;  %v4196_v34 = vadd.f32 %v10938_v49, %v4160_v19  ;;  %v5813_v52 = vsel %vm691_vm1, %v12877_v15, %v5812_v23  ;;  %v12970_v19 = vcombine.low %v6714_v8, %v12932_v28 }
 0x345   : > { %10254 = vmatprep.mubr.bf16.mxu0 %v5813_v52  ;;  %10139 = vmatmul.mubr.bf16.gmra.mxu1 %v8516_v30  ;;  %v10101_v15 = vpop.f32.mrf.mxu0  ;;  %v4963_v49 = vshll.u32 %v12923_v10, 16  ;;  %v6423_v30 = vor.u32 %v6421_v57, %v6419_v4  ;;  %v6427_v57 = vrot.slane %v6425_v54, 1  ;;  %v6437_v46 = vshrl.u32 %v12896_v1, 16 }
 0x346   : > { %v5815_v6 = vshrl.u32 %v8609_v62, 16  ;;  %v5818_v33 = vshll.u32 %v8609_v62, 16  ;;  %v4226_v39 = vmax.f32 %v4196_v34, 0.0  ;;  %10158 = vmatprep.mubr.bf16.mxu1 %v12557_v11  ;;  %v12974_v61 = vld [vmem:[#allocation2 + $0x70] sm:$0xf]  ;;  %v12980_v62 = vcombine.low %v12942_v2, %v12951_v41  ;;  %v12992_v15 = vld [vmem:[#allocation2 + $0x40] sm:$0xff]  }
 0x347   : > { %14179 = vst [vmem:[#allocation23_spill] sm:$0xff] %v12974_v61  ;;  %v12976_v52 = vld [vmem:[#allocation2 + $0x74] sm:$0xf]  ;;  %v8610_v8 = vcombine.low %v12964_v17, %v12974_v61  ;;  %v8533_v11 = vcombine.low %v12783_v20, %v12805_v27  ;;  %v4420_v34 = vsel %vm12960_vm4, %v4225_v9, 0.0  ;;  %v4962_v61 = vrot.slane %v4960_v12, 3 }
 0x348   : > { %14180 = vst [vmem:[#allocation24_spill] sm:$0xff] %v12976_v52  ;;  %v5817_v32 = vrot.slane %v5815_v6, 3  ;;  %v5820_v31 = vrot.slane %v5818_v33, 4  ;;  %v8611_v10 = vcombine.low %v12976_v52, %v12976_v52  ;;  %v4421_v4 = vsel %vm12960_vm4, %v4226_v39, 0.0  ;;  %v10808_v9 = vld [vmem:[%s14112_s4 + $0xb0] sm:$0xff]  }
 0x349   : > { %v8944_v6 = vpack.c.bf16 %v4421_v4, %v4420_v34  ;;  %v5824_v41 = vshrl.u32 %v8610_v8, 16  ;;  %v5827_v2 = vshll.u32 %v8610_v8, 16  ;;  %v6435_v52 = vrot.slane %v6433_v5, 1  ;;  %v13006_v8 = vld [vmem:[#allocation2 + $0x48] sm:$0xff]  }
 0x34a   : > { %v5821_v33 = vor.u32 %v5820_v31, %v5817_v32  ;;  %v5833_v28 = vshrl.u32 %v8611_v10, 16  ;;  %v5836_v43 = vshll.u32 %v8611_v10, 16  ;;  %v4965_v54 = vrot.slane %v4963_v49, 4  ;;  %v13027_v10 = vld [vmem:[#allocation2 + $0x50] sm:$0xff]  }
 0x34b   : > { %9019 = vst [vmem:[#allocation2 + $0x78] sm:$0xff] %v8944_v6   ;;  %v5826_v27 = vrot.slane %v5824_v41, 3  ;;  %v5829_v55 = vrot.slane %v5827_v2, 4  ;;  %v6441_v32 = vshll.u32 %v12992_v15, 16  ;;  %v4969_v12 = vshrl.u32 %v8533_v11, 16 }
 0x34c   : > { %v5822_v20 = vsel %vm691_vm1, %v5812_v23, %v5821_v33  ;;  %v5835_v31 = vrot.slane %v5833_v28, 3  ;;  %v5838_v39 = vrot.slane %v5836_v43, 4  ;;  %v8535_v5 = vcombine.low %v12829_v44, %v12892_v48  ;;  %v10814_v43 = vld [vmem:[%s14112_s4 + $0xa8] sm:$0xff]  }
 0x34d   : > { %10255 = vmatmul.mubr.bf16.gmra.mxu0 %v5822_v20  ;;  %10159 = vmatmul.mubr.bf16.vlgmr.msra.gmra.mxu1 %v12607_v47  ;;  %v5830_v23 = vor.u32 %v5829_v55, %v5826_v27  ;;  %v14181_v2 = vshrl.u32 %v12888_v35, 16  ;;  %v4972_v49 = vshll.u32 %v8533_v11, 16  ;;  %v13016_v47 = vsel %vm1177_vm2, %v6423_v30, %v6427_v57 }
 0x34e   : > { %10162 = vmatprep.mubr.bf16.mxu1 %v12659_v24  ;;  %10183 = vmatpush3.bf16.msra.mxu1 %v12704_v0  ;;  %v5839_v35 = vor.u32 %v5838_v39, %v5835_v31  ;;  %v4966_v48 = vor.u32 %v4965_v54, %v4962_v61  ;;  %v13023_v24 = vld [vmem:[#allocation2 + $0x68] sm:$0xf]  ;;  %v13025_v0 = vld [vmem:[#allocation2 + $0x6c] sm:$0xf]  ;;  %v4978_v55 = vshrl.u32 %v8534_v36, 16  ;;  %v4981_v28 = vshll.u32 %v8534_v36, 16 }
 0x34f   : > { %v6431_v41 = vor.u32 %v14181_v2, %v6427_v57  ;;  %v5831_v44 = vsel %vm691_vm1, %v5821_v33, %v5830_v23  ;;  %10184 = vmatprep.subr.bf16.mxu1 %v10808_v9  ;;  %v6439_v7 = vor.u32 %v6437_v46, %v6435_v52  ;;  %v6443_v30 = vrot.slane %v6441_v32, 1  ;;  %v10817_v54 = vld [vmem:[%s14112_s4 + $0xa0] sm:$0xff]   ;;  %v13044_v32 = vld [vmem:[#allocation2 + $0x58] sm:$0xff]  }
 0x350   : > { %10258 = vmatprep.mubr.bf16.mxu0 %v5831_v44  ;;  %v4971_v1 = vrot.slane %v4969_v12, 3  ;;  %v4987_v11 = vshrl.u32 %v8535_v5, 16  ;;  %v4990_v34 = vshll.u32 %v8535_v5, 16  ;;  %v6449_v4 = vshll.u32 %v13006_v8, 16  ;;  %v10819_v46 = vld [vmem:[%s14112_s4 + $0x98] sm:$0xff]  }
 0x351   : > { %v13021_v25 = vsel %vm1177_vm2, %v6431_v41, %v6435_v52  ;;  %v4974_v61 = vrot.slane %v4972_v49, 4  ;;  %v4996_v57 = vshrl.u32 %v8536_v16, 16  ;;  %v4999_v6 = vshll.u32 %v8536_v16, 16 }
 0x352   : > { %10185 = vmatpush3.bf16.msra.mxu1 %v10808_v9  ;;  %v13032_v33 = vcombine.low %v13023_v24, %v13025_v0  ;;  %v8537_v20 = vcombine.low %v12938_v26, %v12938_v26  ;;  %v5840_v52 = vsel %vm691_vm1, %v5830_v23, %v5839_v35  ;;  %v4967_v27 = vsel %vm691_vm1, %v12753_v63, %v4966_v48  ;;  %v13046_v26 = vld [vmem:[#allocation2 + $0x60] sm:$0xff]  }
 0x353   : > { %10186 = vmatprep.subr.bf16.mxu1 %v10814_v43  ;;  %v6445_v36 = vshrl.u32 %v12992_v15, 16  ;;  %v4980_v9 = vrot.slane %v4978_v55, 3  ;;  %v4983_v31 = vrot.slane %v4981_v28, 4  ;;  %v6457_v39 = vshll.u32 %v13027_v10, 16 }
 0x354   : > { %v6820_v12 = vshrl.u32 %v12970_v19, 16  ;;  %v4989_v5 = vrot.slane %v4987_v11, 3  ;;  %v4992_v23 = vrot.slane %v4990_v34, 4  ;;  %v13052_v63 = vsel %vm1177_vm2, %v6439_v7, %v6443_v30 }
 0x355   : > { %10259 = vmatmul.mubr.bf16.gmra.mxu0 %v5840_v52  ;;  %10163 = vmatmul.mubr.bf16.gmra.mxu1 %v12666_v56  ;;  %v6451_v15 = vrot.slane %v6449_v4, 1  ;;  %v4975_v2 = vor.u32 %v4974_v61, %v4971_v1  ;;  %v6447_v41 = vor.u32 %v6445_v36, %v6443_v30  ;;  %v4998_v49 = vrot.slane %v4996_v57, 3  ;;  %v10821_v57 = vld [vmem:[%s14112_s4 + $0x90] sm:$0xff]  }
 0x356   : > { %10318 = vmatprep.mubr.bf16.mxu0 %v12949_v38  ;;  %10166 = vmatprep.mubr.bf16.mxu1 %v12723_v51  ;;  %v5001_v16 = vrot.slane %v4999_v6, 4  ;;  %v6453_v56 = vshrl.u32 %v13006_v8, 16  ;;  %v5005_v44 = vshrl.u32 %v8537_v20, 16  ;;  %v5008_v38 = vshll.u32 %v8537_v20, 16  ;;  %v10825_v6 = vld [vmem:[%s14112_s4 + $0x1f0] sm:$0xff]  }
 0x357   : > { %10187 = vmatpush3.bf16.msra.mxu1 %v10814_v43  ;;  %v6823_v35 = vshll.u32 %v12970_v19, 16  ;;  %v4984_v55 = vor.u32 %v4983_v31, %v4980_v9  ;;  %v6459_v28 = vrot.slane %v6457_v39, 1  ;;  %v6465_v51 = vshll.u32 %v13044_v32, 16  ;;  %v13096_v31 = vld [vmem:[#allocation2 + $0x70] sm:$0xf] }
 0x358   : > { %10188 = vmatprep.subr.bf16.mxu1 %v10817_v54  ;;  %v6473_v43 = vshll.u32 %v13046_v26, 16  ;;  %v13063_v7 = vsel %vm1177_vm2, %v6447_v41, %v6451_v15  ;;  %v4993_v30 = vor.u32 %v4992_v23, %v4989_v5  ;;  %v6837_v1 = vshrl.u32 %v12741_v59, 16  ;;  %v13098_v39 = vld [vmem:[#allocation2 + $0x74] sm:$0xf]  ;;  %v13109_v41 = vld [vmem:[#allocation2 + $0x7c] sm:$0xf] }
 0x359   : > { %v6840_v11 = vshll.u32 %v12741_v59, 16  ;;  %v13068_v8 = vsel %vm691_vm1, %v4966_v48, %v4975_v2  ;;  %v6455_v34 = vor.u32 %v6453_v56, %v6451_v15  ;;  %v13070_v4 = vor.u32 %v5001_v16, %v4998_v49  ;;  %v10826_v56 = vld [vmem:[%s14112_s4 + $0x88] sm:$0xff]  }
 0x35a   : > { %v6461_v61 = vshrl.u32 %v13027_v10, 16  ;;  %v13079_v20 = vrot.slane %v5005_v44, 3  ;;  %v13081_v59 = vrot.slane %v5008_v38, 4  ;;  %v6828_v52 = vshrl.u32 %v12681_v50, 16 }
 0x35b   : > { %10189 = vmatpush3.bf16.msra.mxu1 %v10817_v54  ;;  %v13087_v10 = vsel %vm691_vm1, %v4975_v2, %v4984_v55  ;;  %v13090_v54 = vsel %vm1177_vm2, %v6455_v34, %v6459_v28  ;;  %v13092_v36 = vrot.slane %v6465_v51, 1  ;;  %v13094_v9 = vrot.slane %v6473_v43, 1  ;;  %v13107_v2 = vld [vmem:[#allocation2 + $0x78] sm:$0xf] }
 0x35c   : > { %10190 = vmatprep.subr.bf16.mxu1 %v10819_v46  ;;  %v13105_v5 = vor.u32 %v6461_v61, %v6459_v28  ;;  %v6839_v23 = vrot.slane %v6837_v1, 3  ;;  %v6842_v15 = vrot.slane %v6840_v11, 4  ;;  %v13113_v49 = vsel %vm691_vm1, %v4993_v30, %v13070_v4  ;;  %v13142_v11 = vld [vmem:[#allocation2 + $0x34] sm:$0xff]  }
 0x35d   : > { %10319 = vmatmul.mubr.bf16.vlgmr.msra.gmra.mxu0 %v12967_v21  ;;  %10167 = vmatmul.mubr.bf16.gmra.mxu1 %v12763_v58  ;;  %v13103_v21 = vsel %vm691_vm1, %v4984_v55, %v4993_v30  ;;  %v6858_v16 = vshll.u32 %v12815_v37, 16  ;;  %v6873_v44 = vshrl.u32 %v12898_v14, 16  ;;  %v6876_v38 = vshll.u32 %v12898_v14, 16 }
 0x35e   : > { %10322 = vmatprep.mubr.bf16.mxu0 %v13016_v47  ;;  %10170 = vmatprep.mubr.bf16.mxu1 %v4967_v27  ;;  %v6855_v47 = vshrl.u32 %v12815_v37, 16  ;;  %v10828_v37 = vld [vmem:[%s14112_s4 + $0x1e8] sm:$0xff]   ;;  %v8719_v55 = vcombine.low %v13096_v31, %v13098_v39  ;;  %v13135_v28 = vcombine.low %v13107_v2, %v13109_v41  ;;  %v13137_v51 = vor.u32 %v6842_v15, %v6839_v23 }
 0x35f   : > { %10191 = vmatpush3.bf16.msra.mxu1 %v10819_v46  ;;  %10383 = vmatpush3.bf16.msra.mxu0 %v12793_v13  ;;  %v6846_v46 = vshrl.u32 %v12785_v18, 16  ;;  %v6891_v13 = vshrl.u32 %v12980_v62, 16  ;;  %v6849_v43 = vshll.u32 %v12785_v18, 16  ;;  %v6864_v14 = vshrl.u32 %v12831_v45, 16  ;;  %v10832_v18 = vld [vmem:[%s14112_s4 + $0x80] sm:$0xff]  }
 0x360   : > { %10192 = vmatprep.subr.bf16.mxu1 %v10821_v57  ;;  %10384 = vmatprep.subr.bf16.mxu0 %v10825_v6  ;;  %v6894_v30 = vshll.u32 %v12980_v62, 16  ;;  %v11002_v1 = vmov 0.0|0.0   ;;  %v6857_v34 = vrot.slane %v6855_v47, 3  ;;  %v6860_v61 = vrot.slane %v6858_v16, 4 }
 0x361   : > { %4572 = vst [vmem:[#allocation2 + $0x80] sm:$0xf] %v11002_v1  ;;  %v6867_v27 = vshll.u32 %v12831_v45, 16  ;;  %v6882_v48 = vshrl.u32 %v12900_v42, 16  ;;  %v6875_v23 = vrot.slane %v6873_v44, 3  ;;  %v6878_v15 = vrot.slane %v6876_v38, 4 }
 0x362   : > { %v6885_v62 = vshll.u32 %v12900_v42, 16  ;;  %v6909_v1 = vshrl.u32 %v8719_v55, 16  ;;  %v10833_v45 = vld [vmem:[%s14112_s4 + $0x1e0] sm:$0xff]   ;;  %v6903_v47 = vshll.u32 %v13032_v33, 16  ;;  %v6912_v16 = vshll.u32 %v8719_v55, 16 }
 0x363   : > { %10193 = vmatpush3.bf16.msra.mxu1 %v10821_v57  ;;  %10385 = vmatpush3.bf16.msra.mxu0 %v10825_v6  ;;  %v13154_v57 = vrot.slane %v6891_v13, 3  ;;  %v6900_v6 = vshrl.u32 %v13032_v33, 16  ;;  %v6896_v42 = vrot.slane %v6894_v30, 4  ;;  %v6918_v44 = vshrl.u32 %v13135_v28, 16 }
 0x364   : > { %10194 = vmatprep.subr.bf16.mxu1 %v10826_v56  ;;  %10386 = vmatprep.subr.bf16.mxu0 %v10828_v37  ;;  %v6822_v38 = vrot.slane %v6820_v12, 3  ;;  %v6921_v13 = vshll.u32 %v13135_v28, 16  ;;  %v10835_v12 = vld [vmem:[%s14112_s4 + $0x1d8] sm:$0xff]   ;;  %v6830_v60 = vrot.slane %v6828_v52, 3  ;;  %v6851_v30 = vrot.slane %v6849_v43, 4 }
 0x365   : > { %10323 = vmatmul.mubr.bf16.gmra.mxu0 %v13021_v25  ;;  %10171 = vmatmul.mubr.bf16.gmra.mxu1 %v13068_v8  ;;  %v7511_v25 = vshll.u32 %v13142_v11, 16  ;;  %v6869_v8 = vrot.slane %v6867_v27, 4  ;;  %v6879_v55 = vor.u32 %v6878_v15, %v6875_v23  ;;  %v6884_v50 = vrot.slane %v6882_v48, 3  ;;  %v10836_v15 = vld [vmem:[#allocation2 + $0x1c] sm:$0xff]  }
 0x366   : > { %10326 = vmatprep.mubr.bf16.mxu0 %v13052_v63  ;;  %10174 = vmatprep.mubr.bf16.mxu1 %v13087_v10  ;;  %v13178_v10 = vld [vmem:[%s14112_s4 + $0x138] sm:$0xff]   ;;  %v6914_v63 = vrot.slane %v6912_v16, 4  ;;  %v6834_v19 = vor.u32 %v6833_v22, %v6830_v60  ;;  %v6866_v16 = vrot.slane %v6864_v14, 3  ;;  %v6887_v40 = vrot.slane %v6885_v62, 4 }
 0x367   : > { %10195 = vmatpush3.bf16.msra.mxu1 %v10826_v56  ;;  %10387 = vmatpush3.bf16.msra.mxu0 %v10828_v37  ;;  %v6911_v56 = vrot.slane %v6909_v1, 3  ;;  %v6825_v37 = vrot.slane %v6823_v35, 4  ;;  %v6848_v1 = vrot.slane %v6846_v46, 3  ;;  %v13194_v17 = vrot.slane %v7511_v25, 1  ;;  %v10840_v46 = vld [vmem:[%s14112_s4 + $0x1d0] sm:$0xff]  }
 0x368   : > { %10196 = vmatprep.subr.bf16.mxu1 %v10832_v18  ;;  %10388 = vmatprep.subr.bf16.mxu0 %v10833_v45  ;;  %v13186_v58 = vld [vmem:[#allocation2 + $0x80] sm:$0xf]  ;;  %v6861_v35 = vor.u32 %v6860_v61, %v6857_v34  ;;  %v13206_v22 = vsel %vm691_vm1, %v6834_v19, %v13137_v51  ;;  %v6870_v60 = vor.u32 %v6869_v8, %v6866_v16  ;;  %v6902_v27 = vrot.slane %v6900_v6, 3  ;;  %v10834_v61 = vld [vmem:[#allocation2 + $0x68] sm:$0xff]  }
 0x369   : > { %v8721_v28 = vcombine.low %v13186_v58, %v13186_v58  ;;  %v6826_v33 = vor.u32 %v6825_v37, %v6822_v38  ;;  %v6852_v52 = vor.u32 %v6851_v30, %v6848_v1  ;;  %v6888_v14 = vor.u32 %v6887_v40, %v6884_v50  ;;  %v14189_v1 = vld [vmem:[#allocation12_spill] sm:$0xff] }
 0x36a   : > { %v6905_v34 = vrot.slane %v6903_v47, 4  ;;  %v13222_v23 = vsel %vm691_vm1, %v6870_v60, %v6879_v55  ;;  %v6923_v6 = vrot.slane %v6921_v13, 4  ;;  %v13228_v47 = vld [vmem:[#allocation2 + $0x70] sm:$0xff]   ;;  %v7515_v38 = vshrl.u32 %v13142_v11, 16 }
 0x36b   : > { %10197 = vmatpush3.bf16.msra.mxu1 %v10832_v18  ;;  %10389 = vmatpush3.bf16.msra.mxu0 %v10833_v45  ;;  %v13202_v43 = vsel %vm691_vm1, %v6826_v33, %v6834_v19  ;;  %v13215_v48 = vsel %vm691_vm1, %v6852_v52, %v6861_v35  ;;  %v13219_v18 = vsel %vm691_vm1, %v6861_v35, %v6870_v60  ;;  %v6920_v45 = vrot.slane %v6918_v44, 3  ;;  %v13240_v44 = vld [vmem:[#allocation2 + $0x24] sm:$0xff]   ;;  %v14187_v11 = vld [vmem:[#allocation11_spill] sm:$0xff]  ;;  %v14191_v60 = vld [vmem:[#allocation16_spill] sm:$0xff] }
 0x36c   : > { %10262 = vmatprep.subr.bf16.mxu1 %v13178_v10  ;;  %10390 = vmatprep.subr.bf16.mxu0 %v10835_v12  ;;  %v6906_v62 = vor.u32 %v6905_v34, %v6902_v27  ;;  %v14186_v33 = vshrl.u32 %v13044_v32, 16  ;;  %v6468_v32 = vsel %vm1177_vm2, %v13105_v5, %v13092_v36  ;;  %v14188_v37 = vshrl.u32 %v14187_v11, 16  ;;  %v10850_v5 = vld [vmem:[%s14112_s4 + $0x1c0] sm:$0xff]  }
 0x36d   : > { %10327 = vmatmul.mubr.bf16.gmra.mxu0 %v13063_v7  ;;  %10175 = vmatmul.mubr.bf16.gmra.mxu1 %v13103_v21  ;;  %v13212_v7 = vsel %vm691_vm1, %v13137_v51, %v6852_v52  ;;  %v6915_v21 = vor.u32 %v6914_v63, %v6911_v56  ;;  %v13226_v51 = vsel %vm691_vm1, %v6879_v55, %v6888_v14  ;;  %v6481_v56 = vshll.u32 %v10834_v61, 16 }
 0x36e   : > { %10330 = vmatprep.mubr.bf16.mxu0 %v13090_v54  ;;  %10178 = vmatprep.mubr.bf16.mxu1 %v13113_v49  ;;  %v6897_v54 = vor.u32 %v6896_v42, %v13154_v57  ;;  %v10843_v49 = vld [vmem:[%s14112_s4 + $0x1c8] sm:$0xff]   ;;  %v6927_v57 = vshrl.u32 %v8721_v28, 16  ;;  %v6930_v42 = vshll.u32 %v8721_v28, 16  ;;  %v6471_v8 = vor.u32 %v14186_v33, %v13092_v36 }
 0x36f   : > { %10391 = vmatpush3.bf16.msra.mxu0 %v10835_v12  ;;  %v13246_v63 = vsel %vm691_vm1, %v6906_v62, %v6915_v21  ;;  %v6924_v12 = vor.u32 %v6923_v6, %v6920_v45  ;;  %v13249_v28 = vor.u32 %v7515_v38, %v13194_v17  ;;  %v5313_v19 = vor.u32 %v14189_v1, %v14188_v37 }
 0x370   : > { %10392 = vmatprep.subr.bf16.mxu0 %v10840_v46  ;;  %v13234_v25 = vsel %vm691_vm1, %v6888_v14, %v6897_v54  ;;  %v13243_v13 = vsel %vm691_vm1, %v6897_v54, %v6906_v62  ;;  %v6929_v55 = vrot.slane %v6927_v57, 3  ;;  %v6932_v30 = vrot.slane %v6930_v42, 4  ;;  %v10842_v54 = vld [vmem:[#allocation2 + $0x78] ss:$0 sps:$4 sm:$0x11]   ;;  %v14192_v62 = vld [vmem:[#allocation13_spill] sm:$0xff] }
 0x371   : > { %v5323_v35 = vshll.u32 %v10836_v15, 16  ;;  %v13258_v16 = vsel %vm691_vm1, %v6915_v21, %v6924_v12  ;;  %v14190_v52 = vor.u32 %v13081_v59, %v13079_v20  ;;  %v6476_v40 = vsel %vm1177_vm2, %v6471_v8, %v13094_v9  ;;  %v10844_v21 = vld [vmem:[#allocation2 + $0x2c] sm:$0xff]   ;;  %v13282_v42 = vld [vmem:[%s14112_s4 + $0x238] sm:$0xff]  }
 0x372   : > { %v6489_v36 = vshll.u32 %v13228_v47, 16  ;;  %v5318_v27 = vsel %vm1177_vm2, %v5313_v19, %v14191_v60  ;;  %v5331_v20 = vshll.u32 %v13240_v44, 16  ;;  %v6477_v14 = vshrl.u32 %v13046_v26, 16 }
 0x373   : > { %10393 = vmatpush3.bf16.msra.mxu0 %v10840_v46  ;;  %v5012_v50 = vsel %vm691_vm1, %v13070_v4, %v14190_v52  ;;  %v6933_v46 = vor.u32 %v6932_v30, %v6929_v55  ;;  %v6483_v4 = vrot.slane %v6481_v56, 1  ;;  %v5325_v34 = vrot.slane %v5323_v35, 1  ;;  %v10851_v52 = vld [vmem:[%s14112_s4 + $0x128] sm:$0xff]  }
 0x374   : > { %10394 = vmatprep.subr.bf16.mxu0 %v10843_v49  ;;  %v5319_v45 = vshrl.u32 %v14192_v62, 16  ;;  %v6485_v6 = vshrl.u32 %v10834_v61, 16  ;;  %v6491_v57 = vrot.slane %v6489_v36, 1  ;;  %v6479_v38 = vor.u32 %v6477_v14, %v13094_v9  ;;  %v10841_v61 = vld [vmem:[%s14112_s4 + $0x130] sm:$0xff]  }
 0x375   : > { %10331 = vmatmul.mubr.bf16.gmra.mxu0 %v6468_v32  ;;  %10179 = vmatmul.mubr.bf16.gmra.mxu1 %v5012_v50  ;;  %v13275_v59 = vsel %vm691_vm1, %v6924_v12, %v6933_v46  ;;  %v5327_v33 = vshrl.u32 %v10836_v15, 16  ;;  %v5333_v8 = vrot.slane %v5331_v20, 1  ;;  %v10849_v12 = vld [vmem:[#allocation2 + $0x34] sm:$0xff]   ;;  %v6497_v30 = vshll.u32 %v10842_v54, 16  ;;  %v10852_v50 = vld [vmem:[#allocation2 + $0x3c] sm:$0xff]  }
 0x376   : > { %10334 = vmatprep.mubr.bf16.mxu0 %v6476_v40  ;;  %10198 = vmatprep.mubr.bf16.mxu1 %v5318_v27  ;;  %v5321_v26 = vor.u32 %v5319_v45, %v14191_v60  ;;  %v6487_v56 = vor.u32 %v6485_v6, %v6483_v4  ;;  %v5339_v32 = vshll.u32 %v10844_v21, 16  ;;  %v5347_v37 = vshll.u32 %v10849_v12, 16  ;;  %v10856_v60 = vld [vmem:[#allocation2 + $0x44] sm:$0xff]   ;;  %v10859_v6 = vld [vmem:[#allocation2 + $0x4c] sm:$0xff]  }
 0x377   : > { %10395 = vmatpush3.bf16.msra.mxu0 %v10843_v49  ;;  %v6484_v49 = vsel %vm1177_vm2, %v6479_v38, %v6483_v4  ;;  %v5329_v55 = vor.u32 %v5327_v33, %v5325_v34  ;;  %v6493_v1 = vshrl.u32 %v13228_v47, 16  ;;  %v6499_v19 = vrot.slane %v6497_v30, 1  ;;  %v10939_v20 = vld [vmem:[#allocation2 + $0x28] sm:$0xf]  ;;  %v14193_v4 = vld [vmem:[#allocation17_spill] sm:$0xff] }
 0x378   : > { %10396 = vmatprep.subr.bf16.mxu0 %v10850_v5  ;;  %v5326_v11 = vsel %vm1177_vm2, %v5321_v26, %v5325_v34  ;;  %v6492_v9 = vsel %vm1177_vm2, %v6487_v56, %v6491_v57  ;;  %v5341_v35 = vrot.slane %v5339_v32, 1  ;;  %v5335_v40 = vshrl.u32 %v13240_v44, 16  ;;  %v10857_v54 = vld [vmem:[%s14112_s4 + $0x120] sm:$0xff]   ;;  %v13310_v26 = vld [vmem:[#allocation2 + $0x54] sm:$0xff]   ;;  %v10940_v56 = vld [vmem:[#allocation2 + $0x2c] sm:$0xf] }
 0x379   : > { %v5334_v15 = vsel %vm1177_vm2, %v5329_v55, %v5333_v8  ;;  %v6495_v36 = vor.u32 %v6493_v1, %v6491_v57  ;;  %v5349_v46 = vrot.slane %v5347_v37, 1  ;;  %v8746_v47 = vcombine.low %v14193_v4, %v10939_v20  ;;  %v10860_v57 = vld [vmem:[%s14112_s4 + $0x118] sm:$0xff]   ;;  %v10942_v30 = vld [vmem:[#allocation2 + $0x34] sm:$0xf]  ;;  %v10945_v4 = vld [vmem:[#allocation2 + $0x40] sm:$0xf] }
 0x37a   : > { %v5337_v27 = vor.u32 %v5335_v40, %v5333_v8  ;;  %v5355_v34 = vshll.u32 %v10852_v50, 16  ;;  %v5363_v62 = vshll.u32 %v10856_v60, 16  ;;  %v5351_v38 = vshrl.u32 %v10849_v12, 16  ;;  %v10943_v32 = vld [vmem:[#allocation2 + $0x38] sm:$0xf]  ;;  %v10865_v37 = vld [vmem:[%s14112_s4 + $0x110] sm:$0xff]  }
 0x37b   : > { %10397 = vmatpush3.bf16.msra.mxu0 %v10850_v5  ;;  %v5343_v5 = vshrl.u32 %v10844_v21, 16  ;;  %v5359_v33 = vshrl.u32 %v10852_v50, 16  ;;  %v13319_v1 = vld [vmem:[%s14112_s4 + $0x230] sm:$0xff]   ;;  %v10868_v50 = vld [vmem:[#allocation2 + $0x5c] sm:$0xff]   ;;  %v10874_v40 = vld [vmem:[%s14112_s4 + $0x108] sm:$0xff]  }
 0x37c   : > { %10422 = vmatprep.subr.bf16.mxu0 %v13282_v42  ;;  %v5342_v44 = vsel %vm1177_vm2, %v5337_v27, %v5341_v35  ;;  %v5357_v45 = vrot.slane %v5355_v34, 1  ;;  %v5365_v8 = vrot.slane %v5363_v62, 1  ;;  %v10944_v20 = vld [vmem:[#allocation2 + $0x3c] sm:$0xf]  ;;  %v10946_v34 = vld [vmem:[#allocation2 + $0x44] sm:$0xf] }
 0x37d   : > { %10335 = vmatmul.mubr.bf16.gmra.mxu0 %v6484_v49  ;;  %10199 = vmatmul.mubr.bf16.vlgmr.msra.gmra.mxu1 %v5326_v11  ;;  %v5345_v14 = vor.u32 %v5343_v5, %v5341_v35  ;;  %v10941_v49 = vld [vmem:[#allocation2 + $0x30] sm:$0xf]  ;;  %v8748_v11 = vcombine.low %v10942_v30, %v10943_v32  ;;  %v5379_v35 = vshll.u32 %v13310_v26, 16  ;;  %v13331_v5 = vld [vmem:[%s14112_s4 + $0x228] sm:$0xff]   ;;  %v10882_v62 = vld [vmem:[%s14112_s4 + $0x100] sm:$0xff]  }
 0x37e   : > { %10338 = vmatprep.mubr.bf16.mxu0 %v6492_v9  ;;  %10202 = vmatprep.mubr.bf16.mxu1 %v5334_v15  ;;  %v8747_v55 = vcombine.low %v10940_v56, %v10941_v49  ;;  %v5361_v9 = vor.u32 %v5359_v33, %v5357_v45  ;;  %v5371_v15 = vshll.u32 %v10859_v6, 16  ;;  %v5383_v56 = vshrl.u32 %v13310_v26, 16  ;;  %v13354_v49 = vld [vmem:[%s14112_s4 + $0x218] sm:$0xff]   ;;  %v10948_v30 = vld [vmem:[#allocation2 + $0x4c] sm:$0xf] }
 0x37f   : > { %10263 = vmatpush3.bf16.msra.mxu1 %v13178_v10  ;;  %v6500_v10 = vsel %vm1177_vm2, %v6495_v36, %v6499_v19  ;;  %v5350_v21 = vsel %vm1177_vm2, %v5345_v14, %v5349_v46  ;;  %v5367_v36 = vshrl.u32 %v10856_v60, 16  ;;  %v5381_v27 = vrot.slane %v5379_v35, 1  ;;  %v10949_v32 = vld [vmem:[#allocation2 + $0x50] sm:$0xf] }
 0x380   : > { %10264 = vmatprep.subr.bf16.mxu1 %v10841_v61  ;;  %v5366_v19 = vsel %vm1177_vm2, %v5361_v9, %v5365_v8  ;;  %v5387_v60 = vshll.u32 %v10868_v50, 16 }
 0x381   : > { %v5369_v14 = vor.u32 %v5367_v36, %v5365_v8  ;;  %v10886_v8 = vld [vmem:[%s14112_s4 + $0x1b8] sm:$0xff]   ;;  %v5385_v9 = vor.u32 %v5383_v56, %v5381_v27  ;;  %v10892_v56 = vld [vmem:[%s14112_s4 + $0x1b0] sm:$0xff]  }
 0x382   : > { %v5389_v33 = vrot.slane %v5387_v60, 1  ;;  %v14197_v60 = vld [vmem:[#allocation4_spill] sm:$0xff] }
 0x383   : > { %10265 = vmatpush3.bf16.msra.mxu1 %v10841_v61  ;;  %v5353_v61 = vor.u32 %v5351_v38, %v5349_v46  ;;  %v5375_v46 = vshrl.u32 %v10859_v6, 16  ;;  %v13342_v6 = vld [vmem:[%s14112_s4 + $0x220] sm:$0xff]  }
 0x384   : > { %10266 = vmatprep.subr.bf16.mxu1 %v10851_v52  ;;  %v5390_v26 = vsel %vm1177_vm2, %v5385_v9, %v5389_v33  ;;  %v14203_v9 = vld [vmem:[#allocation8_spill] sm:$0xff] }
 0x385   : > { %10339 = vmatmul.mubr.bf16.gmra.mxu0 %v6500_v10  ;;  %10203 = vmatmul.mubr.bf16.gmra.mxu1 %v5342_v44  ;;  %v5358_v12 = vsel %vm1177_vm2, %v5353_v61, %v5357_v45  ;;  %v10872_v10 = vld [vmem:[#allocation2 + $0x64] sm:$0xff]  }
 0x386   : > { %10398 = vmatprep.mubr.bf16.mxu0 %v8746_v47  ;;  %10206 = vmatprep.mubr.bf16.mxu1 %v5350_v21  ;;  %v8749_v47 = vcombine.low %v10944_v20, %v10945_v4  ;;  %v5395_v38 = vshll.u32 %v10872_v10, 16  ;;  %v10952_v20 = vld [vmem:[#allocation2 + $0x5c] sm:$0xf] }
 0x387   : > { %10267 = vmatpush3.bf16.msra.mxu1 %v10851_v52  ;;  %v5373_v52 = vrot.slane %v5371_v15, 1  ;;  %v10877_v15 = vld [vmem:[#allocation2 + $0x6c] ss:$0 sps:$4 sm:$0x11]   ;;  %v14194_v4 = vld [vmem:[#allocation20_spill] sm:$0xff] }
 0x388   : > { %10268 = vmatprep.subr.bf16.mxu1 %v10857_v54  ;;  %v5397_v61 = vrot.slane %v5395_v38, 1  ;;  %v5403_v36 = vshll.u32 %v10877_v15, 16 }
 0x389   : > { %v5377_v21 = vor.u32 %v5375_v46, %v5373_v52  ;;  %v5374_v45 = vsel %vm1177_vm2, %v5369_v14, %v5373_v52  ;;  %v13362_v52 = vld [vmem:[%s14112_s4 + $0x210] sm:$0xff]  }
 0x38a   : > { %v5405_v14 = vrot.slane %v5403_v36, 1  ;;  %v14206_v36 = vld [vmem:[#allocation10_spill] sm:$0xff] }
 0x38b   : > { %10269 = vmatpush3.bf16.msra.mxu1 %v10857_v54  ;;  %v10947_v54 = vld [vmem:[#allocation2 + $0x48] sm:$0xf] }
 0x38c   : > { %10270 = vmatprep.subr.bf16.mxu1 %v10860_v57  ;;  %v8750_v44 = vcombine.low %v10946_v34, %v10947_v54  ;;  %v14195_v34 = vld [vmem:[#allocation21_spill] sm:$0xff] }
 0x38d   : > { %10399 = vmatmul.mubr.bf16.vlgmr.msra.gmra.mxu0 %v8747_v55  ;;  %10207 = vmatmul.mubr.bf16.gmra.mxu1 %v5358_v12  ;;  %v5391_v55 = vshrl.u32 %v10868_v50, 16  ;;  %v10951_v12 = vld [vmem:[#allocation2 + $0x58] sm:$0xf]  ;;  %v8754_v54 = vcombine.low %v14195_v34, %v13023_v24  ;;  %v10897_v24 = vld [vmem:[#allocation2 + $0x2c] sm:$0xff]  }
 0x38e   : > { %10402 = vmatprep.mubr.bf16.mxu0 %v8748_v11  ;;  %10210 = vmatprep.mubr.bf16.mxu1 %v5366_v19  ;;  %v8751_v11 = vcombine.low %v10948_v30, %v10949_v32  ;;  %v14200_v30 = vld [vmem:[#allocation6_spill] sm:$0xff] }
 0x38f   : > { %10271 = vmatpush3.bf16.msra.mxu1 %v10860_v57  ;;  %10423 = vmatpush3.bf16.msra.mxu0 %v13282_v42  ;;  %v5382_v57 = vsel %vm1177_vm2, %v5377_v21, %v5381_v27  ;;  %v5393_v35 = vor.u32 %v5391_v55, %v5389_v33  ;;  %v13370_v27 = vld [vmem:[%s14112_s4 + $0x208] sm:$0xff]   ;;  %v14196_v21 = vld [vmem:[#allocation3_spill] sm:$0xff]  ;;  %v8756_v33 = vcombine.low %v13098_v39, %v13107_v2  ;;  %v7503_v55 = vshll.u32 %v10897_v24, 16 }
 0x390   : > { %10272 = vmatprep.subr.bf16.mxu1 %v10865_v37  ;;  %10424 = vmatprep.subr.bf16.mxu0 %v13319_v1  ;;  %v10900_v39 = vld [vmem:[%s14112_s4 + $0x1a8] sm:$0xff]  }
 0x391   : > { %v5398_v50 = vsel %vm1177_vm2, %v5393_v35, %v5397_v61  ;;  %v7505_v15 = vrot.slane %v7503_v55, 1  ;;  %v10953_v35 = vld [vmem:[#allocation2 + $0x38] sm:$0xf] }
 0x393   : > { %10273 = vmatpush3.bf16.msra.mxu1 %v10865_v37  ;;  %10425 = vmatpush3.bf16.msra.mxu0 %v13319_v1  ;;  %v10950_v37 = vld [vmem:[#allocation2 + $0x54] sm:$0xf] }
 0x394   : > { %10274 = vmatprep.subr.bf16.mxu1 %v10874_v40  ;;  %10426 = vmatprep.subr.bf16.mxu0 %v13331_v5  ;;  %v8752_v19 = vcombine.low %v10950_v37, %v10951_v12  ;;  %v8757_v37 = vcombine.low %v13109_v41, %v13186_v58  ;;  %v7507_v41 = vshrl.u32 %v10897_v24, 16  ;;  %v10906_v58 = vld [vmem:[%s14112_s4 + $0x198] sm:$0xff]   ;;  %v10913_v24 = vld [vmem:[%s14112_s4 + $0x180] sm:$0xff]  }
 0x395   : > { %10403 = vmatmul.mubr.bf16.gmra.mxu0 %v8749_v47  ;;  %10211 = vmatmul.mubr.bf16.gmra.mxu1 %v5374_v45  ;;  %v8753_v47 = vcombine.low %v10952_v20, %v14194_v4  ;;  %v10896_v45 = vld [vmem:[#allocation2 + $0x24] sm:$0xff]  }
 0x396   : > { %10406 = vmatprep.mubr.bf16.mxu0 %v8750_v44  ;;  %10214 = vmatprep.mubr.bf16.mxu1 %v5382_v57  ;;  %v13381_v44 = vld [vmem:[%s14112_s4 + $0x200] sm:$0xff]   ;;  %v8755_v57 = vcombine.low %v13025_v0, %v13096_v31  ;;  %v7498_v38 = vshll.u32 %v10896_v45, 16  ;;  %v7496_v2 = vshrl.u32 %v10896_v45, 16  ;;  %v7509_v20 = vor.u32 %v7507_v41, %v7505_v15 }
 0x397   : > { %10275 = vmatpush3.bf16.msra.mxu1 %v10874_v40  ;;  %10427 = vmatpush3.bf16.msra.mxu0 %v13331_v5  ;;  %v5399_v40 = vshrl.u32 %v10872_v10, 16 }
 0x398   : > { %10276 = vmatprep.subr.bf16.mxu1 %v10882_v62  ;;  %10428 = vmatprep.subr.bf16.mxu0 %v13342_v6  ;;  %v7500_v31 = vrot.slane %v7498_v38, 1  ;;  %v7514_v4 = vsel %vm1177_vm2, %v7509_v20, %v13194_v17  ;;  %v10911_v17 = vld [vmem:[%s14112_s4 + $0x188] sm:$0xff]  }
 0x399   : > { %v5401_v46 = vor.u32 %v5399_v40, %v5397_v61  ;;  %v14199_v61 = vld [vmem:[#allocation5_spill] sm:$0xff]  ;;  %v14209_v38 = vld [vmem:[#allocation14_spill] sm:$0xff] }
 0x39a   : > { %v14201_v32 = vcombine.low %v14199_v61, %v14200_v30  ;;  %v7501_v12 = vor.u32 %v7500_v31, %v7496_v2  ;;  %v14205_v40 = vld [vmem:[#allocation9_spill] sm:$0xff]  ;;  %v14211_v30 = vld [vmem:[#allocation15_spill] sm:$0xff]  ;;  %v14219_v2 = vld [vmem:[#allocation24_spill] sm:$0xff] }
 0x39b   : > { %10277 = vmatpush3.bf16.msra.mxu1 %v10882_v62  ;;  %10429 = vmatpush3.bf16.msra.mxu0 %v13342_v6  ;;  %v5406_v10 = vsel %vm1177_vm2, %v5401_v46, %v5405_v14  ;;  %v14198_v62 = vcombine.low %v14196_v21, %v14197_v60  ;;  %v14207_v46 = vcombine.low %v14205_v40, %v14206_v36  ;;  %v10956_v14 = vld [vmem:[#allocation2 + $0x44] sm:$0xf]  ;;  %v10958_v21 = vld [vmem:[#allocation2 + $0x4c] sm:$0xf] }
 0x39c   : > { %10342 = vmatprep.subr.bf16.mxu1 %v10886_v8  ;;  %10430 = vmatprep.subr.bf16.mxu0 %v13354_v49  ;;  %v10916_v20 = vld [vmem:[#allocation2 + $0x4c] sm:$0xff]  }
 0x39d   : > { %10407 = vmatmul.mubr.bf16.gmra.mxu0 %v8751_v11  ;;  %10215 = vmatmul.mubr.bf16.gmra.mxu1 %v5390_v26  ;;  %v14202_v11 = vld [vmem:[#allocation7_spill] sm:$0xff]  ;;  %v10954_v26 = vld [vmem:[#allocation2 + $0x3c] sm:$0xf] }
 0x39e   : > { %10410 = vmatprep.mubr.bf16.mxu0 %v8752_v19  ;;  %10218 = vmatprep.mubr.bf16.mxu1 %v5398_v50  ;;  %v14204_v0 = vcombine.low %v14202_v11, %v14203_v9  ;;  %v10904_v19 = vld [vmem:[%s14112_s4 + $0x1a0] sm:$0xff]   ;;  %v8640_v50 = vcombine.low %v10953_v35, %v10954_v26 }
 0x39f   : > { %10431 = vmatpush3.bf16.msra.mxu0 %v13354_v49 }
 0x3a0   : > { %10432 = vmatprep.subr.bf16.mxu0 %v13362_v52 }
 0x3a3   : > { %10433 = vmatpush3.bf16.msra.mxu0 %v13362_v52 }
 0x3a4   : > { %10434 = vmatprep.subr.bf16.mxu0 %v13370_v27 }
 0x3a5   : > { %10411 = vmatmul.mubr.bf16.gmra.mxu0 %v8753_v47  ;;  %10219 = vmatmul.mubr.bf16.gmra.mxu1 %v5406_v10  ;;  %v10955_v47 = vld [vmem:[#allocation2 + $0x40] sm:$0xf]  ;;  %v10957_v10 = vld [vmem:[#allocation2 + $0x48] sm:$0xf] }
 0x3a6   : > { %10414 = vmatprep.mubr.bf16.mxu0 %v8754_v54  ;;  %10278 = vmatprep.mubr.bf16.mxu1 %v14198_v62  ;;  %v8641_v34 = vcombine.low %v10955_v47, %v10956_v14  ;;  %v10908_v54 = vld [vmem:[%s14112_s4 + $0x190] sm:$0xff]   ;;  %v8642_v60 = vcombine.low %v10957_v10, %v10958_v21 }
 0x3a7   : > { %10435 = vmatpush3.bf16.msra.mxu0 %v13370_v27  ;;  %v10917_v21 = vld [vmem:[#allocation2 + $0x54] sm:$0xff]  }
 0x3a8   : > { %10436 = vmatprep.subr.bf16.mxu0 %v13381_v44 }
 0x3ab   : > { %10437 = vmatpush3.bf16.msra.mxu0 %v13381_v44 }
 0x3ad   : > { %10415 = vmatmul.mubr.bf16.gmra.mxu0 %v8755_v57  ;;  %10279 = vmatmul.mubr.bf16.vlgmr.msra.gmra.mxu1 %v14201_v32  ;;  %v14208_v57 = vcombine.low %v12813_v53, %v12837_v3  ;;  %v14212_v32 = vld [vmem:[#allocation18_spill] sm:$0xff]  ;;  %v14214_v53 = vld [vmem:[#allocation19_spill] sm:$0xff] }
 0x3ae   : > { %10418 = vmatprep.mubr.bf16.mxu0 %v8756_v33  ;;  %10282 = vmatprep.mubr.bf16.mxu1 %v14204_v0  ;;  %v14210_v33 = vcombine.low %v12839_v29, %v14209_v38  ;;  %v14213_v11 = vcombine.low %v14211_v30, %v14212_v32  ;;  %v14215_v3 = vld [vmem:[#allocation22_spill] sm:$0xff]  ;;  %v10918_v38 = vld [vmem:[#allocation2 + $0x5c] sm:$0xff]   ;;  %v7543_v32 = vshll.u32 %v10917_v21, 16 }
 0x3af   : > { %10343 = vmatpush3.bf16.msra.mxu1 %v10886_v8  ;;  %v7506_v8 = vsel %vm1177_vm2, %v7501_v12, %v7505_v15  ;;  %v14216_v9 = vcombine.low %v14214_v53, %v14215_v3 }
 0x3b0   : > { %10344 = vmatprep.subr.bf16.mxu1 %v10892_v56 }
 0x3b3   : > { %10345 = vmatpush3.bf16.msra.mxu1 %v10892_v56 }
 0x3b4   : > { %10346 = vmatprep.subr.bf16.mxu1 %v10900_v39 }
 0x3b5   : > { %10419 = vmatmul.mubr.bf16.gmra.mxu0 %v8757_v37  ;;  %10283 = vmatmul.mubr.bf16.gmra.mxu1 %v14207_v46  ;;  %v13422_v62 = vpop.f32.mrf.mxu1 }
 0x3b6   : > { %10438 = vmatprep.mubr.bf16.mxu0 %v7506_v8  ;;  %10286 = vmatprep.mubr.bf16.mxu1 %v8640_v50 }
 0x3b7   : > { %10347 = vmatpush3.bf16.msra.mxu1 %v10900_v39  ;;  %v13427_v45 = vpop.f32.mrf.mxu1  ;;  %v14218_v39 = vld [vmem:[#allocation23_spill] sm:$0xff] }
 0x3b8   : > { %10348 = vmatprep.subr.bf16.mxu1 %v10904_v19  ;;  %v14220_v15 = vcombine.low %v14218_v39, %v14219_v2  ;;  %v7551_v39 = vshll.u32 %v10918_v38, 16 }
 0x3b9   : > { %v13438_v56 = vpop.f32.mrf.mxu1 }
 0x3bb   : > { %10349 = vmatpush3.bf16.msra.mxu1 %v10904_v19  ;;  %v13440_v55 = vpop.f32.mrf.mxu1 }
 0x3bc   : > { %10350 = vmatprep.subr.bf16.mxu1 %v10906_v58 }
 0x3bd   : > { %10439 = vmatmul.mubr.bf16.vlgmr.msra.gmra.mxu0 %v7514_v4  ;;  %10287 = vmatmul.mubr.bf16.gmra.mxu1 %v8641_v34  ;;  %v7535_v34 = vshll.u32 %v10916_v20, 16 }
 0x3be   : > { %10290 = vmatprep.mubr.bf16.mxu1 %v8642_v60 }
 0x3bf   : > { %10351 = vmatpush3.bf16.msra.mxu1 %v10906_v58 }
 0x3c0   : > { %10352 = vmatprep.subr.bf16.mxu1 %v10908_v54 }
 0x3c1   : > { %v13443_v61 = vpop.f32.mrf.mxu1 }
 0x3c3   : > { %10353 = vmatpush3.bf16.msra.mxu1 %v10908_v54  ;;  %v13451_v29 = vpop.f32.mrf.mxu1 }
 0x3c4   : > { %10354 = vmatprep.subr.bf16.mxu1 %v10911_v17 }
 0x3c5   : > { %10291 = vmatmul.mubr.bf16.gmra.mxu1 %v14208_v57  ;;  %v13455_v31 = vpop.f32.mrf.mxu1  ;;  %v7537_v57 = vrot.slane %v7535_v34, 1  ;;  %v7553_v34 = vrot.slane %v7551_v39, 1 }
 0x3c6   : > { %10294 = vmatprep.mubr.bf16.mxu1 %v14210_v33 }
 0x3c7   : > { %10355 = vmatpush3.bf16.msra.mxu1 %v10911_v17  ;;  %v13463_v12 = vpop.f32.mrf.mxu1 }
 0x3c8   : > { %10356 = vmatprep.subr.bf16.mxu1 %v10913_v24 }
 0x3c9   : > { %v13453_v0 = vpop.f32.mrf.mxu0 }
 0x3ca   : > { %14217 = vst [vmem:[#allocation11_spill] sm:$0xff] %v13453_v0 }
 0x3cb   : > { %10357 = vmatpush3.bf16.msra.mxu1 %v10913_v24  ;;  %v13461_v37 = vpop.f32.mrf.mxu0 }
 0x3cc   : > { %10462 = vmatprep.subr.bf16.mxu1 %v13282_v42  ;;  %14221 = vst [vmem:[#allocation12_spill] sm:$0xff] %v13461_v37 }
 0x3cd   : > { %10295 = vmatmul.mubr.bf16.gmra.mxu1 %v14213_v11  ;;  %v13467_v8 = vpop.f32.mrf.mxu0 }
 0x3ce   : > { %10298 = vmatprep.mubr.bf16.mxu1 %v14216_v9  ;;  %14222 = vst [vmem:[#allocation16_spill] sm:$0xff] %v13467_v8 }
 0x3cf   : > { %v13475_v26 = vpop.f32.mrf.mxu0 }
 0x3d0   : > { %14223 = vst [vmem:[#allocation13_spill] sm:$0xff] %v13475_v26 }
 0x3d5   : > { %10299 = vmatmul.mubr.bf16.gmra.mxu1 %v14220_v15  ;;  %v13465_v19 = vpop.f32.mrf.mxu1 }
 0x3d6   : > { %10358 = vmatprep.mubr.bf16.mxu1 %v13202_v43 }
 0x3d7   : > { %v13472_v35 = vpop.f32.mrf.mxu1 }
 0x3d9   : > { %v13480_v50 = vpop.f32.mrf.mxu1 }
 0x3dd   : > { %10359 = vmatmul.mubr.bf16.vlgmr.msra.gmra.mxu1 %v13206_v22 }
 0x3de   : > { %10362 = vmatprep.mubr.bf16.mxu1 %v13212_v7  ;;  %10470 = vmatpush3.bf16.msra.mxu1 %v13282_v42  ;;  %v13488_v7 = vpop.f32.mrf.mxu1 }
 0x3df   : > { %10463 = vmatprep.subr.bf16.mxu1 %v13319_v1  ;;  %v13477_v43 = vpop.f32.mrf.mxu0 }
 0x3e1   : > { %v13484_v22 = vpop.f32.mrf.mxu0 }
 0x3e2   : > { %10471 = vmatpush3.bf16.msra.mxu1 %v13319_v1 }
 0x3e3   : > { %10464 = vmatprep.subr.bf16.mxu1 %v13331_v5  ;;  %v13493_v40 = vpop.f32.mrf.mxu0 }
 0x3e5   : > { %10363 = vmatmul.mubr.bf16.gmra.mxu1 %v13215_v48  ;;  %v13491_v42 = vpop.f32.mrf.mxu1  ;;  %v13500_v48 = vpop.f32.mrf.mxu0 }
 0x3e6   : > { %10366 = vmatprep.mubr.bf16.mxu1 %v13219_v18  ;;  %10472 = vmatpush3.bf16.msra.mxu1 %v13331_v5 }
 0x3e7   : > { %10465 = vmatprep.subr.bf16.mxu1 %v13342_v6  ;;  %v13497_v1 = vpop.f32.mrf.mxu1 }
 0x3e9   : > { %v13507_v5 = vpop.f32.mrf.mxu1 }
 0x3ea   : > { %10473 = vmatpush3.bf16.msra.mxu1 %v13342_v6 }
 0x3eb   : > { %10466 = vmatprep.subr.bf16.mxu1 %v13354_v49  ;;  %v13513_v36 = vpop.f32.mrf.mxu1 }
 0x3ed   : > { %10367 = vmatmul.mubr.bf16.gmra.mxu1 %v13222_v23  ;;  %v13505_v18 = vpop.f32.mrf.mxu0 }
 0x3ee   : > { %10370 = vmatprep.mubr.bf16.mxu1 %v13226_v51  ;;  %10474 = vmatpush3.bf16.msra.mxu1 %v13354_v49  ;;  %v10914_v49 = vld [vmem:[#allocation2 + $0x3c] sm:$0xff]  }
 0x3ef   : > { %10467 = vmatprep.subr.bf16.mxu1 %v13362_v52  ;;  %v13511_v6 = vpop.f32.mrf.mxu0  ;;  %v7523_v60 = vshrl.u32 %v10914_v49, 16 }
 0x3f1   : > { %v13518_v23 = vpop.f32.mrf.mxu1  ;;  %v13521_v51 = vpop.f32.mrf.mxu0 }
 0x3f2   : > { %10475 = vmatpush3.bf16.msra.mxu1 %v13362_v52 }
 0x3f3   : > { %10468 = vmatprep.subr.bf16.mxu1 %v13370_v27  ;;  %v13524_v52 = vpop.f32.mrf.mxu1  ;;  %v13526_v46 = vpop.f32.mrf.mxu0 }
 0x3f5   : > { %10371 = vmatmul.mubr.bf16.gmra.mxu1 %v13234_v25  ;;  %v7519_v25 = vshll.u32 %v10914_v49, 16  ;;  %v7545_v49 = vrot.slane %v7543_v32, 1 }
 0x3f6   : > { %10374 = vmatprep.mubr.bf16.mxu1 %v13243_v13  ;;  %10476 = vmatpush3.bf16.msra.mxu1 %v13370_v27  ;;  %v13532_v13 = vpop.f32.mrf.mxu1  ;;  %v10915_v27 = vld [vmem:[#allocation2 + $0x44] sm:$0xff]  }
 0x3f7   : > { %10469 = vmatprep.subr.bf16.mxu1 %v13381_v44  ;;  %v7521_v58 = vrot.slane %v7519_v25, 1  ;;  %v7531_v24 = vshrl.u32 %v10915_v27, 16  ;;  %v10919_v25 = vld [vmem:[#allocation2 + $0x64] sm:$0xff]  }
 0x3f8   : > { %v13536_v47 = vpop.f32.mrf.mxu1 }
 0x3fa   : > { %10477 = vmatpush3.bf16.msra.mxu1 %v13381_v44  ;;  %v13529_v41 = vpop.f32.mrf.mxu0  ;;  %v7527_v44 = vshll.u32 %v10915_v27, 16 }
 0x3fc   : > { %v13534_v4 = vpop.f32.mrf.mxu0  ;;  %v7529_v10 = vrot.slane %v7527_v44, 1 }
 0x3fd   : > { %10375 = vmatmul.mubr.bf16.gmra.mxu1 %v13246_v63  ;;  %v7522_v63 = vsel %vm1177_vm2, %v13249_v28, %v7521_v58 }
 0x3fe   : > { %10378 = vmatprep.mubr.bf16.mxu1 %v13258_v16  ;;  %v13543_v54 = vpop.f32.mrf.mxu0  ;;  %v7533_v28 = vor.u32 %v7531_v24, %v7529_v10 }
 0x3ff   : > { %14224 = vst [vmem:[#allocation17_spill] sm:$0xff] %v13543_v54 }
 0x400   : > { %v13549_v33 = vpop.f32.mrf.mxu0  ;;  %v7538_v9 = vsel %vm1177_vm2, %v7533_v28, %v7537_v57 }
 0x401   : > { %14225 = vst [vmem:[#allocation20_spill] sm:$0xff] %v13549_v33 }
 0x405   : > { %v13538_v14 = vpop.f32.mrf.mxu1  ;;  %10379 = vmatmul.mubr.bf16.gmra.mxu1 %v13275_v59  ;;  %v7525_v59 = vor.u32 %v7523_v60, %v7521_v58  ;;  %v7539_v58 = vshrl.u32 %v10916_v20, 16 }
 0x406   : > { %10442 = vmatprep.mubr.bf16.mxu1 %v7522_v63  ;;  %v7547_v63 = vshrl.u32 %v10917_v21, 16  ;;  %v10921_v21 = vld [vmem:[#allocation2 + $0x74] sm:$0xff]  }
 0x407   : > { %v13545_v16 = vpop.f32.mrf.mxu1  ;;  %v7530_v53 = vsel %vm1177_vm2, %v7525_v59, %v7529_v10  ;;  %v10920_v10 = vld [vmem:[#allocation2 + $0x6c] sm:$0xff]   ;;  %v7541_v24 = vor.u32 %v7539_v58, %v7537_v57 }
 0x408   : > { %v7549_v28 = vor.u32 %v7547_v63, %v7545_v49  ;;  %v7567_v8 = vshll.u32 %v10920_v10, 16  ;;  %v7555_v63 = vshrl.u32 %v10918_v38, 16 }
 0x409   : > { %v13547_v17 = vpop.f32.mrf.mxu1  ;;  %v7546_v32 = vsel %vm1177_vm2, %v7541_v24, %v7545_v49  ;;  %v7575_v24 = vshll.u32 %v10921_v21, 16 }
 0x40a   : > { %v7554_v20 = vsel %vm1177_vm2, %v7549_v28, %v7553_v34  ;;  %v7569_v49 = vrot.slane %v7567_v8, 1 }
 0x40b   : > { %v13551_v30 = vpop.f32.mrf.mxu1 }
 0x40d   : > { %v13553_v11 = vpop.f32.mrf.mxu0  ;;  %v13556_v3 = vpop.f32.mrf.mxu1  ;;  %10443 = vmatmul.mubr.bf16.vlgmr.msra.gmra.mxu1 %v7530_v53  ;;  %v7559_v53 = vshll.u32 %v10919_v25, 16 }
 0x40e   : > { %14226 = vst [vmem:[#allocation21_spill] sm:$0xff] %v13553_v11  ;;  %10446 = vmatprep.mubr.bf16.mxu1 %v7538_v9  ;;  %v10923_v11 = vld [vmem:[#allocation2 + $0x84] ss:$0 sps:$4 sm:$0x11]  }
 0x40f   : > { %v13559_v2 = vpop.f32.mrf.mxu0  ;;  %v13561_v15 = vpop.f32.mrf.mxu1  ;;  %v7561_v57 = vrot.slane %v7559_v53, 1 }
 0x410   : > { %14227 = vst [vmem:[#allocation3_spill] sm:$0xff] %v13559_v2  ;;  %v10922_v2 = vld [vmem:[#allocation2 + $0x7c] sm:$0xff]  }
 0x411   : > { %v13563_v27 = vpop.f32.mrf.mxu0  ;;  %v13565_v44 = vpop.f32.mrf.mxu1 }
 0x412   : > { %14228 = vst [vmem:[#allocation4_spill] sm:$0xff] %v13563_v27 }
 0x413   : > { %v13567_v60 = vpop.f32.mrf.mxu0  ;;  %v13569_v59 = vpop.f32.mrf.mxu1 }
 0x414   : > { %14229 = vst [vmem:[#allocation5_spill] sm:$0xff] %v13567_v60 }
 0x415   : > { %v13571_v9 = vpop.f32.mrf.mxu0  ;;  %v13574_v26 = vpop.f32.mrf.mxu1  ;;  %10447 = vmatmul.mubr.bf16.gmra.mxu1 %v7546_v32  ;;  %v7557_v32 = vor.u32 %v7555_v63, %v7553_v34  ;;  %v7579_v34 = vshrl.u32 %v10921_v21, 16  ;;  %v7583_v63 = vshll.u32 %v10922_v2, 16 }
 0x416   : > { %14230 = vst [vmem:[#allocation6_spill] sm:$0xff] %v13571_v9  ;;  %10450 = vmatprep.mubr.bf16.mxu1 %v7554_v20  ;;  %v7563_v9 = vshrl.u32 %v10919_v25, 16 }
 0x417   : > { %v13577_v39 = vpop.f32.mrf.mxu0  ;;  %v13579_v37 = vpop.f32.mrf.mxu1  ;;  %v7562_v20 = vsel %vm1177_vm2, %v7557_v32, %v7561_v57 }
 0x418   : > { %14231 = vst [vmem:[#allocation7_spill] sm:$0xff] %v13577_v39  ;;  %v7565_v27 = vor.u32 %v7563_v9, %v7561_v57  ;;  %v7571_v9 = vshrl.u32 %v10920_v10, 16 }
 0x419   : > { %v13581_v58 = vpop.f32.mrf.mxu0  ;;  %v13583_v0 = vpop.f32.mrf.mxu1 }
 0x41a   : > { %14232 = vst [vmem:[#allocation8_spill] sm:$0xff] %v13581_v58  ;;  %v7570_v38 = vsel %vm1177_vm2, %v7565_v27, %v7569_v49  ;;  %v7577_v58 = vrot.slane %v7575_v24, 1  ;;  %v7585_v27 = vrot.slane %v7583_v63, 1 }
 0x41b   : > { %v13585_v60 = vpop.f32.mrf.mxu0  ;;  %v13587_v28 = vpop.f32.mrf.mxu1 }
 0x41c   : > { %14233 = vst [vmem:[#allocation9_spill] sm:$0xff] %v13585_v60  ;;  %v7581_v57 = vor.u32 %v7579_v34, %v7577_v58 }
 0x41d   : > { %v13589_v39 = vpop.f32.mrf.mxu0  ;;  %v13592_v53 = vpop.f32.mrf.mxu1  ;;  %10451 = vmatmul.mubr.bf16.gmra.mxu1 %v7562_v20  ;;  %v7573_v20 = vor.u32 %v7571_v9, %v7569_v49  ;;  %v7587_v49 = vshrl.u32 %v10922_v2, 16 }
 0x41e   : > { %14234 = vst [vmem:[#allocation10_spill] sm:$0xff] %v13589_v39  ;;  %10454 = vmatprep.mubr.bf16.mxu1 %v7570_v38  ;;  %v7586_v10 = vsel %vm1177_vm2, %v7581_v57, %v7585_v27 }
 0x41f   : > { %v13595_v25 = vpop.f32.mrf.mxu0  ;;  %v13597_v8 = vpop.f32.mrf.mxu1  ;;  %v7578_v21 = vsel %vm1177_vm2, %v7573_v20, %v7577_v58  ;;  %v7589_v9 = vor.u32 %v7587_v49, %v7585_v27 }
 0x420   : > { %14235 = vst [vmem:[#allocation14_spill] sm:$0xff] %v13595_v25  ;;  %v7591_v25 = vshll.u32 %v10923_v11, 16 }
 0x421   : > { %v13599_v60 = vpop.f32.mrf.mxu0  ;;  %v13601_v39 = vpop.f32.mrf.mxu1 }
 0x422   : > { %14236 = vst [vmem:[#allocation15_spill] sm:$0xff] %v13599_v60  ;;  %v7593_v58 = vrot.slane %v7591_v25, 1 }
 0x423   : > { %v13603_v32 = vpop.f32.mrf.mxu0  ;;  %v5142_v33 = vpop.f32.mrf.mxu1 }
 0x424   : > { %v13606_v24 = vadd.f32 %v5142_v33, %v13488_v7  ;;  %v7594_v2 = vsel %vm1177_vm2, %v7589_v9, %v7593_v58 }
 0x425   : > { %v13608_v38 = vpop.f32.mrf.mxu0  ;;  %v10172_v54 = vpop.f32.mrf.mxu1  ;;  %10455 = vmatmul.mubr.bf16.gmra.mxu1 %v7578_v21 }
 0x426   : > { %v13613_v60 = vadd.f32 %v10172_v54, %v13491_v42  ;;  %10458 = vmatprep.mubr.bf16.mxu1 %v7586_v10 }
 0x427   : > { %v13615_v34 = vpop.f32.mrf.mxu0  ;;  %v5155_v63 = vpop.f32.mrf.mxu1 }
 0x428   : > { %v13618_v7 = vadd.f32 %v5155_v63, %v13497_v1 }
 0x429   : > { %v13620_v33 = vpop.f32.mrf.mxu0  ;;  %v10173_v11 = vpop.f32.mrf.mxu1 }
 0x42a   : > { %v13623_v20 = vadd.f32 %v10173_v11, %v13507_v5 }
 0x42b   : > { %v13625_v57 = vpop.f32.mrf.mxu0  ;;  %v5158_v42 = vpop.f32.mrf.mxu1 }
 0x42c   : > { %v13628_v54 = vadd.f32 %v5158_v42, %v13513_v36 }
 0x42d   : > { %v13630_v21 = vpop.f32.mrf.mxu0  ;;  %v10176_v1 = vpop.f32.mrf.mxu1  ;;  %10459 = vmatmul.mubr.bf16.gmra.mxu1 %v7594_v2 }
 0x42e   : > { %v13634_v10 = vadd.f32 %v10176_v1, %v13518_v23 }
 0x42f   : > { %v13636_v25 = vpop.f32.mrf.mxu0  ;;  %v5171_v27 = vpop.f32.mrf.mxu1 }
 0x430   : > { %v13639_v5 = vadd.f32 %v5171_v27, %v13524_v52 }
 0x431   : > { %v13641_v49 = vpop.f32.mrf.mxu0  ;;  %v10177_v63 = vpop.f32.mrf.mxu1 }
 0x432   : > { %v13644_v36 = vadd.f32 %v10177_v63, %v13532_v13 }
 0x433   : > { %v13646_v11 = vpop.f32.mrf.mxu0  ;;  %v5174_v9 = vpop.f32.mrf.mxu1 }
 0x434   : > { %14237 = vst [vmem:[#allocation18_spill] sm:$0xff] %v13646_v11  ;;  %v13649_v58 = vadd.f32 %v5174_v9, %v13536_v47 }
 0x435   : > { %v13651_v23 = vpop.f32.mrf.mxu0  ;;  %v10180_v42 = vpop.f32.mrf.mxu1 }
 0x436   : > { %14238 = vst [vmem:[#allocation19_spill] sm:$0xff] %v13651_v23  ;;  %v13654_v2 = vadd.f32 %v10180_v42, %v13538_v14  ;;  %v5116_v23 = vadd.f32 %v13556_v3, %v13422_v62  ;;  %v5111_v3 = vadd.f32 %v13569_v59, %v13440_v55  ;;  %v5135_v59 = vadd.f32 %v13583_v0, %v13455_v31 }
 0x437   : > { %v13656_v52 = vpop.f32.mrf.mxu0  ;;  %v5187_v1 = vpop.f32.mrf.mxu1  ;;  %v5140_v31 = vadd.f32 %v13597_v8, %v13472_v35 }
 0x438   : > { %14239 = vst [vmem:[#allocation22_spill] sm:$0xff] %v13656_v52  ;;  %v13659_v27 = vadd.f32 %v5187_v1, %v13545_v16  ;;  %v5108_v16 = vadd.f32 %v13561_v15, %v13427_v45  ;;  %v5132_v15 = vadd.f32 %v13574_v26, %v13443_v61  ;;  %v5127_v26 = vadd.f32 %v13587_v28, %v13463_v12 }
 0x439   : > { %v13661_v13 = vpop.f32.mrf.mxu0  ;;  %v10181_v63 = vpop.f32.mrf.mxu1  ;;  %v5151_v28 = vadd.f32 %v13601_v39, %v13480_v50 }
 0x43a   : > { %14240 = vst [vmem:[#allocation23_spill] sm:$0xff] %v13661_v13  ;;  %v13664_v11 = vadd.f32 %v10181_v63, %v13547_v17  ;;  %v5119_v63 = vadd.f32 %v13565_v44, %v13438_v56  ;;  %v5124_v44 = vadd.f32 %v13579_v37, %v13451_v29  ;;  %v5148_v37 = vadd.f32 %v13592_v53, %v13465_v19 }
 0x43b   : > { %v13666_v47 = vpop.f32.mrf.mxu0  ;;  %v5190_v9 = vpop.f32.mrf.mxu1 }
 0x43c   : > { %14241 = vst [vmem:[#allocation24_spill] sm:$0xff] %v13666_v47  ;;  %v13671_v14 = vadd.f32 %v5190_v9, %v13551_v30 }
 0x43d   : > { %v13673_v42 = vpop.f32.mrf.mxu0  ;;  %v10200_v52 = vpop.f32.mrf.mxu1 }
 0x43e   : > { %14242 = vst [vmem:[#allocation25_spill] sm:$0xff] %v13673_v42  ;;  %v13677_v1 = vadd.f32 %v10200_v52, %v5116_v23 }
 0x43f   : > { %v13679_v13 = vpop.f32.mrf.mxu0  ;;  %v5501_v17 = vpop.f32.mrf.mxu1 }
 0x440   : > { %14243 = vst [vmem:[#allocation26_spill] sm:$0xff] %v13679_v13  ;;  %v13683_v47 = vadd.f32 %v5501_v17, %v5108_v16 }
 0x441   : > { %v13685_v62 = vpop.f32.mrf.mxu0  ;;  %v10201_v30 = vpop.f32.mrf.mxu1 }
 0x442   : > { %14244 = vst [vmem:[#allocation27_spill] sm:$0xff] %v13685_v62  ;;  %v13689_v9 = vadd.f32 %v10201_v30, %v5119_v63 }
 0x443   : > { %v13691_v42 = vpop.f32.mrf.mxu0  ;;  %v5504_v45 = vpop.f32.mrf.mxu1 }
 0x444   : > { %14245 = vst [vmem:[#allocation28_spill] sm:$0xff] %v13691_v42  ;;  %v13695_v23 = vadd.f32 %v5504_v45, %v5111_v3 }
 0x445   : > { %v13697_v52 = vpop.f32.mrf.mxu0  ;;  %v10204_v56 = vpop.f32.mrf.mxu1 }
 0x446   : > { %14246 = vst [vmem:[#allocation29_spill] sm:$0xff] %v13697_v52  ;;  %v13701_v16 = vadd.f32 %v10204_v56, %v5132_v15 }
 0x447   : > { %v13703_v17 = vpop.f32.mrf.mxu0  ;;  %v5517_v55 = vpop.f32.mrf.mxu1 }
 0x448   : > { %14247 = vst [vmem:[#allocation30_spill] sm:$0xff] %v13703_v17  ;;  %v13707_v63 = vadd.f32 %v5517_v55, %v5124_v44 }
 0x449   : > { %v13709_v30 = vpop.f32.mrf.mxu0  ;;  %v10205_v61 = vpop.f32.mrf.mxu1 }
 0x44a   : > { %14248 = vst [vmem:[#allocation31_spill] sm:$0xff] %v13709_v30  ;;  %v13713_v3 = vadd.f32 %v10205_v61, %v5135_v59 }
 0x44b   : > { %v13715_v45 = vpop.f32.mrf.mxu0  ;;  %v5520_v29 = vpop.f32.mrf.mxu1 }
 0x44c   : > { %14249 = vst [vmem:[#allocation32_spill] sm:$0xff] %v13715_v45  ;;  %v13719_v15 = vadd.f32 %v5520_v29, %v5127_v26 }
 0x44d   : > { %v13721_v56 = vpop.f32.mrf.mxu0  ;;  %v10208_v0 = vpop.f32.mrf.mxu1 }
 0x44e   : > { %v13725_v44 = vadd.f32 %v10208_v0, %v5148_v37 }
 0x44f   : > { %v13727_v55 = vpop.f32.mrf.mxu0  ;;  %v5533_v12 = vpop.f32.mrf.mxu1 }
 0x450   : > { %v13731_v59 = vadd.f32 %v5533_v12, %v5140_v31 }
 0x451   : > { %v13733_v61 = vpop.f32.mrf.mxu0  ;;  %v10209_v19 = vpop.f32.mrf.mxu1 }
 0x452   : > { %v13735_v53 = vadd.f32 %v10209_v19, %v5151_v28 }
 0x453   : > { %v13737_v26 = vpop.f32.mrf.mxu0  ;;  %v5536_v29 = vpop.f32.mrf.mxu1 }
 0x454   : > { %v13740_v35 = vadd.f32 %v5536_v29, %v13606_v24 }
 0x455   : > { %v13742_v8 = vpop.f32.mrf.mxu0  ;;  %v10212_v37 = vpop.f32.mrf.mxu1 }
 0x456   : > { %v13745_v0 = vadd.f32 %v10212_v37, %v13613_v60 }
 0x457   : > { %v13747_v50 = vpop.f32.mrf.mxu0  ;;  %v5549_v39 = vpop.f32.mrf.mxu1 }
 0x458   : > { %v13750_v31 = vadd.f32 %v5549_v39, %v13618_v7 }
 0x459   : > { %v13752_v12 = vpop.f32.mrf.mxu0  ;;  %v10213_v28 = vpop.f32.mrf.mxu1 }
 0x45a   : > { %v13755_v19 = vadd.f32 %v10213_v28, %v13623_v20 }
 0x45b   : > { %v13757_v24 = vpop.f32.mrf.mxu0  ;;  %v5552_v29 = vpop.f32.mrf.mxu1 }
 0x45c   : > { %v13760_v45 = vadd.f32 %v5552_v29, %v13628_v54 }
 0x45d   : > { %v13762_v60 = vpop.f32.mrf.mxu0  ;;  %v10216_v37 = vpop.f32.mrf.mxu1 }
 0x45e   : > { %14250 = vst [vmem:[#allocation33_spill] sm:$0xff] %v13762_v60  ;;  %v13765_v30 = vadd.f32 %v10216_v37, %v13634_v10 }
 0x45f   : > { %v13767_v7 = vpop.f32.mrf.mxu0  ;;  %v5565_v39 = vpop.f32.mrf.mxu1 }
 0x460   : > { %14251 = vst [vmem:[#allocation34_spill] sm:$0xff] %v13767_v7  ;;  %v13770_v17 = vadd.f32 %v5565_v39, %v13639_v5  ;;  %v6037_v7 = vadd.f32 %v13493_v40, %v13713_v3  ;;  %v6038_v40 = vadd.f32 %v13511_v6, %v13731_v59  ;;  %v6044_v6 = vadd.f32 %v13529_v41, %v13745_v0 }
 0x461   : > { %v10217_v20 = vpop.f32.mrf.mxu1  ;;  %v13775_v52 = vpop.f32.mrf.mxu0 }
 0x462   : > { %v13773_v28 = vadd.f32 %v10217_v20, %v13644_v36  ;;  %14252 = vst [vmem:[#allocation35_spill] sm:$0xff] %v13775_v52 }
 0x463   : > { %v5568_v54 = vpop.f32.mrf.mxu1  ;;  %v13783_v37 = vpop.f32.mrf.mxu0 }
 0x464   : > { %v13778_v29 = vadd.f32 %v5568_v54, %v13649_v58  ;;  %14253 = vst [vmem:[#allocation36_spill] sm:$0xff] %v13783_v37 }
 0x465   : > { %v10220_v42 = vpop.f32.mrf.mxu1  ;;  %v13791_v20 = vpop.f32.mrf.mxu0 }
 0x466   : > { %v13781_v10 = vadd.f32 %v10220_v42, %v13654_v2  ;;  %14254 = vst [vmem:[#allocation37_spill] sm:$0xff] %v13791_v20 }
 0x467   : > { %v5581_v62 = vpop.f32.mrf.mxu1  ;;  %v13798_v2 = vpop.f32.mrf.mxu0 }
 0x468   : > { %v13786_v5 = vadd.f32 %v5581_v62, %v13659_v27  ;;  %14255 = vst [vmem:[#allocation38_spill] sm:$0xff] %v13798_v2 }
 0x469   : > { %v10221_v39 = vpop.f32.mrf.mxu1  ;;  %v13804_v27 = vpop.f32.mrf.mxu0 }
 0x46a   : > { %v13789_v36 = vadd.f32 %v10221_v39, %v13664_v11  ;;  %14256 = vst [vmem:[#allocation39_spill] sm:$0xff] %v13804_v27  ;;  %v6036_v11 = vadd.f32 %v13477_v43, %v13701_v16  ;;  %v6035_v43 = vadd.f32 %v13500_v48, %v13719_v15  ;;  %v6041_v48 = vadd.f32 %v13521_v51, %v13735_v53 }
 0x46b   : > { %v5584_v13 = vpop.f32.mrf.mxu1  ;;  %v6042_v51 = vadd.f32 %v13534_v4, %v13750_v31  ;;  %v14260_v4 = vld [vmem:[#allocation21_spill] sm:$0xff] }
 0x46c   : > { %v13794_v58 = vadd.f32 %v5584_v13, %v13671_v14  ;;  %v6034_v13 = vadd.f32 %v13484_v22, %v13707_v63  ;;  %v13814_v14 = vpop.f32.mrf.mxu0  ;;  %v6040_v22 = vadd.f32 %v13505_v18, %v13725_v44  ;;  %v6039_v18 = vadd.f32 %v13526_v46, %v13740_v35  ;;  %v14257_v46 = vld [vmem:[#allocation17_spill] sm:$0xff] }
 0x46d   : > { %v13796_v54 = vpop.f32.mrf.mxu1  ;;  %v6045_v35 = vadd.f32 %v14257_v46, %v13755_v19  ;;  %v6048_v31 = vadd.f32 %v14260_v4, %v13765_v30 }
 0x46e   : > { %v13824_v16 = vpop.f32.mrf.mxu0 }
 0x46f   : > { %v13800_v42 = vpop.f32.mrf.mxu1 }
 0x470   : > { %v13834_v3 = vpop.f32.mrf.mxu0 }
 0x471   : > { %v13802_v37 = vpop.f32.mrf.mxu1 }
 0x472   : > { %v13844_v44 = vpop.f32.mrf.mxu0 }
 0x473   : > { %v13806_v62 = vpop.f32.mrf.mxu1 }
 0x474   : > { %v13854_v53 = vpop.f32.mrf.mxu0 }
 0x475   : > { %v10284_v39 = vpop.f32.mrf.mxu1 }
 0x476   : > { %v13810_v20 = vadd.f32 %v10284_v39, %v6036_v11  ;;  %v13864_v0 = vpop.f32.mrf.mxu0 }
 0x477   : > { %v6193_v2 = vpop.f32.mrf.mxu1  ;;  %14259 = vst [vmem:[#allocation17_spill] sm:$0xff] %v13864_v0 }
 0x478   : > { %v13816_v52 = vadd.f32 %v6193_v2, %v6034_v13 }
 0x479   : > { %v10285_v27 = vpop.f32.mrf.mxu1 }
 0x47a   : > { %v13820_v60 = vadd.f32 %v10285_v27, %v6037_v7 }
 0x47b   : > { %v6196_v11 = vpop.f32.mrf.mxu1 }
 0x47c   : > { %v13826_v39 = vadd.f32 %v6196_v11, %v6035_v43 }
 0x47d   : > { %v10288_v63 = vpop.f32.mrf.mxu1 }
 0x47e   : > { %v13830_v2 = vadd.f32 %v10288_v63, %v6040_v22 }
 0x47f   : > { %v6209_v7 = vpop.f32.mrf.mxu1 }
 0x480   : > { %v13836_v27 = vadd.f32 %v6209_v7, %v6038_v40 }
 0x481   : > { %v10289_v15 = vpop.f32.mrf.mxu1 }
 0x482   : > { %v13840_v13 = vadd.f32 %v10289_v15, %v6041_v48  ;;  %v14258_v15 = vld [vmem:[#allocation20_spill] sm:$0xff] }
 0x483   : > { %v6212_v43 = vpop.f32.mrf.mxu1  ;;  %v6043_v41 = vadd.f32 %v14258_v15, %v13760_v45  ;;  %v14263_v45 = vld [vmem:[#allocation4_spill] sm:$0xff] }
 0x484   : > { %v13846_v11 = vadd.f32 %v6212_v43, %v6039_v18 }
 0x485   : > { %v10292_v59 = vpop.f32.mrf.mxu1 }
 0x486   : > { %v13850_v22 = vadd.f32 %v10292_v59, %v6044_v6 }
 0x487   : > { %v6225_v63 = vpop.f32.mrf.mxu1 }
 0x488   : > { %v13856_v40 = vadd.f32 %v6225_v63, %v6042_v51  ;;  %v14261_v51 = vld [vmem:[#allocation3_spill] sm:$0xff]  ;;  %v13874_v63 = vpop.f32.mrf.mxu0 }
 0x489   : > { %v10293_v7 = vpop.f32.mrf.mxu1  ;;  %v6046_v19 = vadd.f32 %v14261_v51, %v13770_v17  ;;  %14262 = vst [vmem:[#allocation20_spill] sm:$0xff] %v13874_v63  ;;  %v14266_v17 = vld [vmem:[#allocation6_spill] sm:$0xff] }
 0x48a   : > { %v13860_v48 = vadd.f32 %v10293_v7, %v6045_v35  ;;  %v6049_v7 = vadd.f32 %v14263_v45, %v13773_v28  ;;  %v13884_v4 = vpop.f32.mrf.mxu0  ;;  %v6052_v51 = vadd.f32 %v14266_v17, %v13781_v10  ;;  %v14268_v28 = vld [vmem:[#allocation7_spill] sm:$0xff]  ;;  %v14271_v10 = vld [vmem:[#allocation8_spill] sm:$0xff] }
 0x48b   : > { %v6228_v18 = vpop.f32.mrf.mxu1  ;;  %14265 = vst [vmem:[#allocation21_spill] sm:$0xff] %v13884_v4  ;;  %v6050_v45 = vadd.f32 %v14268_v28, %v13786_v5  ;;  %v6053_v17 = vadd.f32 %v14271_v10, %v13789_v36  ;;  %v14278_v10 = vld [vmem:[#allocation14_spill] sm:$0xff] }
 0x48c   : > { %v13866_v43 = vadd.f32 %v6228_v18, %v6043_v41  ;;  %v14264_v18 = vld [vmem:[#allocation5_spill] sm:$0xff] }
 0x48d   : > { %v10296_v6 = vpop.f32.mrf.mxu1  ;;  %v6047_v30 = vadd.f32 %v14264_v18, %v13778_v29  ;;  %v14270_v18 = vld [vmem:[#allocation12_spill] sm:$0xff] }
 0x48e   : > { %v13870_v59 = vadd.f32 %v10296_v6, %v6048_v31 }
 0x48f   : > { %v6241_v46 = vpop.f32.mrf.mxu1 }
 0x490   : > { %v13876_v35 = vadd.f32 %v6241_v46, %v6046_v19  ;;  %v14267_v19 = vld [vmem:[#allocation11_spill] sm:$0xff] }
 0x491   : > { %v10297_v15 = vpop.f32.mrf.mxu1  ;;  %v6032_v46 = vadd.f32 %v14267_v19, %v13677_v1  ;;  %v14274_v19 = vld [vmem:[#allocation9_spill] sm:$0xff] }
 0x492   : > { %v13880_v41 = vadd.f32 %v10297_v15, %v6049_v7  ;;  %v13896_v7 = vpop.f32.mrf.mxu0  ;;  %v6051_v28 = vadd.f32 %v14274_v19, %v13794_v58 }
 0x493   : > { %v6244_v31 = vpop.f32.mrf.mxu1  ;;  %14269 = vst [vmem:[#allocation3_spill] sm:$0xff] %v13896_v7  ;;  %v6274_v15 = vadd.f32 %v13796_v54, %v6032_v46 }
 0x494   : > { %v13886_v6 = vadd.f32 %v6244_v31, %v6047_v30  ;;  %v6030_v30 = vadd.f32 %v14270_v18, %v13683_v47  ;;  %v10440_v54 = vpop.f32.mrf.mxu0  ;;  %v14277_v18 = vld [vmem:[#allocation10_spill] sm:$0xff] }
 0x495   : > { %v10300_v63 = vpop.f32.mrf.mxu1 }
 0x496   : > { %v13892_v0 = vadd.f32 %v10300_v63, %v6052_v51  ;;  %v6272_v1 = vadd.f32 %v13800_v42, %v6030_v30  ;;  %v14272_v63 = vld [vmem:[#allocation16_spill] sm:$0xff]  ;;  %v6692_v42 = vadd.f32 %v14277_v18, %v6274_v15  ;;  %v7689_v58 = vpop.f32.mrf.mxu0 }
 0x497   : > { %v6257_v29 = vpop.f32.mrf.mxu1  ;;  %v6033_v51 = vadd.f32 %v14272_v63, %v13689_v9 }
 0x498   : > { %v13901_v31 = vadd.f32 %v6257_v29, %v6050_v45  ;;  %v14275_v45 = vld [vmem:[#allocation13_spill] sm:$0xff] }
 0x499   : > { %v10301_v4 = vpop.f32.mrf.mxu1  ;;  %v6275_v47 = vadd.f32 %v13802_v37, %v6033_v51  ;;  %v6031_v29 = vadd.f32 %v14275_v45, %v13695_v23  ;;  %v14279_v51 = vld [vmem:[#allocation15_spill] sm:$0xff]  ;;  %v13925_v23 = vld [vmem:[%s14113_s5] ss:$0 sm:$0xff]  ;;  %v10441_v45 = vpop.f32.mrf.mxu0 }
 0x49a   : > { %v13908_v5 = vadd.f32 %v10301_v4, %v6053_v17  ;;  %v6690_v17 = vadd.f32 %v14278_v10, %v6272_v1 }
 0x49b   : > { %v6260_v46 = vpop.f32.mrf.mxu1  ;;  %v6273_v9 = vadd.f32 %v13806_v62, %v6031_v29  ;;  %v6693_v7 = vadd.f32 %v14279_v51, %v6275_v47 }
 0x49c   : > { %14273 = vst [vmem:[#allocation4_spill] sm:$0xff] %v13908_v5  ;;  %v13915_v36 = vadd.f32 %v6260_v46, %v6051_v28 }
 0x49d   : > { %v10360_v30 = vpop.f32.mrf.mxu1  ;;  %v6691_v1 = vadd.f32 %v13603_v32, %v6273_v9  ;;  %v7692_v9 = vpop.f32.mrf.mxu0 }
 0x49e   : > { %14276 = vst [vmem:[#allocation5_spill] sm:$0xff] %v13915_v36  ;;  %v7126_v4 = vadd.f32 %v10360_v30, %v6692_v42  ;;  %v13936_v30 = vld [vmem:[%s14114_s6] ss:$0 sm:$0xff]  ;;  %v6695_v36 = vadd.f32 %v13625_v57, %v13826_v39 }
 0x49f   : > { %v7029_v63 = vpop.f32.mrf.mxu1 }
 0x4a0   : > { %v7368_v19 = vadd.f32 %v13721_v56, %v7126_v4  ;;  %v7124_v37 = vadd.f32 %v7029_v63, %v6690_v17 }
 0x4a1   : > { %v10361_v15 = vpop.f32.mrf.mxu1 }
 0x4a2   : > { %v7786_v28 = vadd.f32 %v10440_v54, %v7368_v19  ;;  %v7366_v62 = vadd.f32 %v13727_v55, %v7124_v37  ;;  %v7127_v46 = vadd.f32 %v10361_v15, %v6693_v7 }
 0x4a3   : > { %v7032_v29 = vpop.f32.mrf.mxu1 }
 0x4a4   : > { %v7816_v56 = vmul.f32 %v13925_v23, %v7786_v28  ;;  %v7784_v18 = vadd.f32 %v7689_v58, %v7366_v62  ;;  %v7369_v47 = vadd.f32 %v13733_v61, %v7127_v46  ;;  %v7125_v42 = vadd.f32 %v7032_v29, %v6691_v1 }
 0x4a5   : > { %v10364_v54 = vpop.f32.mrf.mxu1 }
 0x4a6   : > { %v7814_v55 = vmul.f32 %v13925_v23, %v7784_v18  ;;  %v7787_v7 = vadd.f32 %v10441_v45, %v7369_v47  ;;  %v7367_v32 = vadd.f32 %v13737_v26, %v7125_v42  ;;  %v7846_v10 = vadd.f32 %v13936_v30, %v7816_v56 }
 0x4a7   : > { %v7045_v4 = vpop.f32.mrf.mxu1 }
 0x4a8   : > { %v7817_v17 = vmul.f32 %v13925_v23, %v7787_v7  ;;  %v7785_v61 = vadd.f32 %v7692_v9, %v7367_v32  ;;  %v7844_v63 = vadd.f32 %v13936_v30, %v7814_v55  ;;  %v7870_v15 = vmax.f32 %v7846_v10, 0.0 }
 0x4a9   : > { %v10365_v58 = vpop.f32.mrf.mxu1 }
 0x4aa   : > { %v7847_v19 = vadd.f32 %v13936_v30, %v7817_v17  ;;  %v7815_v37 = vmul.f32 %v13925_v23, %v7785_v61  ;;  %v7868_v46 = vmax.f32 %v7844_v63, 0.0 }
 0x4ab   : > { %v7048_v51 = vpop.f32.mrf.mxu1 }
 0x4ac   : > { %v7871_v28 = vmax.f32 %v7847_v19, 0.0  ;;  %v7845_v26 = vadd.f32 %v13936_v30, %v7815_v37  ;;  %v6696_v19 = vadd.f32 %v13608_v38, %v13810_v20  ;;  %v7129_v5 = vadd.f32 %v7048_v51, %v6695_v36 }
 0x4ad   : > { %v10368_v62 = vpop.f32.mrf.mxu1 }
 0x4ae   : > { %v8954_v1 = vpack.c.bf16 %v7871_v28, %v7870_v15  ;;  %v7869_v45 = vmax.f32 %v7845_v26, 0.0  ;;  %v7130_v15 = vadd.f32 %v10364_v54, %v6696_v19  ;;  %v6694_v28 = vadd.f32 %v13615_v34, %v13816_v52 }
 0x4af   : > { %v7061_v29 = vpop.f32.mrf.mxu1  ;;  %v6700_v54 = vadd.f32 %v13630_v21, %v13830_v2  ;;  %v7371_v21 = vadd.f32 %v13757_v24, %v7129_v5  ;;  %v14280_v2 = vld [vmem:[#allocation18_spill] sm:$0xff] }
 0x4b0   : > { %9020 = vst [vmem:[%s13949_s8 + $0x8] sm:$0xff] %v8954_v1   ;;  %v8949_v56 = vpack.c.bf16 %v7869_v45, %v7868_v46  ;;  %v7128_v46 = vadd.f32 %v7045_v4, %v6694_v28  ;;  %v6697_v1 = vadd.f32 %v13620_v33, %v13820_v60  ;;  %v7372_v38 = vadd.f32 %v13742_v8, %v7130_v15  ;;  %v14283_v5 = vld [vmem:[#allocation34_spill] sm:$0xff] }
 0x4b1   : > { %v10369_v18 = vpop.f32.mrf.mxu1  ;;  %v6698_v4 = vadd.f32 %v13636_v25, %v13836_v27  ;;  %v7134_v60 = vadd.f32 %v10368_v62, %v6700_v54  ;;  %v6699_v25 = vadd.f32 %v14280_v2, %v13846_v11 }
 0x4b2   : > { %8950 = vst [vmem:[%s13949_s8] sm:$0xff] %v8949_v56   ;;  %v7131_v56 = vadd.f32 %v10365_v58, %v6697_v1  ;;  %v7370_v52 = vadd.f32 %v13747_v50, %v7128_v46  ;;  %v6701_v50 = vadd.f32 %v13641_v49, %v13840_v13 }
 0x4b3   : > { %v7064_v47 = vpop.f32.mrf.mxu1  ;;  %v7132_v39 = vadd.f32 %v7061_v29, %v6698_v4 }
 0x4b4   : > { %v7373_v57 = vadd.f32 %v13752_v12, %v7131_v56  ;;  %v14281_v12 = vld [vmem:[#allocation33_spill] sm:$0xff]  ;;  %v7135_v46 = vadd.f32 %v10369_v18, %v6701_v50  ;;  %v7133_v1 = vadd.f32 %v7064_v47, %v6699_v25  ;;  %v14282_v56 = vld [vmem:[#allocation19_spill] sm:$0xff] }
 0x4b5   : > { %v10372_v42 = vpop.f32.mrf.mxu1  ;;  %v7376_v29 = vadd.f32 %v14281_v12, %v7134_v60  ;;  %v14285_v18 = vld [vmem:[#allocation23_spill] sm:$0xff] }
 0x4b6   : > { %v6705_v47 = vadd.f32 %v14285_v18, %v13860_v48 }
 0x4b7   : > { %v7077_v55 = vpop.f32.mrf.mxu1 }
 0x4b9   : > { %v13953_v7 = vpop.f32.mrf.mxu1 }
 0x4ba   : > { %v7139_v25 = vadd.f32 %v13953_v7, %v6705_v47 }
 0x4bb   : > { %v13955_v32 = vpop.f32.mrf.mxu1 }
 0x4bd   : > { %v13957_v9 = vpop.f32.mrf.mxu1 }
 0x4bf   : > { %v13959_v10 = vpop.f32.mrf.mxu1 }
 0x4c1   : > { %v13961_v17 = vpop.f32.mrf.mxu1 }
 0x4c3   : > { %v13963_v61 = vpop.f32.mrf.mxu1 }
 0x4c5   : > { %v13965_v63 = vpop.f32.mrf.mxu1 }
 0x4c7   : > { %v13969_v37 = vpop.f32.mrf.mxu1 }
 0x4c9   : > { %v13973_v26 = vpop.f32.mrf.mxu1 }
 0x4cb   : > { %v13977_v45 = vpop.f32.mrf.mxu1 }
 0x4cd   : > { %v10444_v20 = vpop.f32.mrf.mxu1 }
 0x4ce   : > { %v7790_v34 = vadd.f32 %v10444_v20, %v7372_v38  ;;  %v6704_v38 = vadd.f32 %v14282_v56, %v13850_v22  ;;  %v7374_v20 = vadd.f32 %v14283_v5, %v7132_v39 }
 0x4cf   : > { %v7705_v33 = vpop.f32.mrf.mxu1 }
 0x4d0   : > { %v7820_v58 = vmul.f32 %v13925_v23, %v7790_v34  ;;  %v7788_v19 = vadd.f32 %v7705_v33, %v7370_v52  ;;  %v7138_v34 = vadd.f32 %v10372_v42, %v6704_v38  ;;  %v14284_v52 = vld [vmem:[#allocation22_spill] sm:$0xff]  ;;  %v14287_v42 = vld [vmem:[#allocation36_spill] sm:$0xff] }
 0x4d1   : > { %v10445_v8 = vpop.f32.mrf.mxu1  ;;  %v6702_v4 = vadd.f32 %v14284_v52, %v13856_v40 }
 0x4d2   : > { %v7818_v36 = vmul.f32 %v13925_v23, %v7788_v19  ;;  %v7791_v51 = vadd.f32 %v10445_v8, %v7373_v57  ;;  %v7850_v62 = vadd.f32 %v13936_v30, %v7820_v58  ;;  %v14286_v8 = vld [vmem:[#allocation35_spill] sm:$0xff] }
 0x4d3   : > { %v7708_v27 = vpop.f32.mrf.mxu1  ;;  %v7136_v57 = vadd.f32 %v7077_v55, %v6702_v4  ;;  %v14293_v4 = vld [vmem:[#allocation39_spill] sm:$0xff] }
 0x4d4   : > { %v7821_v15 = vmul.f32 %v13925_v23, %v7791_v51  ;;  %v7789_v28 = vadd.f32 %v7708_v27, %v7371_v21  ;;  %v7848_v49 = vadd.f32 %v13936_v30, %v7818_v36  ;;  %v7874_v60 = vmax.f32 %v7850_v62, 0.0 }
 0x4d5   : > { %v10448_v24 = vpop.f32.mrf.mxu1  ;;  %v7377_v36 = vadd.f32 %v14286_v8, %v7135_v46  ;;  %v7375_v21 = vadd.f32 %v14287_v42, %v7133_v1  ;;  %v14290_v1 = vld [vmem:[#allocation25_spill] sm:$0xff]  ;;  %v7381_v18 = vadd.f32 %v14293_v4, %v7139_v25 }
 0x4d6   : > { %v7851_v13 = vadd.f32 %v13936_v30, %v7821_v15  ;;  %v7819_v11 = vmul.f32 %v13925_v23, %v7789_v28  ;;  %v7794_v54 = vadd.f32 %v10448_v24, %v7376_v29  ;;  %v7872_v50 = vmax.f32 %v7848_v49, 0.0  ;;  %v14288_v28 = vld [vmem:[#allocation37_spill] sm:$0xff]  ;;  %v14289_v29 = vld [vmem:[#allocation24_spill] sm:$0xff] }
 0x4d7   : > { %v7721_v33 = vpop.f32.mrf.mxu1  ;;  %v7380_v12 = vadd.f32 %v14288_v28, %v7138_v34  ;;  %v6703_v46 = vadd.f32 %v14289_v29, %v13866_v43  ;;  %v6708_v56 = vadd.f32 %v14290_v1, %v13870_v59  ;;  %v14292_v43 = vld [vmem:[#allocation26_spill] sm:$0xff] }
 0x4d8   : > { %v7875_v22 = vmax.f32 %v7851_v13, 0.0  ;;  %v7849_v58 = vadd.f32 %v13936_v30, %v7819_v11  ;;  %v7792_v19 = vadd.f32 %v7721_v33, %v7374_v20  ;;  %v7824_v39 = vmul.f32 %v13925_v23, %v7794_v54  ;;  %v14291_v13 = vld [vmem:[#allocation38_spill] sm:$0xff] }
 0x4d9   : > { %v10449_v51 = vpop.f32.mrf.mxu1  ;;  %v7378_v11 = vadd.f32 %v14291_v13, %v7136_v57  ;;  %v7137_v54 = vadd.f32 %v13955_v32, %v6703_v46  ;;  %v6706_v34 = vadd.f32 %v14292_v43, %v13876_v35  ;;  %v7142_v47 = vadd.f32 %v13957_v9, %v6708_v56  ;;  %v14295_v32 = vld [vmem:[#allocation28_spill] sm:$0xff]  ;;  %v14299_v43 = vld [vmem:[#allocation31_spill] sm:$0xff] }
 0x4da   : > { %v8964_v40 = vpack.c.bf16 %v7875_v22, %v7874_v60  ;;  %v7873_v2 = vmax.f32 %v7849_v58, 0.0  ;;  %v7822_v48 = vmul.f32 %v13925_v23, %v7792_v19  ;;  %v7795_v27 = vadd.f32 %v10449_v51, %v7377_v36  ;;  %v14294_v58 = vld [vmem:[#allocation27_spill] sm:$0xff] }
 0x4db   : > { %v7724_v62 = vpop.f32.mrf.mxu1  ;;  %v7854_v38 = vadd.f32 %v13936_v30, %v7824_v39  ;;  %v6709_v19 = vadd.f32 %v14294_v58, %v13880_v41  ;;  %v6707_v57 = vadd.f32 %v14295_v32, %v13886_v6  ;;  %v7140_v36 = vadd.f32 %v13959_v10, %v6706_v34  ;;  %v14296_v10 = vld [vmem:[#allocation29_spill] sm:$0xff] }
 0x4dc   : > { %9022 = vst [vmem:[%s13949_s8 + $0x18] sm:$0xff] %v8964_v40   ;;  %v8959_v15 = vpack.c.bf16 %v7873_v2, %v7872_v50  ;;  %v7793_v55 = vadd.f32 %v7724_v62, %v7375_v21  ;;  %v7825_v24 = vmul.f32 %v13925_v23, %v7795_v27  ;;  %v7852_v7 = vadd.f32 %v13936_v30, %v7822_v48  ;;  %v14300_v34 = vld [vmem:[#allocation5_spill] sm:$0xff] }
 0x4dd   : > { %v10452_v5 = vpop.f32.mrf.mxu1  ;;  %v7878_v39 = vmax.f32 %v7854_v38, 0.0  ;;  %v7143_v21 = vadd.f32 %v13961_v17, %v6709_v19  ;;  %v7379_v41 = vadd.f32 %v13814_v14, %v7137_v54  ;;  %v7384_v27 = vadd.f32 %v13824_v16, %v7142_v47  ;;  %v14298_v54 = vld [vmem:[#allocation4_spill] sm:$0xff] }
 0x4de   : > { %9021 = vst [vmem:[%s13949_s8 + $0x10] sm:$0xff] %v8959_v15   ;;  %v7823_v20 = vmul.f32 %v13925_v23, %v7793_v55  ;;  %v7798_v49 = vadd.f32 %v10452_v5, %v7380_v12  ;;  %v7855_v59 = vadd.f32 %v13936_v30, %v7825_v24  ;;  %v7876_v51 = vmax.f32 %v7852_v7, 0.0  ;;  %v14297_v15 = vld [vmem:[#allocation30_spill] sm:$0xff] }
 0x4df   : > { %v7737_v52 = vpop.f32.mrf.mxu1  ;;  %v6712_v62 = vadd.f32 %v14296_v10, %v13892_v0  ;;  %v6710_v55 = vadd.f32 %v14297_v15, %v13901_v31  ;;  %v7141_v12 = vadd.f32 %v13963_v61, %v6707_v57  ;;  %v7382_v46 = vadd.f32 %v13834_v3, %v7140_v36 }
 0x4e0   : > { %v7853_v33 = vadd.f32 %v13936_v30, %v7823_v20  ;;  %v7828_v60 = vmul.f32 %v13925_v23, %v7798_v49  ;;  %v7796_v22 = vadd.f32 %v7737_v52, %v7378_v11  ;;  %v7879_v35 = vmax.f32 %v7855_v59, 0.0  ;;  %v14301_v59 = vld [vmem:[#allocation32_spill] sm:$0xff] }
 0x4e1   : > { %v10453_v8 = vpop.f32.mrf.mxu1  ;;  %v7146_v1 = vadd.f32 %v13965_v63, %v6712_v62  ;;  %v7385_v31 = vadd.f32 %v13844_v44, %v7143_v21  ;;  %v7144_v7 = vadd.f32 %v13969_v37, %v6710_v55  ;;  %v7383_v11 = vadd.f32 %v13854_v53, %v7141_v12 }
 0x4e2   : > { %v7877_v42 = vmax.f32 %v7853_v33, 0.0  ;;  %v7799_v9 = vadd.f32 %v10453_v8, %v7381_v18  ;;  %v8974_v50 = vpack.c.bf16 %v7879_v35, %v7878_v39  ;;  %v7826_v40 = vmul.f32 %v13925_v23, %v7796_v22  ;;  %v14302_v22 = vld [vmem:[#allocation17_spill] sm:$0xff]  ;;  %v14303_v39 = vld [vmem:[#allocation20_spill] sm:$0xff] }
 0x4e3   : > { %v7740_v2 = vpop.f32.mrf.mxu1  ;;  %v7858_v6 = vadd.f32 %v13936_v30, %v7828_v60  ;;  %v6713_v44 = vadd.f32 %v14299_v43, %v14298_v54  ;;  %v6711_v52 = vadd.f32 %v14301_v59, %v14300_v34  ;;  %v7388_v58 = vadd.f32 %v14302_v22, %v7146_v1 }
 0x4e4   : > { %v8969_v48 = vpack.c.bf16 %v7877_v42, %v7876_v51  ;;  %v7829_v25 = vmul.f32 %v13925_v23, %v7799_v9  ;;  %9024 = vst [vmem:[%s13949_s8 + $0x28] sm:$0xff] %v8974_v50   ;;  %v7797_v17 = vadd.f32 %v7740_v2, %v7379_v41  ;;  %v7856_v16 = vadd.f32 %v13936_v30, %v7826_v40  ;;  %v14304_v41 = vld [vmem:[#allocation21_spill] sm:$0xff] }
 0x4e5   : > { %v10456_v28 = vpop.f32.mrf.mxu1  ;;  %v7882_v38 = vmax.f32 %v7858_v6, 0.0  ;;  %v7147_v53 = vadd.f32 %v13973_v26, %v6713_v44  ;;  %v7145_v19 = vadd.f32 %v13977_v45, %v6711_v52  ;;  %v7386_v35 = vadd.f32 %v14303_v39, %v7144_v7  ;;  %v14305_v6 = vld [vmem:[#allocation3_spill] sm:$0xff] }
 0x4e6   : > { %9023 = vst [vmem:[%s13949_s8 + $0x20] sm:$0xff] %v8969_v48   ;;  %v7859_v14 = vadd.f32 %v13936_v30, %v7829_v25  ;;  %v7802_v29 = vadd.f32 %v10456_v28, %v7384_v27  ;;  %v7827_v0 = vmul.f32 %v13925_v23, %v7797_v17  ;;  %v7880_v4 = vmax.f32 %v7856_v16, 0.0 }
 0x4e7   : > { %v7753_v56 = vpop.f32.mrf.mxu1  ;;  %v7389_v2 = vadd.f32 %v14304_v41, %v7147_v53  ;;  %v7387_v25 = vadd.f32 %v14305_v6, %v7145_v19 }
 0x4e8   : > { %v7883_v24 = vmax.f32 %v7859_v14, 0.0  ;;  %v7832_v61 = vmul.f32 %v13925_v23, %v7802_v29  ;;  %v7800_v5 = vadd.f32 %v7753_v56, %v7382_v46  ;;  %v7857_v20 = vadd.f32 %v13936_v30, %v7827_v0 }
 0x4e9   : > { %v10457_v3 = vpop.f32.mrf.mxu1 }
 0x4ea   : > { %v8984_v49 = vpack.c.bf16 %v7883_v24, %v7882_v38  ;;  %v7830_v63 = vmul.f32 %v13925_v23, %v7800_v5  ;;  %v7803_v13 = vadd.f32 %v10457_v3, %v7385_v31  ;;  %v7881_v18 = vmax.f32 %v7857_v20, 0.0 }
 0x4eb   : > { %v7756_v47 = vpop.f32.mrf.mxu1  ;;  %v7862_v37 = vadd.f32 %v13936_v30, %v7832_v61 }
 0x4ec   : > { %9026 = vst [vmem:[%s13949_s8 + $0x38] sm:$0xff] %v8984_v49   ;;  %v7833_v33 = vmul.f32 %v13925_v23, %v7803_v13  ;;  %v7801_v60 = vadd.f32 %v7756_v47, %v7383_v11  ;;  %v8979_v32 = vpack.c.bf16 %v7881_v18, %v7880_v4  ;;  %v7860_v8 = vadd.f32 %v13936_v30, %v7830_v63 }
 0x4ed   : > { %v10460_v57 = vpop.f32.mrf.mxu1  ;;  %v7886_v21 = vmax.f32 %v7862_v37, 0.0 }
 0x4ee   : > { %v7863_v36 = vadd.f32 %v13936_v30, %v7833_v33  ;;  %v7831_v51 = vmul.f32 %v13925_v23, %v7801_v60  ;;  %v7806_v42 = vadd.f32 %v10460_v57, %v7388_v58  ;;  %9025 = vst [vmem:[%s13949_s8 + $0x30] sm:$0xff] %v8979_v32   ;;  %v7884_v27 = vmax.f32 %v7860_v8, 0.0 }
 0x4ef   : > { %v7769_v9 = vpop.f32.mrf.mxu1 }
 0x4f0   : > { %v7887_v50 = vmax.f32 %v7863_v36, 0.0  ;;  %v7861_v26 = vadd.f32 %v13936_v30, %v7831_v51  ;;  %v7804_v40 = vadd.f32 %v7769_v9, %v7386_v35  ;;  %v7836_v45 = vmul.f32 %v13925_v23, %v7806_v42 }
 0x4f1   : > { %v10461_v48 = vpop.f32.mrf.mxu1 }
 0x4f2   : > { %v8994_v10 = vpack.c.bf16 %v7887_v50, %v7886_v21  ;;  %v7885_v62 = vmax.f32 %v7861_v26, 0.0  ;;  %v7834_v15 = vmul.f32 %v13925_v23, %v7804_v40  ;;  %v7807_v55 = vadd.f32 %v10461_v48, %v7389_v2 }
 0x4f3   : > { %v7772_v17 = vpop.f32.mrf.mxu1  ;;  %v7866_v14 = vadd.f32 %v13936_v30, %v7836_v45 }
 0x4f4   : > { %9028 = vst [vmem:[%s13949_s8 + $0x48] sm:$0xff] %v8994_v10   ;;  %v8989_v28 = vpack.c.bf16 %v7885_v62, %v7884_v27  ;;  %v7805_v12 = vadd.f32 %v7772_v17, %v7387_v25  ;;  %v7837_v29 = vmul.f32 %v13925_v23, %v7807_v55  ;;  %v7864_v46 = vadd.f32 %v13936_v30, %v7834_v15 }
 0x4f5   : > { %v7890_v56 = vmax.f32 %v7866_v14, 0.0 }
 0x4f6   : > { %9027 = vst [vmem:[%s13949_s8 + $0x40] sm:$0xff] %v8989_v28   ;;  %v7835_v1 = vmul.f32 %v13925_v23, %v7805_v12  ;;  %v7867_v16 = vadd.f32 %v13936_v30, %v7837_v29  ;;  %v7888_v38 = vmax.f32 %v7864_v46, 0.0 }
 0x4f8   : > { %v7865_v0 = vadd.f32 %v13936_v30, %v7835_v1  ;;  %v7891_v31 = vmax.f32 %v7867_v16, 0.0 }
 0x4fa   : > { %v7889_v24 = vmax.f32 %v7865_v0, 0.0  ;;  %v9004_v61 = vpack.c.bf16 %v7891_v31, %v7890_v56 }
 0x4fc   : > { %v8999_v5 = vpack.c.bf16 %v7889_v24, %v7888_v38  ;;  %9030 = vst [vmem:[%s13949_s8 + $0x58] sm:$0xff] %v9004_v61  }
 0x4fe   : > { %9029 = vst [vmem:[%s13949_s8 + $0x50] sm:$0xff] %v8999_v5  }
 0x4ff PF: > { %s17_s28 = sadd.s32 1, %s10997_s28   ;;  %s14306_s24 = smov %s10989_s26 }
 0x500   : > { %p14_p7 = scmp.ge.s32.totalorder %s17_s28, 6   ;;  %s14307_s25 = smov %s10993_s27 }
 0x501   : > { %s14308_s26 = smov %s14311_s29  ;;  %s14309_s27 = smov %s14315_s30 }
 0x502   :  { %16 = sbr.rel (!%p14_p7) target bundleno = 3 (0x3), region = 94 }

</bundles_post_ra>
